<compile_context>
chip_gen: v7x
topology: tpu7x:2x2x1
jax: 0.10.0
libtpu: 0.0.40
codegen_flags: <defaults>
</compile_context>

<pallas_src>
import functools

import jax
import jax.numpy as jnp
from jax.experimental import pallas as pl
from jax.experimental.pallas import tpu as pltpu


def _leaky_relu(x):
    return jnp.where(x >= 0, x, 0.1 * x)


def _im2col_3x3(x, Ho, Wo, C):
    """x: (Nb, H, W, C) -> (Nb*Ho*Wo, 9*C) patch matrix for a 3x3 VALID conv."""
    Nb = x.shape[0]
    rows = Nb * Ho * Wo
    cols = [x[:, ky:ky + Ho, kx:kx + Wo, :].reshape(rows, C)
            for ky in range(3) for kx in range(3)]
    return jnp.concatenate(cols, axis=1)                              # (rows, 9*C)


def unet_conv_kernel(x_ref, w1_ref, b1_ref, w2_ref, b2_ref,
                     sw1_ref, sb1_ref, sw2_ref, sb2_ref, o_ref,
                     *, Nb, H, W, Cin, Cmid, Cout, compute_dtype):
    Ho1, Wo1 = H - 2, W - 2
    Ho2, Wo2 = H - 4, W - 4

    x = x_ref[...]                                                    # (Nb, H, W, Cin)

    # ---- conv1: single im2col matmul (K = 9*Cin) + bias + LeakyReLU(0.1) ----
    p1 = _im2col_3x3(x, Ho1, Wo1, Cin).astype(compute_dtype)
    z1 = jnp.dot(p1, w1_ref[...].astype(compute_dtype),
                 preferred_element_type=jnp.float32) + b1_ref[...]
    z1 = _leaky_relu(z1).reshape(Nb, Ho1, Wo1, Cmid)

    # ---- conv2: single im2col matmul (K = 9*Cmid) + bias + LeakyReLU(0.1) ----
    p2 = _im2col_3x3(z1, Ho2, Wo2, Cmid).astype(compute_dtype)
    z2 = jnp.dot(p2, w2_ref[...].astype(compute_dtype),
                 preferred_element_type=jnp.float32) + b2_ref[...]
    z2 = _leaky_relu(z2).reshape(Nb, Ho2 * Wo2, Cout)

    # ---- SEBlock: per-image spatial mean -> 1x1 -> ReLU -> 1x1 -> sigmoid ----
    m = jnp.mean(z2, axis=1)                                          # (Nb, Cout)
    s = jnp.dot(m, sw1_ref[...], preferred_element_type=jnp.float32) + sb1_ref[...]
    s = jnp.maximum(s, 0.0)
    s = jnp.dot(s, sw2_ref[...], preferred_element_type=jnp.float32) + sb2_ref[...]
    s = 1.0 / (1.0 + jnp.exp(-s))                                     # sigmoid
    z2 = z2 * s[:, None, :]                                           # per-channel scale

    o_ref[...] = z2.astype(o_ref.dtype)                               # (Nb, Ho2*Wo2, Cout)


def unet_conv_forward(x_nchw, params, *, nb=1, use_bf16=False):
    """x_nchw: (N, Cin, H, W) float32.  Returns (N, Cout, H-4, W-4) float32."""
    N, Cin, H, W = x_nchw.shape
    assert N % nb == 0, "batch must be divisible by the per-step block nb"
    w1 = params["w1"]                       # (Cmid, Cin, 3, 3)  torch OIHW
    w2 = params["w2"]                       # (Cout, Cmid, 3, 3)
    Cmid, Cout = w1.shape[0], w2.shape[0]
    Cr = params["se_w1"].shape[0]
    Ho2, Wo2 = H - 4, W - 4

    # channels-last for the kernel (lane-dense once C >= 128 in real layers)
    x = jnp.transpose(x_nchw, (0, 2, 3, 1)).astype(jnp.float32)       # (N, H, W, Cin)

    # conv weights packed as (ky, kx, Cin, Cout) -> (9*Cin, Cout) matmul matrices
    w1m = jnp.transpose(w1, (2, 3, 1, 0)).reshape(9 * Cin, Cmid)
    w2m = jnp.transpose(w2, (2, 3, 1, 0)).reshape(9 * Cmid, Cout)
    b1 = params["b1"].reshape(1, Cmid)
    b2 = params["b2"].reshape(1, Cout)
    # SE 1x1 convs as plain matmuls (transpose OI -> IO)
    sw1 = params["se_w1"].reshape(Cr, Cout).T                         # (Cout, Cr)
    sb1 = params["se_b1"].reshape(1, Cr)
    sw2 = params["se_w2"].reshape(Cout, Cr).T                         # (Cr, Cout)
    sb2 = params["se_b2"].reshape(1, Cout)

    compute_dtype = jnp.bfloat16 if use_bf16 else jnp.float32
    kernel = functools.partial(unet_conv_kernel, Nb=nb, H=H, W=W,
                               Cin=Cin, Cmid=Cmid, Cout=Cout,
                               compute_dtype=compute_dtype)

    out = pl.pallas_call(
        kernel,
        out_shape=jax.ShapeDtypeStruct((N, Ho2 * Wo2, Cout), jnp.float32),
        grid=(N // nb,),
        in_specs=[
            pl.BlockSpec((nb, H, W, Cin), lambda b: (b, 0, 0, 0)),
            pl.BlockSpec((9 * Cin, Cmid), lambda b: (0, 0)),
            pl.BlockSpec((1, Cmid), lambda b: (0, 0)),
            pl.BlockSpec((9 * Cmid, Cout), lambda b: (0, 0)),
            pl.BlockSpec((1, Cout), lambda b: (0, 0)),
            pl.BlockSpec((Cout, Cr), lambda b: (0, 0)),
            pl.BlockSpec((1, Cr), lambda b: (0, 0)),
            pl.BlockSpec((Cr, Cout), lambda b: (0, 0)),
            pl.BlockSpec((1, Cout), lambda b: (0, 0)),
        ],
        out_specs=pl.BlockSpec((nb, Ho2 * Wo2, Cout), lambda b: (b, 0, 0)),
        compiler_params=pltpu.CompilerParams(
            dimension_semantics=("parallel",),       # v7x: shard batch over 2 TCs
            vmem_limit_bytes=32 * 1024 * 1024),
    )(x, w1m, b1, w2m, b2, sw1, sb1, sw2, sb2)

    out_nhwc = out.reshape(N, Ho2, Wo2, Cout)
    return jnp.transpose(out_nhwc, (0, 3, 1, 2))                      # back to NCHW


def reference_forward(x_nchw, params):
    """Pure-JAX reference (mirrors the PyTorch UNetConv forward)."""
    w1, b1 = params["w1"], params["b1"]
    w2, b2 = params["w2"], params["b2"]
    Cr = params["se_w1"].shape[0]
    Cout = w2.shape[0]

    x = jnp.transpose(x_nchw, (0, 2, 3, 1))
    dn = ("NHWC", "HWIO", "NHWC")
    z = jax.lax.conv_general_dilated(x, jnp.transpose(w1, (2, 3, 1, 0)),
                                     (1, 1), "VALID", dimension_numbers=dn) + b1
    z = jnp.where(z >= 0, z, 0.1 * z)
    z = jax.lax.conv_general_dilated(z, jnp.transpose(w2, (2, 3, 1, 0)),
                                     (1, 1), "VALID", dimension_numbers=dn) + b2
    z = jnp.where(z >= 0, z, 0.1 * z)

    m = jnp.mean(z, axis=(1, 2), keepdims=True)                       # (N,1,1,Cout)
    s = jnp.einsum("nijc,rc->nijr", m, params["se_w1"].reshape(Cr, Cout)) + params["se_b1"]
    s = jnp.maximum(s, 0.0)
    s = jnp.einsum("nijr,cr->nijc", s, params["se_w2"].reshape(Cout, Cr)) + params["se_b2"]
    s = jax.nn.sigmoid(s)
    z = z * s
    return jnp.transpose(z, (0, 3, 1, 2))


def init_params(key, in_channels, mid_channels, out_channels, reduction=8):
    ks = jax.random.split(key, 8)
    cr = out_channels // reduction
    scale = 0.1
    return {
        "w1": scale * jax.random.normal(ks[0], (mid_channels, in_channels, 3, 3), jnp.float32),
        "b1": scale * jax.random.normal(ks[1], (mid_channels,), jnp.float32),
        "w2": scale * jax.random.normal(ks[2], (out_channels, mid_channels, 3, 3), jnp.float32),
        "b2": scale * jax.random.normal(ks[3], (out_channels,), jnp.float32),
        "se_w1": scale * jax.random.normal(ks[4], (cr, out_channels, 1, 1), jnp.float32),
        "se_b1": scale * jax.random.normal(ks[5], (cr,), jnp.float32),
        "se_w2": scale * jax.random.normal(ks[6], (out_channels, cr, 1, 1), jnp.float32),
        "se_b2": scale * jax.random.normal(ks[7], (out_channels,), jnp.float32),
    }


if __name__ == "__main__":
    key = jax.random.PRNGKey(0)
    k_x, k_p = jax.random.split(key)

    N, Cin, H, W = 2, 4, 16, 16
    Cmid, Cout = 16, 16   # se=True -> out_channels divisible by reduction=8

    x = jax.random.normal(k_x, (N, Cin, H, W), jnp.float32)
    params = init_params(k_p, Cin, Cmid, Cout)

    # nb=1 keeps one image per grid step so the "parallel" batch axis can be
    # sharded across v7x's two TensorCores; nb=N runs the whole batch in one
    # step (lowest per-step overhead on v5e/v6e).
    out = unet_conv_forward(x, params, nb=1, use_bf16=False)
    out = jax.block_until_ready(out)

    ref = jax.block_until_ready(reference_forward(x, params))
    assert out.shape == (N, Cout, H - 4, W - 4), out.shape
    assert jnp.allclose(out, ref, atol=2e-4, rtol=2e-4), "mismatch vs reference"

    print("KERNEL_OK")
</pallas_src>

<mosaic_0001>
module attributes {stable_mosaic.version = 11 : i64} {
  func.func @unet_conv_kernel(%arg0: i32, %arg1: memref<1x16x16x4xf32, #tpu.memory_space<vmem>>, %arg2: memref<36x16xf32, #tpu.memory_space<vmem>>, %arg3: memref<1x16xf32, #tpu.memory_space<vmem>>, %arg4: memref<144x16xf32, #tpu.memory_space<vmem>>, %arg5: memref<1x16xf32, #tpu.memory_space<vmem>>, %arg6: memref<16x2xf32, #tpu.memory_space<vmem>>, %arg7: memref<1x2xf32, #tpu.memory_space<vmem>>, %arg8: memref<2x16xf32, #tpu.memory_space<vmem>>, %arg9: memref<1x16xf32, #tpu.memory_space<vmem>>, %arg10: memref<1x144x16xf32, #tpu.memory_space<vmem>>) attributes {dimension_semantics = [#tpu.dimension_semantics<parallel>], iteration_bounds = array<i64: 2>, scalar_prefetch = 0 : i64, scratch_operands = 0 : i64, tpu.core_type = #tpu.core_type<tc>, window_params = [{transform_indices = @transform_0, window_bounds = array<i64: 1, 16, 16, 4>}, {pipeline_mode = #tpu.pipeline_mode<synchronous>, transform_indices = @transform_1, window_bounds = array<i64: 36, 16>}, {pipeline_mode = #tpu.pipeline_mode<synchronous>, transform_indices = @transform_2, window_bounds = array<i64: 1, 16>}, {pipeline_mode = #tpu.pipeline_mode<synchronous>, transform_indices = @transform_3, window_bounds = array<i64: 144, 16>}, {pipeline_mode = #tpu.pipeline_mode<synchronous>, transform_indices = @transform_4, window_bounds = array<i64: 1, 16>}, {pipeline_mode = #tpu.pipeline_mode<synchronous>, transform_indices = @transform_5, window_bounds = array<i64: 16, 2>}, {pipeline_mode = #tpu.pipeline_mode<synchronous>, transform_indices = @transform_6, window_bounds = array<i64: 1, 2>}, {pipeline_mode = #tpu.pipeline_mode<synchronous>, transform_indices = @transform_7, window_bounds = array<i64: 2, 16>}, {pipeline_mode = #tpu.pipeline_mode<synchronous>, transform_indices = @transform_8, window_bounds = array<i64: 1, 16>}, {transform_indices = @transform_9, window_bounds = array<i64: 1, 144, 16>}]} {
    %c0 = arith.constant 0 : index
    %c0_0 = arith.constant 0 : index
    %c0_1 = arith.constant 0 : index
    %c0_2 = arith.constant 0 : index
    %0 = vector.load %arg1[%c0, %c0_0, %c0_1, %c0_2] : memref<1x16x16x4xf32, #tpu.memory_space<vmem>>, vector<1x16x16x4xf32>
    %1 = vector.extract_strided_slice %0 {offsets = [0, 0, 0, 0], sizes = [1, 14, 14, 4], strides = [1, 1, 1, 1]} : vector<1x16x16x4xf32> to vector<1x14x14x4xf32>
    %2 = vector.shape_cast %1 : vector<1x14x14x4xf32> to vector<196x4xf32>
    %3 = vector.extract_strided_slice %0 {offsets = [0, 0, 1, 0], sizes = [1, 14, 14, 4], strides = [1, 1, 1, 1]} : vector<1x16x16x4xf32> to vector<1x14x14x4xf32>
    %4 = vector.shape_cast %3 : vector<1x14x14x4xf32> to vector<196x4xf32>
    %5 = vector.extract_strided_slice %0 {offsets = [0, 0, 2, 0], sizes = [1, 14, 14, 4], strides = [1, 1, 1, 1]} : vector<1x16x16x4xf32> to vector<1x14x14x4xf32>
    %6 = vector.shape_cast %5 : vector<1x14x14x4xf32> to vector<196x4xf32>
    %7 = vector.extract_strided_slice %0 {offsets = [0, 1, 0, 0], sizes = [1, 14, 14, 4], strides = [1, 1, 1, 1]} : vector<1x16x16x4xf32> to vector<1x14x14x4xf32>
    %8 = vector.shape_cast %7 : vector<1x14x14x4xf32> to vector<196x4xf32>
    %9 = vector.extract_strided_slice %0 {offsets = [0, 1, 1, 0], sizes = [1, 14, 14, 4], strides = [1, 1, 1, 1]} : vector<1x16x16x4xf32> to vector<1x14x14x4xf32>
    %10 = vector.shape_cast %9 : vector<1x14x14x4xf32> to vector<196x4xf32>
    %11 = vector.extract_strided_slice %0 {offsets = [0, 1, 2, 0], sizes = [1, 14, 14, 4], strides = [1, 1, 1, 1]} : vector<1x16x16x4xf32> to vector<1x14x14x4xf32>
    %12 = vector.shape_cast %11 : vector<1x14x14x4xf32> to vector<196x4xf32>
    %13 = vector.extract_strided_slice %0 {offsets = [0, 2, 0, 0], sizes = [1, 14, 14, 4], strides = [1, 1, 1, 1]} : vector<1x16x16x4xf32> to vector<1x14x14x4xf32>
    %14 = vector.shape_cast %13 : vector<1x14x14x4xf32> to vector<196x4xf32>
    %15 = vector.extract_strided_slice %0 {offsets = [0, 2, 1, 0], sizes = [1, 14, 14, 4], strides = [1, 1, 1, 1]} : vector<1x16x16x4xf32> to vector<1x14x14x4xf32>
    %16 = vector.shape_cast %15 : vector<1x14x14x4xf32> to vector<196x4xf32>
    %17 = vector.extract_strided_slice %0 {offsets = [0, 2, 2, 0], sizes = [1, 14, 14, 4], strides = [1, 1, 1, 1]} : vector<1x16x16x4xf32> to vector<1x14x14x4xf32>
    %18 = vector.shape_cast %17 : vector<1x14x14x4xf32> to vector<196x4xf32>
    %19 = tpu.concatenate %2, %4, %6, %8, %10, %12, %14, %16, %18 in 1 : vector<196x4xf32>, vector<196x4xf32>, vector<196x4xf32>, vector<196x4xf32>, vector<196x4xf32>, vector<196x4xf32>, vector<196x4xf32>, vector<196x4xf32>, vector<196x4xf32> -> vector<196x36xf32>
    %c0_3 = arith.constant 0 : index
    %c0_4 = arith.constant 0 : index
    %20 = vector.load %arg2[%c0_3, %c0_4] : memref<36x16xf32, #tpu.memory_space<vmem>>, vector<36x16xf32>
    %cst = arith.constant dense<0.000000e+00> : vector<196x16xf32>
    %21 = tpu.matmul %19, %20, %cst {dimension_numbers = #tpu.dot_dimension_numbers<[1], [0], [0], [1], [0, 0, 1, 1], [], []>} : vector<196x36xf32>, vector<36x16xf32>, vector<196x16xf32> -> vector<196x16xf32>
    %c0_5 = arith.constant 0 : index
    %c0_6 = arith.constant 0 : index
    %22 = vector.load %arg3[%c0_5, %c0_6] : memref<1x16xf32, #tpu.memory_space<vmem>>, vector<1x16xf32>
    %23 = vector.broadcast %22 : vector<1x16xf32> to vector<196x16xf32>
    %24 = arith.addf %21, %23 : vector<196x16xf32>
    %cst_7 = arith.constant 0.000000e+00 : f32
    %25 = vector.broadcast %cst_7 : f32 to vector<196x16xf32>
    %26 = arith.cmpf oge, %24, %25 : vector<196x16xf32>
    %cst_8 = arith.constant 1.000000e-01 : f32
    %27 = vector.broadcast %cst_8 : f32 to vector<196x16xf32>
    %28 = arith.mulf %27, %24 : vector<196x16xf32>
    %29 = arith.select %26, %24, %28 : vector<196x16xi1>, vector<196x16xf32>
    %30 = vector.shape_cast %29 : vector<196x16xf32> to vector<1x14x14x16xf32>
    %31 = vector.extract_strided_slice %30 {offsets = [0, 0, 0, 0], sizes = [1, 12, 12, 16], strides = [1, 1, 1, 1]} : vector<1x14x14x16xf32> to vector<1x12x12x16xf32>
    %32 = vector.shape_cast %31 : vector<1x12x12x16xf32> to vector<144x16xf32>
    %33 = vector.extract_strided_slice %30 {offsets = [0, 0, 1, 0], sizes = [1, 12, 12, 16], strides = [1, 1, 1, 1]} : vector<1x14x14x16xf32> to vector<1x12x12x16xf32>
    %34 = vector.shape_cast %33 : vector<1x12x12x16xf32> to vector<144x16xf32>
    %35 = vector.extract_strided_slice %30 {offsets = [0, 0, 2, 0], sizes = [1, 12, 12, 16], strides = [1, 1, 1, 1]} : vector<1x14x14x16xf32> to vector<1x12x12x16xf32>
    %36 = vector.shape_cast %35 : vector<1x12x12x16xf32> to vector<144x16xf32>
    %37 = vector.extract_strided_slice %30 {offsets = [0, 1, 0, 0], sizes = [1, 12, 12, 16], strides = [1, 1, 1, 1]} : vector<1x14x14x16xf32> to vector<1x12x12x16xf32>
    %38 = vector.shape_cast %37 : vector<1x12x12x16xf32> to vector<144x16xf32>
    %39 = vector.extract_strided_slice %30 {offsets = [0, 1, 1, 0], sizes = [1, 12, 12, 16], strides = [1, 1, 1, 1]} : vector<1x14x14x16xf32> to vector<1x12x12x16xf32>
    %40 = vector.shape_cast %39 : vector<1x12x12x16xf32> to vector<144x16xf32>
    %41 = vector.extract_strided_slice %30 {offsets = [0, 1, 2, 0], sizes = [1, 12, 12, 16], strides = [1, 1, 1, 1]} : vector<1x14x14x16xf32> to vector<1x12x12x16xf32>
    %42 = vector.shape_cast %41 : vector<1x12x12x16xf32> to vector<144x16xf32>
    %43 = vector.extract_strided_slice %30 {offsets = [0, 2, 0, 0], sizes = [1, 12, 12, 16], strides = [1, 1, 1, 1]} : vector<1x14x14x16xf32> to vector<1x12x12x16xf32>
    %44 = vector.shape_cast %43 : vector<1x12x12x16xf32> to vector<144x16xf32>
    %45 = vector.extract_strided_slice %30 {offsets = [0, 2, 1, 0], sizes = [1, 12, 12, 16], strides = [1, 1, 1, 1]} : vector<1x14x14x16xf32> to vector<1x12x12x16xf32>
    %46 = vector.shape_cast %45 : vector<1x12x12x16xf32> to vector<144x16xf32>
    %47 = vector.extract_strided_slice %30 {offsets = [0, 2, 2, 0], sizes = [1, 12, 12, 16], strides = [1, 1, 1, 1]} : vector<1x14x14x16xf32> to vector<1x12x12x16xf32>
    %48 = vector.shape_cast %47 : vector<1x12x12x16xf32> to vector<144x16xf32>
    %49 = tpu.concatenate %32, %34, %36, %38, %40, %42, %44, %46, %48 in 1 : vector<144x16xf32>, vector<144x16xf32>, vector<144x16xf32>, vector<144x16xf32>, vector<144x16xf32>, vector<144x16xf32>, vector<144x16xf32>, vector<144x16xf32>, vector<144x16xf32> -> vector<144x144xf32>
    %c0_9 = arith.constant 0 : index
    %c0_10 = arith.constant 0 : index
    %50 = vector.load %arg4[%c0_9, %c0_10] : memref<144x16xf32, #tpu.memory_space<vmem>>, vector<144x16xf32>
    %cst_11 = arith.constant dense<0.000000e+00> : vector<144x16xf32>
    %51 = tpu.matmul %49, %50, %cst_11 {dimension_numbers = #tpu.dot_dimension_numbers<[1], [0], [0], [1], [0, 0, 1, 1], [], []>} : vector<144x144xf32>, vector<144x16xf32>, vector<144x16xf32> -> vector<144x16xf32>
    %c0_12 = arith.constant 0 : index
    %c0_13 = arith.constant 0 : index
    %52 = vector.load %arg5[%c0_12, %c0_13] : memref<1x16xf32, #tpu.memory_space<vmem>>, vector<1x16xf32>
    %53 = vector.broadcast %52 : vector<1x16xf32> to vector<144x16xf32>
    %54 = arith.addf %51, %53 : vector<144x16xf32>
    %cst_14 = arith.constant 0.000000e+00 : f32
    %55 = vector.broadcast %cst_14 : f32 to vector<144x16xf32>
    %56 = arith.cmpf oge, %54, %55 : vector<144x16xf32>
    %cst_15 = arith.constant 1.000000e-01 : f32
    %57 = vector.broadcast %cst_15 : f32 to vector<144x16xf32>
    %58 = arith.mulf %57, %54 : vector<144x16xf32>
    %59 = arith.select %56, %54, %58 : vector<144x16xi1>, vector<144x16xf32>
    %60 = vector.shape_cast %59 : vector<144x16xf32> to vector<1x144x16xf32>
    %cst_16 = arith.constant dense<0.000000e+00> : vector<1x16xf32>
    %61 = vector.multi_reduction <add>, %60, %cst_16 [1] : vector<1x144x16xf32> to vector<1x16xf32>
    %cst_17 = arith.constant 1.440000e+02 : f32
    %62 = vector.broadcast %cst_17 : f32 to vector<1x16xf32>
    %63 = arith.divf %61, %62 : vector<1x16xf32>
    %c0_18 = arith.constant 0 : index
    %c0_19 = arith.constant 0 : index
    %64 = vector.load %arg6[%c0_18, %c0_19] : memref<16x2xf32, #tpu.memory_space<vmem>>, vector<16x2xf32>
    %cst_20 = arith.constant dense<0.000000e+00> : vector<1x2xf32>
    %65 = tpu.matmul %63, %64, %cst_20 {dimension_numbers = #tpu.dot_dimension_numbers<[1], [0], [0], [1], [0, 0, 1, 1], [], []>} : vector<1x16xf32>, vector<16x2xf32>, vector<1x2xf32> -> vector<1x2xf32>
    %c0_21 = arith.constant 0 : index
    %c0_22 = arith.constant 0 : index
    %66 = vector.load %arg7[%c0_21, %c0_22] : memref<1x2xf32, #tpu.memory_space<vmem>>, vector<1x2xf32>
    %67 = arith.addf %65, %66 : vector<1x2xf32>
    %cst_23 = arith.constant 0.000000e+00 : f32
    %68 = vector.broadcast %cst_23 : f32 to vector<1x2xf32>
    %69 = arith.maximumf %67, %68 : vector<1x2xf32>
    %c0_24 = arith.constant 0 : index
    %c0_25 = arith.constant 0 : index
    %70 = vector.load %arg8[%c0_24, %c0_25] : memref<2x16xf32, #tpu.memory_space<vmem>>, vector<2x16xf32>
    %cst_26 = arith.constant dense<0.000000e+00> : vector<1x16xf32>
    %71 = tpu.matmul %69, %70, %cst_26 {dimension_numbers = #tpu.dot_dimension_numbers<[1], [0], [0], [1], [0, 0, 1, 1], [], []>} : vector<1x2xf32>, vector<2x16xf32>, vector<1x16xf32> -> vector<1x16xf32>
    %c0_27 = arith.constant 0 : index
    %c0_28 = arith.constant 0 : index
    %72 = vector.load %arg9[%c0_27, %c0_28] : memref<1x16xf32, #tpu.memory_space<vmem>>, vector<1x16xf32>
    %73 = arith.addf %71, %72 : vector<1x16xf32>
    %cst_29 = arith.constant 0.000000e+00 : f32
    %74 = vector.broadcast %cst_29 : f32 to vector<1x16xf32>
    %75 = arith.subf %74, %73 : vector<1x16xf32>
    %76 = math.exp %75 : vector<1x16xf32>
    %cst_30 = arith.constant 1.000000e+00 : f32
    %77 = vector.broadcast %cst_30 : f32 to vector<1x16xf32>
    %78 = arith.addf %77, %76 : vector<1x16xf32>
    %cst_31 = arith.constant 1.000000e+00 : f32
    %79 = vector.broadcast %cst_31 : f32 to vector<1x16xf32>
    %80 = arith.divf %79, %78 : vector<1x16xf32>
    %81 = vector.shape_cast %80 : vector<1x16xf32> to vector<1x1x16xf32>
    %82 = vector.broadcast %81 : vector<1x1x16xf32> to vector<1x144x16xf32>
    %83 = arith.mulf %60, %82 : vector<1x144x16xf32>
    %c0_32 = arith.constant 0 : index
    %c0_33 = arith.constant 0 : index
    %c0_34 = arith.constant 0 : index
    %84 = vector.load %arg10[%c0_32, %c0_33, %c0_34] : memref<1x144x16xf32, #tpu.memory_space<vmem>>, vector<1x144x16xf32>
    tpu.vector_store %arg10[%c0_32, %c0_33, %c0_34], %83 {strides = array<i32>} : memref<1x144x16xf32, #tpu.memory_space<vmem>>, vector<1x144x16xf32>,
    return
  }
  func.func @transform_0(%arg0: i32) -> (i32, i32, i32, i32) {
    %c0_i32 = arith.constant 0 : i32
    %c0_i32_0 = arith.constant 0 : i32
    %c0_i32_1 = arith.constant 0 : i32
    %c0_i32_2 = arith.constant 0 : i32
    return %arg0, %c0_i32, %c0_i32_0, %c0_i32_1 : i32, i32, i32, i32
  }
  func.func @transform_1(%arg0: i32) -> (i32, i32) {
    %c0_i32 = arith.constant 0 : i32
    %c0_i32_0 = arith.constant 0 : i32
    %c0_i32_1 = arith.constant 0 : i32
    return %c0_i32, %c0_i32_0 : i32, i32
  }
  func.func @transform_2(%arg0: i32) -> (i32, i32) {
    %c0_i32 = arith.constant 0 : i32
    %c0_i32_0 = arith.constant 0 : i32
    %c0_i32_1 = arith.constant 0 : i32
    return %c0_i32, %c0_i32_0 : i32, i32
  }
  func.func @transform_3(%arg0: i32) -> (i32, i32) {
    %c0_i32 = arith.constant 0 : i32
    %c0_i32_0 = arith.constant 0 : i32
    %c0_i32_1 = arith.constant 0 : i32
    return %c0_i32, %c0_i32_0 : i32, i32
  }
  func.func @transform_4(%arg0: i32) -> (i32, i32) {
    %c0_i32 = arith.constant 0 : i32
    %c0_i32_0 = arith.constant 0 : i32
    %c0_i32_1 = arith.constant 0 : i32
    return %c0_i32, %c0_i32_0 : i32, i32
  }
  func.func @transform_5(%arg0: i32) -> (i32, i32) {
    %c0_i32 = arith.constant 0 : i32
    %c0_i32_0 = arith.constant 0 : i32
    %c0_i32_1 = arith.constant 0 : i32
    return %c0_i32, %c0_i32_0 : i32, i32
  }
  func.func @transform_6(%arg0: i32) -> (i32, i32) {
    %c0_i32 = arith.constant 0 : i32
    %c0_i32_0 = arith.constant 0 : i32
    %c0_i32_1 = arith.constant 0 : i32
    return %c0_i32, %c0_i32_0 : i32, i32
  }
  func.func @transform_7(%arg0: i32) -> (i32, i32) {
    %c0_i32 = arith.constant 0 : i32
    %c0_i32_0 = arith.constant 0 : i32
    %c0_i32_1 = arith.constant 0 : i32
    return %c0_i32, %c0_i32_0 : i32, i32
  }
  func.func @transform_8(%arg0: i32) -> (i32, i32) {
    %c0_i32 = arith.constant 0 : i32
    %c0_i32_0 = arith.constant 0 : i32
    %c0_i32_1 = arith.constant 0 : i32
    return %c0_i32, %c0_i32_0 : i32, i32
  }
  func.func @transform_9(%arg0: i32) -> (i32, i32, i32) {
    %c0_i32 = arith.constant 0 : i32
    %c0_i32_0 = arith.constant 0 : i32
    %c0_i32_1 = arith.constant 0 : i32
    return %arg0, %c0_i32, %c0_i32_0 : i32, i32, i32
  }
}

</mosaic_0001>

<bundles_post_ra>
// kernel: tpu_custom_call.1
= control target key start
LH: loop header
LB: loop body
LE: loop exit
PB: predicated region body
PF: predicated region fallthrough
CT: control target
= control target key end

     0   :  { %s8288_s30 = smov 0   ;;  %s13067_s0 = inlined_call_operand.vmem [shape: f32[2,16,16,4], index: 0, kind: input, shape index: {}]   ;;  %s13068_s1 = inlined_call_operand.vmem [shape: f32[36,16], index: 1, kind: input, shape index: {}]   ;;  %s13069_s2 = inlined_call_operand.vmem [shape: f32[1,16], index: 2, kind: input, shape index: {}]   ;;  %s13070_s3 = inlined_call_operand.vmem [shape: f32[144,16], index: 3, kind: input, shape index: {}]   ;;  %s13071_s4 = inlined_call_operand.vmem [shape: f32[1,16], index: 4, kind: input, shape index: {}]   ;;  %s13072_s5 = inlined_call_operand.vmem [shape: f32[16,2], index: 5, kind: input, shape index: {}]   ;;  %s13073_s6 = inlined_call_operand.vmem [shape: f32[1,2], index: 6, kind: input, shape index: {}]   ;;  %s13074_s7 = inlined_call_operand.vmem [shape: f32[2,16], index: 7, kind: input, shape index: {}]   ;;  %s13075_s8 = inlined_call_operand.vmem [shape: f32[1,16], index: 8, kind: input, shape index: {}]   ;;  %s13076_s9 = inlined_call_operand.vmem [shape: f32[2,144,16], index: 9, kind: output, shape index: {}]  }
   0x1 LB: > { %s7576_s10 = sadd.s32 4294967295, %s8219_s30   ;;  %p7580_p0 = scmp.ge.s32.totalorder %s8219_s30, 1  ;;  %s8219_s30 = sphi %s8288_s30, %s19_s30  }
   0x2   : > { %p287_p1 = scmp.lt.s32.totalorder %s8219_s30, 3 }
   0x4   : > { %p288_p2 = pnand %p7580_p0, %p287_p1 }
   0x6   : > { %291 = sbr.rel (%p288_p2) target bundleno = 1604 (0x644), region = 56 }
   0xd   : > { %p323_p3 = scmp.lt.s32.totalorder %s7576_s10, 1  ;;  %v397_v0 = vlaneseq  ;;  %v8221_v1 = vmov 1983009808   ;;  %vm869_vm0 = vcmask 1040384   ;;  %vm870_vm1 = vcmask 1042434   ;;  %s8222_s15 = smov 20  }
   0xe   : > { %v395_v2 = vunpack.c.l.s4 %v8221_v1  ;;  %vm872_vm2 = vcmask 1044484   ;;  %vm874_vm3 = vcmask 1046534   ;;  %vm8392_vm4 = vmor %vm869_vm0, %vm870_vm1  ;;  %s8223_s16 = smov 8   ;;  %s8224_s17 = smov 12   ;;  %vm4377_vm7 = vcmask 1043456  }
   0xf   : > { %s13144_s10 = smov (!%p323_p3, %s7576_s10), 1  ;;  %v8298_v3 = vshrl.u32 %v397_v0, 7  ;;  %vm873_vm5 = vmor %vm8392_vm4, %vm872_vm2  ;;  %s8225_s18 = smov 24   ;;  %vm8232_vm8 = vmmov 0   ;;  %vm4081_vm9 = vcmask 31744   ;;  %vm4107_vm10 = vcmask 64512  }
  0x10   : > { %v396_v4 = vunpack.c.0.s8 %v395_v2  ;;  %s7680_s11 = sshll.u32 %s13144_s10, 8  ;;  %vm8444_vm6 = vmor %vm873_vm5, %vm874_vm3  ;;  %s8226_s19 = smov 4   ;;  %vm4133_vm11 = vcmask 97280   ;;  %vm4159_vm12 = vcmask 130048   ;;  %vm4185_vm13 = vcmask 162816  }
  0x11   : > { %13097 = vst [vmem:[#allocation2_spill] sm:$0xff] %v8298_v3  ;;  %s8304_s14 = scalar_lea.vmem %s13067_s0, %s7680_s11  ;;  %s8227_s20 = smov 32   ;;  %vm4211_vm14 = vcmask 195584   ;;  %vm4237_vm15 = vcmask 228352   ;;  %vm4263_vm0 = vcmask 261120   ;;  %vm4301_vm1 = vcmask 293888  }
  0x12   : > { %v8307_v5 = vsub.s32 %v396_v4, %v8298_v3  ;;  %v336_v6 = vld [vmem:[%s8304_s14 + $0x18] sm:$0xff]  ;;  %v8311_v7 = vld [vmem:[%s8304_s14 + $0x20] sm:$0xff]  ;;  %v334_v8 = vld [vmem:[%s8304_s14 + $0x8] sm:$0xff]  ;;  %s8228_s21 = smov 16   ;;  %s8229_s22 = smov 28  }
  0x13   : > { %v443_v9 = vcombine.high %v336_v6, %v336_v6  ;;  %v335_v12 = vld [vmem:[%s8304_s14 + $0x10] sm:$0xff]  ;;  %v410_v13 = vcombine.high %v334_v8, %v334_v8  ;;  %v333_v14 = vld [vmem:[%s8304_s14] sm:$0xff]  ;;  %v459_v55 = vcombine.high %v8311_v7, %v8311_v7  ;;  %s8233_s26 = smov 48   ;;  %s8234_s12 = smov 80  }
  0x14   : > { %v8315_v10 = vrot.slane %v336_v6, %v8307_v5  ;;  %v8319_v11 = vrot.slane %v8311_v7, %v8307_v5  ;;  %v8324_v15 = vrot.slane %v334_v8, %v8307_v5  ;;  %v8327_v16 = vrot.slane %v335_v12, %v8307_v5  ;;  %s8237_s28 = smov 112   ;;  %s7849_s25 = smul.u32 144, %s13144_s10 }
  0x15   : > { %v426_v17 = vcombine.high %v335_v12, %v335_v12  ;;  %v393_v18 = vcombine.high %v333_v14, %v333_v14  ;;  %v8330_v19 = vrot.slane %v443_v9, %v8307_v5  ;;  %v8341_v22 = vrot.slane %v410_v13, %v8307_v5  ;;  %v338_v13 = vld [vmem:[%s8304_s14 + $0x28] sm:$0xff] }
  0x16   : > { %v8334_v20 = vcombine.high %v8315_v10, %v8315_v10  ;;  %v8338_v21 = vcombine.high %v8319_v11, %v8319_v11  ;;  %v8345_v23 = vcombine.high %v8324_v15, %v8324_v15  ;;  %v8352_v25 = vcombine.high %v8327_v16, %v8327_v16  ;;  %s13009_s29 = scalar_lea.vmem %s13076_s9, %s7849_s25 }
  0x17   : > { %v8348_v24 = vrot.slane %v426_v17, %v8307_v5  ;;  %v8355_v26 = vrot.slane %v333_v14, %v8307_v5  ;;  %v7607_v29 = vcombine.high %v8330_v19, %v8319_v11  ;;  %v7600_v30 = vcombine.high %v8341_v22, %v8327_v16 }
  0x18   : > { %v1351_v27 = vcombine.low %v8334_v20, %v8330_v19  ;;  %v1352_v28 = vcombine.low %v8319_v11, %v8338_v21  ;;  %v2249_v31 = vcombine.low %v8345_v23, %v8341_v22  ;;  %v2723_v33 = vcombine.low %v8327_v16, %v8352_v25 }
  0x19   : > { %v8369_v32 = vcombine.high %v8348_v24, %v8348_v24  ;;  %v2267_v34 = vcombine.low %v8315_v10, %v8334_v20  ;;  %v3456_v37 = vrot.slane %v7607_v29, %v8307_v5  ;;  %v2264_v38 = vrot.slane %v7600_v30, %v8307_v5 }
  0x1a   : > { %v8376_v35 = vrot.slane %v1351_v27, %v8307_v5  ;;  %v8379_v36 = vrot.slane %v1352_v28, %v8307_v5  ;;  %v2257_v39 = vrot.slane %v2249_v31, %v8307_v5  ;;  %v2730_v41 = vrot.slane %v2723_v33, %v8307_v5 }
  0x1b   : > { %v2266_v40 = vcombine.low %v8348_v24, %v8369_v32  ;;  %v8388_v42 = vrot.slane %v2267_v34, %v8307_v5  ;;  %v2732_v46 = vcombine.low %v8330_v19, %v8319_v11  ;;  %v1334_v47 = vcombine.low %v8352_v25, %v8348_v24 }
  0x1c   : > { %v3457_v44 = vcombine.low %v8376_v35, %v3456_v37  ;;  %v2265_v48 = vcombine.low %v2257_v39, %v2264_v38  ;;  %v1335_v50 = vcombine.low %v8369_v32, %v8315_v10  ;;  %v8409_v51 = vrot.slane %v393_v18, %v8307_v5 }
  0x1d   : > { %v8404_v49 = vrot.slane %v2266_v40, %v8307_v5  ;;  %v2739_v52 = vrot.slane %v2732_v46, %v8307_v5  ;;  %v1342_v53 = vrot.slane %v1334_v47, %v8307_v5  ;;  %v8416_v54 = vcombine.high %v8355_v26, %v8355_v26 }
  0x1e   : > { %3593 = vrot.lane.b32.xlu1 %v3457_v44, %s8222_s15  ;;  %2650 = vrot.lane.b32.xlu0 %v2265_v48, %s8223_s16  ;;  %v1349_v57 = vrot.slane %v1335_v50, %v8307_v5  ;;  %v8428_v58 = vcombine.high %v8409_v51, %v8409_v51  ;;  %v855_v59 = vcombine.high %v8341_v22, %v8341_v22  ;;  %v887_v63 = vrot.slane %v8324_v15, 7 }
  0x1f   : > { %v2731_v56 = vcombine.low %v2730_v41, %v8404_v49  ;;  %v2740_v60 = vcombine.low %v8388_v42, %v2739_v52  ;;  %v2232_v61 = vcombine.low %v8416_v54, %v8409_v51  ;;  %v8436_v62 = vrot.slane %v459_v55, %v8307_v5 }
  0x20   : > { %v8439_v0 = vcombine.low %v1342_v53, %v1349_v57  ;;  %v2233_v1 = vcombine.low %v8428_v58, %v8324_v15  ;;  %v890_v4 = vrot.slane %v8345_v23, 7  ;;  %v893_v6 = vrot.slane %v8341_v22, 7 }
  0x21   : > { %v2240_v7 = vrot.slane %v2232_v61, %v8307_v5  ;;  %v8454_v8 = vcombine.high %v8436_v62, %v8436_v62  ;;  %v889_v9 = vrot.slane %v887_v63, 2  ;;  %v896_v12 = vrot.slane %v855_v59, 7 }
  0x22   : > { %2883 = vrot.lane.b32.xlu1 %v2731_v56, %s8224_s17  ;;  %2885 = vrot.lane.b32.xlu0 %v2740_v60, %s8224_s17  ;;  %v2247_v14 = vrot.slane %v2233_v1, %v8307_v5  ;;  %v892_v17 = vrot.slane %v890_v4, 2  ;;  %v895_v18 = vrot.slane %v893_v6, 2  ;;  %v7585_v27 = vrot.slane %v8327_v16, 9 }
  0x23   : > { %v1368_v28 = vcombine.low %v8436_v62, %v8454_v8  ;;  %v891_v29 = vsel %vm8444_vm6, %v889_v9, %v890_v4  ;;  %v900_v30 = vrot.slane %v8352_v25, 7  ;;  %v476_v31 = vcombine.high %v338_v13, %v338_v13 }
  0x24   : > { %v2248_v33 = vcombine.low %v2240_v7, %v2247_v14  ;;  %v894_v34 = vsel %vm8444_vm6, %v892_v17, %v893_v6  ;;  %v897_v37 = vsel %vm8444_vm6, %v895_v18, %v896_v12  ;;  %v8472_v38 = vrot.slane %v338_v13, %v8307_v5 }
  0x25   : > { %v8477_v39 = vrot.slane %v1368_v28, %v8307_v5  ;;  %v901_v25 = vsel %vm8444_vm6, %v7585_v27, %v900_v30  ;;  %v1758_v40 = vcombine.low %v891_v29, %v894_v34  ;;  %v8482_v41 = vrot.slane %v476_v31, %v8307_v5 }
  0x26   : > { %3591 = vrot.lane.b32.xlu1 %v8439_v0, %s8222_s15  ;;  %2648 = vrot.lane.b32.xlu0 %v2248_v33, %s8223_s16  ;;  %v1759_v43 = vcombine.low %v897_v37, %v901_v25  ;;  %v2284_v44 = vcombine.low %v8338_v21, %v8436_v62  ;;  %v2300_v46 = vcombine.low %v8454_v8, %v8472_v38  ;;  %v909_v52 = vrot.slane %v8315_v10, 7 }
  0x27   : > { %v8491_v47 = vcombine.high %v8330_v19, %v8330_v19  ;;  %v3666_v48 = vcombine.low %v8379_v36, %v8477_v39  ;;  %v1766_v50 = vrot.slane %v1758_v40, %v8307_v5  ;;  %v912_v53 = vrot.slane %v8334_v20, 7 }
  0x28   : > { %v1773_v55 = vrot.slane %v1759_v43, %v8307_v5  ;;  %v8500_v56 = vrot.slane %v2284_v44, %v8307_v5  ;;  %v8503_v57 = vrot.slane %v2300_v46, %v8307_v5  ;;  %v915_v59 = vrot.slane %v8330_v19, 7 }
  0x29   : > { %v911_v60 = vrot.slane %v909_v52, 2  ;;  %v914_v61 = vrot.slane %v912_v53, 2  ;;  %v918_v1 = vrot.slane %v8491_v47, 7  ;;  %v7586_v10 = vrot.slane %v8319_v11, 9 }
  0x2a   : > { %3730 = vrot.lane.b32.xlu1 %v3666_v48, %s8225_s18  ;;  %v1774_v20 = vcombine.low %v1766_v50, %v1773_v55  ;;  %v8511_v4 = vcombine.low %v8500_v56, %v8503_v57  ;;  %v917_v6 = vrot.slane %v915_v59, 2  ;;  %v922_v7 = vrot.slane %v8338_v21, 7 }
  0x2b   : > { %v8516_v9 = vsel %vm8444_vm6, %v911_v60, %v912_v53  ;;  %v8520_v12 = vsel %vm8444_vm6, %v914_v61, %v915_v59  ;;  %v902_v13 = vrot.slane %v900_v30, 2  ;;  %v903_v14 = vrot.slane %v8348_v24, 7 }
  0x2c   : > { %2159 = vrot.lane.b32.xlu0 %v1774_v20, %s8226_s19  ;;  %v8526_v11 = vsel %vm8444_vm6, %v917_v6, %v918_v1  ;;  %v923_v21 = vsel %vm8444_vm6, %v7586_v10, %v922_v7  ;;  %v2975_v17 = vcombine.low %v8516_v9, %v8520_v12  ;;  %v906_v18 = vrot.slane %v8369_v32, 7 }
  0x2d   : > { %v2976_v24 = vcombine.low %v8526_v11, %v923_v21  ;;  %v904_v27 = vsel %vm8444_vm6, %v902_v13, %v903_v14  ;;  %v905_v28 = vrot.slane %v903_v14, 2  ;;  %v7584_v29 = vrot.slane %v8355_v26, 9 }
  0x2e   : > { %4006 = vrot.lane.b32.xlu1 %v8511_v4, %s8227_s20  ;;  %v2983_v30 = vrot.slane %v2975_v17, %v8307_v5  ;;  %v908_v31 = vrot.slane %v906_v18, 2  ;;  %v2958_v33 = vcombine.low %v901_v25, %v904_v27  ;;  %v878_v34 = vrot.slane %v8416_v54, 7  ;;  %v8566_v17 = vld [vmem:[%s8304_s14 + $0x30] sm:$0xff] }
  0x2f   : > { %v2990_v32 = vrot.slane %v2976_v24, %v8307_v5  ;;  %v907_v37 = vsel %vm8444_vm6, %v905_v28, %v906_v18  ;;  %v881_v40 = vrot.slane %v8409_v51, 7  ;;  %v884_v43 = vrot.slane %v8428_v58, 7 }
  0x30   : > { %v910_v44 = vsel %vm8444_vm6, %v908_v31, %v909_v52  ;;  %v2966_v46 = vrot.slane %v2958_v33, %v8307_v5  ;;  %v879_v48 = vsel %vm8444_vm6, %v7584_v29, %v878_v34  ;;  %v880_v25 = vrot.slane %v878_v34, 2 }
  0x31   : > { %v2991_v50 = vcombine.low %v2983_v30, %v2990_v32  ;;  %v2959_v53 = vcombine.low %v907_v37, %v910_v44  ;;  %v883_v55 = vrot.slane %v881_v40, 2  ;;  %v886_v59 = vrot.slane %v884_v43, 2 }
  0x32   : > { %v882_v60 = vsel %vm8444_vm6, %v880_v25, %v881_v40  ;;  %v924_v61 = vrot.slane %v922_v7, 2  ;;  %v925_v1 = vrot.slane %v8436_v62, 7  ;;  %v928_v10 = vrot.slane %v8454_v8, 7 }
  0x33   : > { %3376 = vrot.lane.b32.xlu0 %v2991_v50, %s8228_s21  ;;  %v2973_v52 = vrot.slane %v2959_v53, %v8307_v5  ;;  %v885_v20 = vsel %vm8444_vm6, %v883_v55, %v884_v43  ;;  %v888_v6 = vsel %vm8444_vm6, %v886_v59, %v887_v63  ;;  %v1741_v13 = vcombine.low %v879_v48, %v882_v60 }
  0x34   : > { %v1742_v14 = vcombine.low %v885_v20, %v888_v6  ;;  %v926_v62 = vsel %vm8444_vm6, %v924_v61, %v925_v1  ;;  %v927_v7 = vrot.slane %v925_v1, 2  ;;  %v930_v8 = vrot.slane %v928_v10, 2 }
  0x35   : > { %v2974_v18 = vcombine.low %v2966_v46, %v2973_v52  ;;  %v1749_v24 = vrot.slane %v1741_v13, %v8307_v5  ;;  %v931_v28 = vrot.slane %v8472_v38, 7  ;;  %v1793_v29 = vcombine.low %v923_v21, %v926_v62 }
  0x36   : > { %v1756_v30 = vrot.slane %v1742_v14, %v8307_v5  ;;  %v929_v63 = vsel %vm8444_vm6, %v927_v7, %v928_v10  ;;  %v1775_v31 = vcombine.low %v904_v27, %v907_v37  ;;  %v1776_v33 = vcombine.low %v910_v44, %v8516_v9 }
  0x37   : > { %3374 = vrot.lane.b32.xlu1 %v2974_v18, %s8228_s21  ;;  %v932_v34 = vsel %vm8444_vm6, %v930_v8, %v931_v28  ;;  %v8578_v32 = vrot.slane %v1793_v29, %v8307_v5  ;;  %v491_v40 = vcombine.high %v8472_v38, %v8472_v38  ;;  %v8584_v21 = vrot.slane %v8566_v17, %v8307_v5 }
  0x38   : > { %v1757_v43 = vcombine.low %v1749_v24, %v1756_v30  ;;  %v1809_v46 = vcombine.low %v929_v63, %v932_v34  ;;  %v1783_v27 = vrot.slane %v1775_v31, %v8307_v5  ;;  %v1790_v9 = vrot.slane %v1776_v33, %v8307_v5 }
  0x39   : > { %v1369_v37 = vcombine.low %v8472_v38, %v491_v40  ;;  %v1385_v44 = vcombine.low %v8482_v41, %v8584_v21  ;;  %v2282_v48 = vcombine.low %v8404_v49, %v8388_v42  ;;  %v8595_v25 = vcombine.high %v8584_v21, %v8584_v21 }
  0x3a   : > { %2157 = vrot.lane.b32.xlu0 %v1757_v43, %s8226_s19  ;;  %v8599_v50 = vrot.slane %v1809_v46, %v8307_v5  ;;  %v1791_v53 = vcombine.low %v1783_v27, %v1790_v9  ;;  %v8603_v55 = vcombine.high %v8482_v41, %v8482_v41  ;;  %v933_v38 = vrot.slane %v931_v28, 2  ;;  %v340_v9 = vld [vmem:[%s8304_s14 + $0x38] sm:$0xff] }
  0x3b   : > { %v1383_v59 = vrot.slane %v1369_v37, %v8307_v5  ;;  %v8607_v60 = vrot.slane %v1385_v44, %v8307_v5  ;;  %v934_v42 = vrot.slane %v491_v40, 7  ;;  %v937_v49 = vrot.slane %v8482_v41, 7 }
  0x3c   : > { %v3805_v61 = vcombine.low %v8578_v32, %v8599_v50  ;;  %v940_v1 = vrot.slane %v8603_v55, 7  ;;  %v7587_v10 = vrot.slane %v8584_v21, 9  ;;  %v944_v52 = vrot.slane %v8595_v25, 7 }
  0x3d   : > { %v3667_v20 = vcombine.low %v1383_v59, %v8607_v60  ;;  %v935_v6 = vsel %vm8444_vm6, %v933_v38, %v934_v42  ;;  %v936_v13 = vrot.slane %v934_v42, 2  ;;  %v939_v14 = vrot.slane %v937_v49, 2 }
  0x3e   : > { %3885 = vrot.lane.b32.xlu1 %v3805_v61, %s8229_s22  ;;  %2161 = vrot.lane.b32.xlu0 %v1791_v53, %s8226_s19  ;;  %v8622_v7 = vsel %vm8444_vm6, %v7587_v10, %v944_v52  ;;  %v2301_v8 = vcombine.low %v491_v40, %v8482_v41  ;;  %v7601_v18 = vcombine.high %v8482_v41, %v8584_v21  ;;  %v946_v38 = vrot.slane %v944_v52, 2 }
  0x3f   : > { %v8629_v24 = vsel %vm8444_vm6, %v936_v13, %v937_v49  ;;  %v8633_v28 = vsel %vm8444_vm6, %v939_v14, %v940_v1  ;;  %v2992_v29 = vcombine.low %v926_v62, %v929_v63  ;;  %v2993_v30 = vcombine.low %v932_v34, %v935_v6 }
  0x40   : > { %v1810_v31 = vcombine.low %v935_v6, %v8629_v24  ;;  %v1826_v33 = vcombine.low %v8633_v28, %v8622_v7  ;;  %v8639_v40 = vrot.slane %v2301_v8, %v8307_v5  ;;  %v8642_v43 = vrot.slane %v7601_v18, %v8307_v5 }
  0x41   : > { %v3000_v46 = vrot.slane %v2992_v29, %v8307_v5  ;;  %v3007_v27 = vrot.slane %v2993_v30, %v8307_v5  ;;  %v1792_v34 = vcombine.low %v8520_v12, %v8526_v11  ;;  %v492_v37 = vcombine.high %v8566_v17, %v8566_v17 }
  0x42   : > { %3732 = vrot.lane.b32.xlu1 %v3667_v20, %s8225_s18  ;;  %2652 = vrot.lane.b32.xlu0 %v2282_v48, %s8223_s16  ;;  %v8650_v62 = vrot.slane %v1810_v31, %v8307_v5  ;;  %v8653_v63 = vrot.slane %v1826_v33, %v8307_v5  ;;  %v516_v53 = vrot.slane %v340_v9, %v8307_v5 }
  0x43   : > { %v3960_v48 = vcombine.low %v8639_v40, %v8642_v43  ;;  %v3008_v42 = vcombine.low %v3000_v46, %v3007_v27  ;;  %v506_v49 = vrot.slane %v492_v37, %v8307_v5  ;;  %v2283_v61 = vcombine.low %v8330_v19, %v8491_v47 }
  0x44   : > { %v3806_v44 = vcombine.low %v8650_v62, %v8653_v63  ;;  %v1800_v12 = vrot.slane %v1792_v34, %v8307_v5  ;;  %v509_v11 = vcombine.high %v340_v9, %v340_v9  ;;  %v8671_v17 = vcombine.high %v516_v53, %v516_v53 }
  0x45   : > { %v953_v1 = vrot.slane %v516_v53, 7  ;;  %v508_v10 = vcombine.high %v506_v49, %v506_v49  ;;  %v1386_v52 = vcombine.low %v8595_v25, %v506_v49  ;;  %v947_v20 = vrot.slane %v506_v49, 7 }
  0x46   : > { %3887 = vrot.lane.b32.xlu1 %v3806_v44, %s8229_s22  ;;  %2887 = vrot.lane.b32.xlu0 %v8511_v4, %s8224_s17  ;;  %v2742_v6 = vcombine.low %v8584_v21, %v8595_v25  ;;  %v956_v19 = vrot.slane %v8671_v17, 7  ;;  %v8678_v47 = vcombine.low %v8477_v39, %v1383_v59  ;;  %v2291_v14 = vrot.slane %v2283_v61, %v8307_v5 }
  0x47   : > { %v955_v13 = vrot.slane %v953_v1, 2  ;;  %v1402_v4 = vcombine.low %v508_v10, %v516_v53  ;;  %v949_v8 = vrot.slane %v947_v20, 2  ;;  %v1808_v18 = vcombine.low %v1800_v12, %v8578_v32 }
  0x48   : > { %v8685_v29 = vrot.slane %v1386_v52, %v8307_v5  ;;  %v948_v21 = vsel %vm8444_vm6, %v946_v38, %v947_v20  ;;  %v950_v25 = vrot.slane %v508_v10, 7  ;;  %v8690_v39 = vrot.slane %v509_v11, %v8307_v5  ;;  %v341_v38 = vld [vmem:[%s8304_s14 + $0x40] sm:$0xff] }
  0x49   : > { %v8693_v59 = vrot.slane %v1402_v4, %v8307_v5  ;;  %v2749_v30 = vrot.slane %v2742_v6, %v8307_v5  ;;  %v3009_v31 = vcombine.low %v8629_v24, %v8633_v28  ;;  %v8704_v46 = vsel %vm8444_vm6, %v955_v13, %v956_v19 }
  0x4a   : > { %4008 = vrot.lane.b32.xlu1 %v3960_v48, %s8227_s20  ;;  %3378 = vrot.lane.b32.xlu0 %v3008_v42, %s8228_s21  ;;  %v8700_v32 = vsel %vm8444_vm6, %v949_v8, %v950_v25  ;;  %v952_v33 = vrot.slane %v950_v25, 2  ;;  %v2318_v27 = vcombine.low %v506_v49, %v508_v10  ;;  %v2299_v9 = vcombine.low %v2291_v14, %v8500_v56 }
  0x4b   : > { %v1827_v34 = vcombine.low %v948_v21, %v8700_v32  ;;  %v2334_v37 = vcombine.low %v516_v53, %v8671_v17  ;;  %v3010_v44 = vcombine.low %v8622_v7, %v948_v21  ;;  %v3668_v24 = vcombine.low %v8685_v29, %v8693_v59 }
  0x4c   : > { %v8718_v28 = vsel %vm8444_vm6, %v952_v33, %v953_v1  ;;  %v525_v56 = vcombine.high %v341_v38, %v341_v38  ;;  %v3017_v53 = vrot.slane %v3009_v31, %v8307_v5  ;;  %v8727_v42 = vrot.slane %v2318_v27, %v8307_v5 }
  0x4d   : > { %v8721_v48 = vrot.slane %v1827_v34, %v8307_v5  ;;  %v1843_v7 = vcombine.low %v8718_v28, %v8704_v46  ;;  %v3458_v49 = vcombine.low %v8482_v41, %v8603_v55  ;;  %v8732_v61 = vrot.slane %v341_v38, %v8307_v5 }
  0x4e   : > { %3595 = vrot.lane.b32.xlu1 %v8678_v47, %s8222_s15  ;;  %2163 = vrot.lane.b32.xlu0 %v1808_v18, %s8226_s19  ;;  %v8735_v12 = vrot.slane %v525_v56, %v8307_v5  ;;  %v8741_v1 = vrot.slane %v2334_v37, %v8307_v5  ;;  %v858_v10 = vcombine.high %v8690_v39, %v8690_v39  ;;  %v959_v52 = vrot.slane %v8690_v39, 7 }
  0x4f   : > { %v8738_v11 = vrot.slane %v1843_v7, %v8307_v5  ;;  %v2750_v41 = vcombine.low %v8639_v40, %v2749_v30  ;;  %v3024_v55 = vrot.slane %v3010_v44, %v8307_v5  ;;  %v540_v20 = vcombine.high %v8732_v61, %v8732_v61 }
  0x50   : > { %v958_v6 = vrot.slane %v956_v19, 2  ;;  %v961_v4 = vrot.slane %v959_v52, 2  ;;  %v962_v14 = vrot.slane %v858_v10, 7  ;;  %v7588_v8 = vrot.slane %v8732_v61, 9 }
  0x51   : > { %v3807_v13 = vcombine.low %v8721_v48, %v8738_v11  ;;  %v966_v18 = vrot.slane %v540_v20, 7  ;;  %v969_v21 = vrot.slane %v8735_v12, 7  ;;  %v2751_v25 = vcombine.low %v8727_v42, %v8741_v1 }
  0x52   : > { %3734 = vrot.lane.b32.xlu1 %v3668_v24, %s8225_s18  ;;  %2654 = vrot.lane.b32.xlu0 %v2299_v9, %s8223_s16  ;;  %v3465_v30 = vrot.slane %v3458_v49, %v8307_v5  ;;  %v1403_v31 = vcombine.low %v8671_v17, %v8690_v39  ;;  %v1419_v19 = vcombine.low %v8732_v61, %v540_v20  ;;  %v342_v17 = vld [vmem:[%s8304_s14 + $0x48] sm:$0xff] }
  0x53   : > { %v3025_v33 = vcombine.low %v3017_v53, %v3024_v55  ;;  %v960_v27 = vsel %vm8444_vm6, %v958_v6, %v959_v52  ;;  %v8768_v9 = vsel %vm8444_vm6, %v961_v4, %v962_v14  ;;  %v968_v34 = vrot.slane %v966_v18, 2 }
  0x54   : > { %v8772_v37 = vsel %vm8444_vm6, %v7588_v8, %v966_v18  ;;  %v1825_v44 = vcombine.low %v8599_v50, %v8650_v62  ;;  %v3466_v24 = vcombine.low %v3465_v30, %v8685_v29  ;;  %v1417_v56 = vrot.slane %v1403_v31, %v8307_v5 }
  0x55   : > { %v8779_v38 = vsel %vm8444_vm6, %v968_v34, %v969_v21  ;;  %v8784_v7 = vrot.slane %v1419_v19, %v8307_v5  ;;  %v1844_v53 = vcombine.low %v960_v27, %v8768_v9  ;;  %v8793_v62 = vcombine.high %v8735_v12, %v8735_v12 }
  0x56   : > { %3889 = vrot.lane.b32.xlu1 %v3807_v13, %s8229_s22  ;;  %2889 = vrot.lane.b32.xlu0 %v2750_v41, %s8224_s17  ;;  %v1860_v50 = vcombine.low %v8772_v37, %v8779_v38  ;;  %v8796_v49 = vrot.slane %v342_v17, %v8307_v5  ;;  %v542_v52 = vcombine.high %v342_v17, %v342_v17 }
  0x57   : > { %13102 = vst [vmem:[#allocation3_spill] sm:$0xff] %v8784_v7  ;;  %v2316_v41 = vcombine.low %v8503_v57, %v8639_v40  ;;  %v2335_v6 = vcombine.low %v8690_v39, %v858_v10  ;;  %v2351_v13 = vcombine.low %v540_v20, %v8735_v12  ;;  %v3026_v4 = vcombine.low %v8700_v32, %v8718_v28 }
  0x58   : > { %v8802_v55 = vcombine.high %v8796_v49, %v8796_v49  ;;  %v3027_v14 = vcombine.low %v8704_v46, %v960_v27  ;;  %v3669_v8 = vcombine.low %v1417_v56, %v8784_v7  ;;  %v8813_v57 = vrot.slane %v1844_v53, %v8307_v5  ;;  %v4292_v7 = vld [vmem:[%s13068_s1 + $0x18] sm:$0xff] }
  0x59   : > { %v8816_v40 = vrot.slane %v1860_v50, %v8307_v5  ;;  %v972_v10 = vrot.slane %v8793_v62, 7  ;;  %v8820_v20 = vrot.slane %v542_v52, %v8307_v5  ;;  %v975_v32 = vrot.slane %v8796_v49, 7 }
  0x5a   : > { %4010 = vrot.lane.b32.xlu1 %v2751_v25, %s8227_s20  ;;  %3380 = vrot.lane.b32.xlu0 %v3025_v33, %s8228_s21  ;;  %v978_v46 = vrot.slane %v8802_v55, 7  ;;  %v8825_v28 = vrot.slane %v2335_v6, %v8307_v5  ;;  %v8828_v18 = vrot.slane %v2351_v13, %v8307_v5  ;;  %v3034_v30 = vrot.slane %v3026_v4, %v8307_v5 }
  0x5b   : > { %v3808_v31 = vcombine.low %v8813_v57, %v8816_v40  ;;  %v3041_v19 = vrot.slane %v3027_v14, %v8307_v5  ;;  %v971_v33 = vrot.slane %v969_v21, 2  ;;  %v974_v27 = vrot.slane %v972_v10, 2 }
  0x5c   : > { %v977_v34 = vrot.slane %v975_v32, 2  ;;  %v980_v17 = vrot.slane %v978_v46, 2  ;;  %v3961_v53 = vcombine.low %v8825_v28, %v8828_v18  ;;  %v1420_v50 = vcombine.low %v8735_v12, %v8793_v62 }
  0x5d   : > { %v1436_v52 = vcombine.low %v8796_v49, %v8802_v55  ;;  %v3042_v21 = vcombine.low %v3034_v30, %v3041_v19  ;;  %v8850_v6 = vsel %vm8444_vm6, %v974_v27, %v975_v32  ;;  %v2333_v19 = vcombine.low %v8642_v43, %v8727_v42 }
  0x5e   : > { %3597 = vrot.lane.b32.xlu1 %v3466_v24, %s8222_s15  ;;  %2165 = vrot.lane.b32.xlu0 %v1825_v44, %s8226_s19  ;;  %v981_v44 = vrot.slane %v8820_v20, 7  ;;  %v343_v24 = vld [vmem:[%s8304_s14 + $0x50] sm:$0xff]  ;;  %v8854_v13 = vsel %vm8444_vm6, %v977_v34, %v978_v46  ;;  %v1842_v46 = vcombine.low %v8653_v63, %v8721_v48  ;;  %v2352_v63 = vcombine.low %v8793_v62, %v8796_v49 }
  0x5f   : > { %v558_v4 = vcombine.high %v343_v24, %v343_v24  ;;  %v8861_v14 = vrot.slane %v343_v24, %v8307_v5  ;;  %v8872_v32 = vrot.slane %v1436_v52, %v8307_v5  ;;  %v2368_v27 = vcombine.low %v8802_v55, %v8820_v20 }
  0x60   : > { %v8858_v12 = vsel %vm8444_vm6, %v980_v17, %v981_v44  ;;  %v3043_v34 = vcombine.low %v8768_v9, %v8772_v37  ;;  %v8911_v62 = vcombine.high %v8820_v20, %v8820_v20  ;;  %v8921_v55 = vrot.slane %v2352_v63, %v8307_v5 }
  0x61   : > { %13104 = vst [vmem:[#allocation5_spill] sm:$0xff] %v8872_v32  ;;  %v8924_v24 = vrot.slane %v2368_v27, %v8307_v5  ;;  %v7608_v52 = vcombine.high %v8690_v39, %v8732_v61 }
  0x62   : > { %3736 = vrot.lane.b32.xlu1 %v3669_v8, %s8225_s18  ;;  %2656 = vrot.lane.b32.xlu0 %v2316_v41, %s8223_s16  ;;  %v973_v41 = vsel %vm8444_vm6, %v971_v33, %v972_v10  ;;  %v8866_v8 = vcombine.low %v8693_v59, %v1417_v56  ;;  %v8869_v10 = vrot.slane %v1420_v50, %v8307_v5 }
  0x63   : > { %v1861_v30 = vcombine.low %v973_v41, %v8850_v6  ;;  %v8882_v59 = vrot.slane %v558_v4, %v8307_v5  ;;  %v8886_v56 = vcombine.high %v8861_v14, %v8861_v14  ;;  %v3044_v17 = vcombine.low %v8779_v38, %v973_v41 }
  0x64   : > { %13103 = vst [vmem:[#allocation4_spill] sm:$0xff] %v8869_v10  ;;  %v3670_v48 = vcombine.low %v8869_v10, %v8872_v32  ;;  %v983_v41 = vrot.slane %v981_v44, 2  ;;  %v984_v4 = vrot.slane %v8911_v62, 7  ;;  %v3474_v63 = vrot.slane %v7608_v52, %v8307_v5 }
  0x65   : > { %v8904_v43 = vrot.slane %v1861_v30, %v8307_v5  ;;  %v8915_v9 = vcombine.high %v8882_v59, %v8882_v59  ;;  %v988_v37 = vrot.slane %v8886_v56, 7  ;;  %v991_v38 = vrot.slane %v8882_v59, 7 }
  0x66   : > { %3891 = vrot.lane.b32.xlu1 %v3808_v31, %s8229_s22  ;;  %2891 = vrot.lane.b32.xlu0 %v2751_v25, %s8224_s17  ;;  %v2752_v25 = vcombine.low %v8690_v39, %v8732_v61  ;;  %v1877_v31 = vcombine.low %v8854_v13, %v8858_v12  ;;  %v3058_v50 = vrot.slane %v3044_v17, %v8307_v5 }
  0x67   : > { %v993_v30 = vrot.slane %v991_v38, 2  ;;  %v2761_v39 = vcombine.low %v8921_v55, %v8924_v24  ;;  %v1453_v44 = vcombine.low %v8886_v56, %v8882_v59  ;;  %v1859_v52 = vcombine.low %v8738_v11, %v8813_v57 }
  0x68   : > { %v2759_v33 = vrot.slane %v2752_v25, %v8307_v5  ;;  %v8907_v42 = vrot.slane %v1877_v31, %v8307_v5  ;;  %v7589_v25 = vrot.slane %v8861_v14, 9  ;;  %v994_v31 = vrot.slane %v8915_v9, 7 }
  0x69   : > { %v2350_v57 = vcombine.low %v8741_v1, %v8825_v28 }
  0x6a   : > { %4012 = vrot.lane.b32.xlu1 %v3961_v53, %s8227_s20  ;;  %3382 = vrot.lane.b32.xlu0 %v3042_v21, %s8228_s21  ;;  %v2760_v49 = vcombine.low %v2759_v33, %v8828_v18  ;;  %v3051_v53 = vrot.slane %v3043_v34, %v8307_v5  ;;  %v3809_v21 = vcombine.low %v8904_v43, %v8907_v42  ;;  %v344_v33 = vld [vmem:[%s8304_s14 + $0x58] sm:$0xff] }
  0x6b   : > { %v8951_v27 = vsel %vm8444_vm6, %v7589_v25, %v988_v37  ;;  %v8959_v17 = vsel %vm8444_vm6, %v993_v30, %v994_v31  ;;  %v7602_v25 = vcombine.high %v8820_v20, %v8861_v14  ;;  %v3060_v30 = vcombine.low %v8850_v6, %v8854_v13 }
  0x6c   : > { %v3059_v61 = vcombine.low %v3051_v53, %v3058_v50  ;;  %v575_v53 = vcombine.high %v344_v33, %v344_v33  ;;  %v3475_v50 = vcombine.low %v3474_v63, %v8869_v10  ;;  %v3476_v63 = vcombine.low %v8820_v20, %v8911_v62 }
  0x6e   : > { %3599 = vrot.lane.b32.xlu1 %v8866_v8, %s8222_s15  ;;  %2167 = vrot.lane.b32.xlu0 %v1842_v46, %s8226_s19  ;;  %v990_v46 = vrot.slane %v988_v37, 2 }
  0x70   : > { %v8955_v34 = vsel %vm8444_vm6, %v990_v46, %v991_v38  ;;  %v8973_v38 = vrot.slane %v1453_v44, %v8307_v5  ;;  %v2385_v46 = vcombine.low %v8882_v59, %v8915_v9  ;;  %v9015_v44 = vrot.slane %v7602_v25, %v8307_v5 }
  0x72   : > { %3738 = vrot.lane.b32.xlu1 %v3670_v48, %s8225_s18  ;;  %2658 = vrot.lane.b32.xlu0 %v2333_v19, %s8223_s16  ;;  %v1437_v19 = vcombine.low %v8820_v20, %v8861_v14  ;;  %v985_v48 = vsel %vm8444_vm6, %v983_v41, %v984_v4  ;;  %v1894_v41 = vcombine.low %v8955_v34, %v8959_v17 }
  0x73   : > { %v8979_v4 = vrot.slane %v575_v53, %v8307_v5  ;;  %v3068_v53 = vrot.slane %v3060_v30, %v8307_v5  ;;  %v4290_v30 = vld [vmem:[%s13068_s1 + $0x8] sm:$0xff] }
  0x74   : > { %v8968_v37 = vrot.slane %v1437_v19, %v8307_v5  ;;  %v9002_v28 = vrot.slane %v1894_v41, %v8307_v5  ;;  %v345_v19 = vld [vmem:[%s8304_s14 + $0x60] sm:$0xff] }
  0x75   : > { %v9007_v6 = vcombine.high %v8979_v4, %v8979_v4  ;;  %v591_v45 = vcombine.high %v345_v19, %v345_v19 }
  0x76   : > { %3893 = vrot.lane.b32.xlu1 %v3809_v21, %s8229_s22  ;;  %2893 = vrot.lane.b32.xlu0 %v2760_v49, %s8224_s17  ;;  %v8962_v49 = vrot.slane %v344_v33, %v8307_v5  ;;  %13105 = vst [vmem:[#allocation6_spill] sm:$0xff] %v8968_v37  ;;  %v1878_v21 = vcombine.low %v985_v48, %v8951_v27 }
  0x77   : > { %v3061_v33 = vcombine.low %v8858_v12, %v985_v48  ;;  %v1003_v12 = vrot.slane %v8979_v4, 7  ;;  %v9018_v48 = vrot.slane %v2385_v46, %v8307_v5  ;;  %v1006_v25 = vrot.slane %v9007_v6, 7  ;;  %v4289_v46 = vld [vmem:[%s13068_s1] sm:$0xff] }
  0x78   : > { %v8983_v11 = vcombine.high %v8962_v49, %v8962_v49  ;;  %v8999_v1 = vrot.slane %v1878_v21, %v8307_v5  ;;  %v997_v59 = vrot.slane %v8962_v49, 7  ;;  %v996_v21 = vrot.slane %v994_v31, 2 }
  0x79   : > { %v1005_v41 = vrot.slane %v1003_v12, 2 }
  0x7a   : > { %4014 = vrot.lane.b32.xlu1 %v2761_v39, %s8227_s20  ;;  %3384 = vrot.lane.b32.xlu0 %v3059_v61, %s8228_s21  ;;  %v3671_v61 = vcombine.low %v8968_v37, %v8973_v38  ;;  %v1000_v13 = vrot.slane %v8983_v11, 7  ;;  %v999_v20 = vrot.slane %v997_v59, 2  ;;  %v1470_v3 = vcombine.low %v8983_v11, %v8979_v4  ;;  %v4291_v37 = vld [vmem:[%s13068_s1 + $0x10] sm:$0xff] }
  0x7b   : > { %v9060_v10 = vsel %vm8444_vm6, %v1005_v41, %v1006_v25  ;;  %v2386_v41 = vcombine.low %v8962_v49, %v8983_v11  ;;  %v2402_v25 = vcombine.low %v8979_v4, %v9007_v6 }
  0x7c   : > { %v1002_v62 = vrot.slane %v1000_v13, 2 }
  0x7e   : > { %3601 = vrot.lane.b32.xlu1 %v3475_v50, %s8222_s15  ;;  %2169 = vrot.lane.b32.xlu0 %v1859_v52, %s8226_s19  ;;  %v3075_v50 = vrot.slane %v3061_v33, %v8307_v5  ;;  %v3810_v52 = vcombine.low %v8999_v1, %v9002_v28  ;;  %v3962_v33 = vcombine.low %v9015_v44, %v9018_v48 }
  0x80   : > { %v3076_v31 = vcombine.low %v3068_v53, %v3075_v50  ;;  %v7814_v53 = vpack.c.bf16 %v4290_v30, %v4289_v46  ;;  %v9056_v50 = vsel %vm8444_vm6, %v1002_v62, %v1003_v12  ;;  %v9101_v62 = vld [vmem:[%s8304_s14 + $0x68] sm:$0xff]  ;;  %v13083_v30 = vmov 0.0  }
  0x81   : > { %7726 = vmatprep.mubr.msk.f32.mxu0 %vm8232_vm8, %v13083_v30 }
  0x82   : > { %3740 = vrot.lane.b32.xlu1 %v3671_v61, %s8225_s18  ;;  %2660 = vrot.lane.b32.xlu0 %v2350_v57, %s8223_s16  ;;  %v3483_v57 = vrot.slane %v3476_v63, %v8307_v5  ;;  %v1454_v61 = vcombine.low %v8915_v9, %v8962_v49  ;;  %v998_v63 = vsel %vm8444_vm6, %v996_v21, %v997_v59  ;;  %v13081_v59 = vmov 0.0|0.0  }
  0x83   : > { %v9052_v9 = vsel %vm8444_vm6, %v999_v20, %v1000_v13  ;;  %7813 = vmatprep.subr.bf16.mxu0 %v13081_v59  ;;  %v2762_v13 = vcombine.low %v8861_v14, %v8886_v56  ;;  %v7817_v21 = vpack.c.bf16 %v4292_v7, %v4291_v37  ;;  %v1876_v20 = vcombine.low %v8816_v40, %v8904_v43 }
  0x84   : > { %7815 = vmatpush3.bf16.msra.mxu0 %v7814_v53  ;;  %v3484_v12 = vcombine.low %v8872_v32, %v3483_v57  ;;  %7819 = vmatprep.subr.bf16.mxu1 %v13081_v59  ;;  %v1895_v7 = vcombine.low %v998_v63, %v9052_v9  ;;  %v1911_v14 = vcombine.low %v9056_v50, %v9060_v10 }
  0x85   : > { %7816 = vmatprep.subr.bf16.mxu0 %v13081_v59  ;;  %v2367_v43 = vcombine.low %v8828_v18, %v8921_v55  ;;  %v2769_v37 = vrot.slane %v2762_v13, %v8307_v5  ;;  %v3078_v46 = vcombine.low %v8959_v17, %v998_v63  ;;  %v4293_v18 = vld [vmem:[%s13068_s1 + $0x20] sm:$0xf]  ;;  %v9128_v49 = vrot.slane %v9101_v62, %v8307_v5 }
  0x86   : > { %3895 = vrot.lane.b32.xlu1 %v3810_v52, %s8229_s22  ;;  %2895 = vrot.lane.b32.xlu0 %v2761_v39, %s8224_s17  ;;  %v9063_v52 = vrot.slane %v345_v19, %v8307_v5  ;;  %v9066_v39 = vrot.slane %v591_v45, %v8307_v5  ;;  %v9075_v19 = vrot.slane %v1454_v61, %v8307_v5 }
  0x87   : > { %v9082_v45 = vrot.slane %v1470_v3, %v8307_v5  ;;  %v3077_v3 = vcombine.low %v8951_v27, %v8955_v34  ;;  %v9119_v27 = vrot.slane %v1895_v7, %v8307_v5  ;;  %v9122_v34 = vrot.slane %v1911_v14, %v8307_v5 }
  0x88   : > { %v9089_v40 = vcombine.high %v9063_v52, %v9063_v52  ;;  %v9093_v56 = vcombine.high %v9066_v39, %v9066_v39  ;;  %7818 = vmatpush3.bf16.msra.mxu0 %v7817_v21  ;;  %v1013_v6 = vrot.slane %v9066_v39, 7  ;;  %v9137_v61 = vrot.slane %v2386_v41, %v8307_v5 }
  0x89   : > { %7724 = vmatprep.subr.mxu0 %v13083_v30  ;;  %v3672_v55 = vcombine.low %v9075_v19, %v9082_v45  ;;  %v9140_v63 = vrot.slane %v2402_v25, %v8307_v5  ;;  %v3811_v53 = vcombine.low %v9119_v27, %v9122_v34  ;;  %v3085_v13 = vrot.slane %v3077_v3, %v8307_v5 }
  0x8a   : > { %4016 = vrot.lane.b32.xlu1 %v3962_v33, %s8227_s20  ;;  %3386 = vrot.lane.b32.xlu0 %v3076_v31, %s8228_s21  ;;  %v1010_v11 = vrot.slane %v9089_v40, 7  ;;  %v1016_v57 = vrot.slane %v9093_v56, 7  ;;  %v2770_v31 = vcombine.low %v2769_v37, %v9018_v48  ;;  %v3092_v21 = vrot.slane %v3078_v46, %v8307_v5 }
  0x8b   : > { %v1015_v14 = vrot.slane %v1013_v6, 2  ;;  %v1019_v41 = vrot.slane %v9128_v49, 7  ;;  %v1487_v3 = vcombine.low %v9066_v39, %v9093_v56  ;;  %v3963_v46 = vcombine.low %v9137_v61, %v9140_v63 }
  0x8c   : > { %7725 = vmatpush3.msk.msra.mxu0 %vm4377_vm7, %v4293_v18  ;;  %v1012_v7 = vrot.slane %v1010_v11, 2  ;;  %v1018_v37 = vrot.slane %v1016_v57, 2  ;;  %v3093_v18 = vcombine.low %v3085_v13, %v3092_v21  ;;  %v9184_v13 = vld [vmem:[%s8304_s14 + $0x70] sm:$0xff] }
  0x8d   : > { %7808 = vmatprep.subr.mxu0 %v13083_v30  ;;  %v9173_v32 = vsel %vm8444_vm6, %v1015_v14, %v1016_v57  ;;  %v9196_v21 = vrot.slane %v1487_v3, %v8307_v5  ;;  %v3094_v3 = vcombine.low %v9052_v9, %v9056_v50 }
  0x8e   : > { %3603 = vrot.lane.b32.xlu1 %v3484_v12, %s8222_s15  ;;  %2171 = vrot.lane.b32.xlu0 %v1876_v20, %s8226_s19  ;;  %v7590_v12 = vrot.slane %v9063_v52, 9  ;;  %v9169_v30 = vsel %vm8444_vm6, %v1012_v7, %v1013_v6  ;;  %v1893_v6 = vcombine.low %v8907_v42, %v8999_v1  ;;  %v9207_v42 = vcombine.high %v9128_v49, %v9128_v49 }
  0x90   : > { %v9124_v17 = vpop.permute.xlu1 %3593  ;;  %v9133_v33 = vpop.permute.xlu0 %2650  ;;  %v1011_v59 = vsel %vm8444_vm6, %v7590_v12, %v1010_v11  ;;  %v9188_v11 = vcombine.low %v8973_v38, %v9075_v19  ;;  %v9214_v19 = vrot.slane %v9184_v13, %v8307_v5 }
  0x91   : > { %v1912_v7 = vcombine.low %v1011_v59, %v9169_v30 }
  0x92   : > { %3742 = vrot.lane.b32.xlu1 %v3672_v55, %s8225_s18  ;;  %2662 = vrot.lane.b32.xlu0 %v2367_v43, %s8223_s16  ;;  %v1471_v43 = vcombine.low %v9063_v52, %v9089_v40  ;;  %v608_v55 = vcombine.high %v9101_v62, %v9101_v62  ;;  %v2771_v62 = vcombine.low %v8979_v4, %v9063_v52 }
  0x93   : > { %13106 = vst [vmem:[#allocation7_spill] sm:$0xff] %v9188_v11  ;;  %v9236_v9 = vrot.slane %v1912_v7, %v8307_v5  ;;  %v1300_v7 = vcombine.low %v8355_v26, %v8416_v54 }
  0x94   : > { %v9150_v20 = vpop.permute.xlu1 %2883  ;;  %v9153_v25 = vpop.permute.xlu0 %2885  ;;  %v9193_v57 = vrot.slane %v1471_v43, %v8307_v5  ;;  %v9210_v1 = vrot.slane %v608_v55, %v8307_v5  ;;  %v2778_v14 = vrot.slane %v2771_v62, %v8307_v5  ;;  %v2419_v43 = vcombine.low %v9093_v56, %v9128_v49 }
  0x95   : > { %v3095_v55 = vcombine.low %v9060_v10, %v1011_v59  ;;  %v9246_v10 = vcombine.high %v9214_v19, %v9214_v19 }
  0x96   : > { %3897 = vrot.lane.b32.xlu1 %v3811_v53, %s8229_s22  ;;  %2897 = vrot.lane.b32.xlu0 %v2770_v31, %s8224_s17  ;;  %v9177_v31 = vsel %vm8444_vm6, %v1018_v37, %v1019_v41  ;;  %13107 = vst [vmem:[#allocation8_spill] sm:$0xff] %v9193_v57  ;;  %v2403_v37 = vcombine.low %v9089_v40, %v9066_v39  ;;  %v1025_v50 = vrot.slane %v9210_v1, 7 }
  0x97   : > { %v1928_v38 = vcombine.low %v9173_v32, %v9177_v31  ;;  %v3673_v39 = vcombine.low %v9193_v57, %v9196_v21  ;;  %v2779_v56 = vcombine.low %v9137_v61, %v2778_v14  ;;  %v7609_v57 = vcombine.high %v8979_v4, %v9063_v52 }
  0x98   : > { %v9179_v53 = vpop.permute.xlu1 %3591  ;;  %v9200_v12 = vpop.permute.xlu0 %2648  ;;  %v9257_v62 = vrot.slane %v2403_v37, %v8307_v5  ;;  %v1021_v37 = vrot.slane %v1019_v41, 2  ;;  %v1488_v41 = vcombine.low %v9128_v49, %v9207_v42 }
  0x99   : > { %v3492_v49 = vrot.slane %v7609_v57, %v8307_v5 }
  0x9a   : > { %4018 = vrot.lane.b32.xlu1 %v3963_v46, %s8227_s20  ;;  %3388 = vrot.lane.b32.xlu0 %v3093_v18, %s8228_s21  ;;  %v2384_v46 = vcombine.low %v8924_v24, %v9015_v44  ;;  %v1317_v18 = vcombine.low %v8324_v15, %v8345_v23  ;;  %v9239_v24 = vrot.slane %v1928_v38, %v8307_v5  ;;  %v1022_v15 = vrot.slane %v9207_v42, 7 }
  0x9b   : > { %v1318_v23 = vcombine.low %v8341_v22, %v8327_v16  ;;  %v9250_v44 = vcombine.high %v9210_v1, %v9210_v1  ;;  %v3102_v16 = vrot.slane %v3094_v3, %v8307_v5  ;;  %v3109_v22 = vrot.slane %v3095_v55, %v8307_v5 }
  0x9c   : > { %v9233_v40 = vpop.permute.xlu1 %3730  ;;  %v1301_v38 = vcombine.low %v8409_v51, %v8428_v58  ;;  %v3812_v14 = vcombine.low %v9236_v9, %v9239_v24  ;;  %v7591_v3 = vrot.slane %v9214_v19, 9  ;;  %v1027_v55 = vrot.slane %v1025_v50, 2 }
  0x9d   : > { %v1028_v26 = vrot.slane %v9250_v44, 7  ;;  %v624_v51 = vcombine.high %v9184_v13, %v9184_v13  ;;  %v1325_v58 = vrot.slane %v1317_v18, %v8307_v5  ;;  %v1332_v4 = vrot.slane %v1318_v23, %v8307_v5 }
  0x9e   : > { %3605 = vrot.lane.b32.xlu1 %v9188_v11, %s8222_s15  ;;  %2173 = vrot.lane.b32.xlu0 %v1893_v6, %s8226_s19  ;;  %v9253_v59 = vpop.permute.xlu0 %2159  ;;  %v9260_v6 = vrot.slane %v2419_v43, %v8307_v5  ;;  %v1024_v43 = vrot.slane %v1022_v15, 2  ;;  %v3110_v54 = vcombine.low %v3102_v16, %v3109_v22  ;;  %v1308_v11 = vrot.slane %v1300_v7, %v8307_v5 }
  0x9f   : > { %v1315_v13 = vrot.slane %v1301_v38, %v8307_v5  ;;  %v1023_v23 = vsel %vm8444_vm6, %v1021_v37, %v1022_v15  ;;  %v9306_v22 = vsel %vm8444_vm6, %v1027_v55, %v1028_v26  ;;  %v13108_v7 = vrot.slane %v9246_v10, 7 }
  0xa0   : > { %v9281_v52 = vpop.permute.xlu1 %4006  ;;  %v9302_v16 = vsel %vm8444_vm6, %v1024_v43, %v1025_v50  ;;  %v9315_v57 = vrot.slane %v624_v51, %v8307_v5  ;;  %v1333_v38 = vcombine.low %v1325_v58, %v1332_v4  ;;  %v9318_v15 = vrot.slane %v1488_v41, %v8307_v5 }
  0xa1   : > { %v1316_v37 = vcombine.low %v1308_v11, %v1315_v13  ;;  %v1910_v43 = vcombine.low %v9002_v28, %v9119_v27  ;;  %v3493_v26 = vcombine.low %v9082_v45, %v3492_v49  ;;  %v2401_v11 = vcombine.low %v9018_v48, %v9137_v61 }
  0xa2   : > { %3744 = vrot.lane.b32.xlu1 %v3673_v39, %s8225_s18  ;;  %2664 = vrot.lane.b32.xlu0 %v2384_v46, %s8223_s16  ;;  %v1504_v46 = vcombine.low %v9210_v1, %v9214_v19  ;;  %v9289_v39 = vcombine.low %v9257_v62, %v9260_v6  ;;  %v9339_v28 = vcombine.high %v9315_v57, %v9315_v57 }
  0xa3   : > { %v2420_v4 = vcombine.low %v9207_v42, %v9210_v1  ;;  %v7603_v41 = vcombine.high %v9210_v1, %v9214_v19  ;;  %v3112_v13 = vcombine.low %v9177_v31, %v1023_v23  ;;  %v4083_v49 = vsel %vm4081_vm9, %v1333_v38, %v9253_v59 }
  0xa4   : > { %v9321_v50 = vrot.slane %v1504_v46, %v8307_v5  ;;  %v3111_v46 = vcombine.low %v9169_v30, %v9173_v32  ;;  %v1038_v31 = vrot.slane %v9339_v28, 7 }
  0xa5   : > { %v9295_v18 = vpop.permute.xlu0 %3376 }
  0xa6   : > { %3899 = vrot.lane.b32.xlu1 %v3812_v14, %s8229_s22  ;;  %2899 = vrot.lane.b32.xlu0 %v2779_v56, %s8224_s17  ;;  %v9312_v56 = vsel %vm8444_vm6, %v7591_v3, %v13108_v7  ;;  %v9324_v14 = vld [vmem:[%s8304_s14 + $0x78] sm:$0xff]  ;;  %v1929_v3 = vcombine.low %v1023_v23, %v9302_v16  ;;  %v3674_v58 = vcombine.low %v9318_v15, %v9321_v50 }
  0xa7   : > { %v1945_v51 = vcombine.low %v9306_v22, %v9312_v56  ;;  %v9343_v27 = vrot.slane %v9324_v14, %v8307_v5 }
  0xa8   : > { %v9353_v61 = vrot.slane %v1929_v3, %v8307_v5  ;;  %v13109_v3 = vrot.slane %v9246_v10, 7 }
  0xa9   : > { %v3375_v55 = vpop.permute.xlu1 %3374  ;;  %v9365_v42 = vrot.slane %v1945_v51, %v8307_v5  ;;  %v9372_v30 = vcombine.high %v9343_v27, %v9343_v27 }
  0xaa   : > { %4020 = vrot.lane.b32.xlu1 %v9289_v39, %s8227_s20  ;;  %3390 = vrot.lane.b32.xlu0 %v3110_v54, %s8228_s21 }
  0xac   : > { %v2158_v54 = vpop.permute.xlu0 %2157 }
  0xad   : > { %v4082_v48 = vsel %vm4081_vm9, %v1316_v37, %v2158_v54  ;;  %v1035_v37 = vrot.slane %v9315_v57, 7  ;;  %v9389_v54 = vrot.slane %v7603_v41, %v8307_v5  ;;  %v1040_v41 = vrot.slane %v1038_v31, 2 }
  0xae   : > { %v4108_v7 = vsel %vm4107_vm10, %v4082_v48, %v9200_v12  ;;  %3607 = vrot.lane.b32.xlu1 %v3493_v26, %s8222_s15  ;;  %2175 = vrot.lane.b32.xlu0 %v1910_v43, %s8226_s19  ;;  %v1041_v12 = vrot.slane %v9343_v27, 7  ;;  %v9380_v43 = vrot.slane %v2420_v4, %v8307_v5  ;;  %v4109_v26 = vsel %vm4107_vm10, %v4083_v49, %v9133_v33 }
  0xaf   : > { %v4134_v32 = vsel %vm4133_vm11, %v4108_v7, %v9150_v20  ;;  %v1034_v20 = vrot.slane %v13109_v3, 2  ;;  %v3813_v4 = vcombine.low %v9353_v61, %v9365_v42  ;;  %v3126_v33 = vrot.slane %v3112_v13, %v8307_v5 }
  0xb0   : > { %v3886_v59 = vpop.permute.xlu1 %3885  ;;  %v4160_v23 = vsel %vm4159_vm12, %v4134_v32, %v3375_v55  ;;  %v9377_v38 = vpop.permute.xlu0 %2161  ;;  %v3119_v55 = vrot.slane %v3111_v46, %v8307_v5  ;;  %v1037_v49 = vrot.slane %v1035_v37, 2  ;;  %v1043_v7 = vrot.slane %v1041_v12, 2 }
  0xb1   : > { %v4186_v51 = vsel %vm4185_vm13, %v4160_v23, %v9179_v53  ;;  %v1044_v32 = vrot.slane %v9372_v30, 7  ;;  %v4135_v46 = vsel %vm4133_vm11, %v4109_v26, %v9153_v25  ;;  %v3964_v13 = vcombine.low %v9380_v43, %v9389_v54 }
  0xb2   : > { %v4212_v48 = vsel %vm4211_vm14, %v4186_v51, %v9233_v40  ;;  %3746 = vrot.lane.b32.xlu1 %v3674_v58, %s8225_s18  ;;  %2666 = vrot.lane.b32.xlu0 %v2401_v11, %s8223_s16  ;;  %v349_v58 = vld [vmem:[%s8304_s14 + $0x80] sm:$0xff]  ;;  %v1505_v3 = vcombine.low %v9246_v10, %v9315_v57  ;;  %v1521_v25 = vcombine.low %v9339_v28, %v9343_v27 }
  0xb3   : > { %v4238_v53 = vsel %vm4237_vm15, %v4212_v48, %v3886_v59  ;;  %v641_v59 = vcombine.high %v9324_v14, %v9324_v14  ;;  %v1036_v26 = vsel %vm8444_vm6, %v1034_v20, %v1035_v37  ;;  %v9424_v51 = vsel %vm8444_vm6, %v1037_v49, %v1038_v31 }
  0xb4   : > { %v3733_v40 = vpop.permute.xlu1 %3732  ;;  %v9403_v23 = vpop.permute.xlu0 %2652  ;;  %v4264_v11 = vsel %vm4263_vm0, %v4238_v53, %v9281_v52  ;;  %v3127_v52 = vcombine.low %v3119_v55, %v3126_v33  ;;  %v4161_v14 = vsel %vm4159_vm12, %v4135_v46, %v9295_v18  ;;  %v13110_v48 = vmov 0.0  }
  0xb5   : > { %7727 = vmatmul.mubr.msk.f32.vlgmr.msra.gmra.mrb[0].mxu0 %vm4301_vm1, %v4264_v11  ;;  %v9441_v37 = vrot.slane %v349_v58, %v8307_v5  ;;  %v9447_v18 = vcombine.low %v9196_v21, %v9318_v15  ;;  %v1927_v55 = vcombine.low %v9122_v34, %v9236_v9  ;;  %v9454_v33 = vrot.slane %v641_v59, %v8307_v5 }
  0xb6   : > { %3901 = vrot.lane.b32.xlu1 %v3813_v4, %s8229_s22  ;;  %2901 = vrot.lane.b32.xlu0 %v9289_v39, %s8224_s17  ;;  %v9432_v4 = vsel %vm8444_vm6, %v1040_v41, %v1041_v12  ;;  %v9438_v39 = vsel %vm8444_vm6, %v1043_v7, %v1044_v32  ;;  %v2781_v12 = vcombine.low %v9214_v19, %v9246_v10 }
  0xb7   : > { %7729 = vmatprep.mubr.msk.f32.mxu0 %vm8232_vm8, %v13110_v48  ;;  %v9457_v49 = vrot.slane %v1505_v3, %v8307_v5  ;;  %v9460_v53 = vrot.slane %v1521_v25, %v8307_v5  ;;  %v4187_v41 = vsel %vm4185_vm13, %v4161_v14, %v9124_v17  ;;  %v1946_v21 = vcombine.low %v1036_v26, %v9424_v51 }
  0xb8   : > { %v3888_v31 = vpop.permute.xlu1 %3887  ;;  %v9443_v20 = vpop.permute.xlu0 %2887  ;;  %v1962_v34 = vcombine.low %v9432_v4, %v9438_v39  ;;  %v4213_v19 = vsel %vm4211_vm14, %v4187_v41, %v3733_v40  ;;  %v2418_v9 = vcombine.low %v9140_v63, %v9257_v62  ;;  %v657_v10 = vcombine.high %v349_v58, %v349_v58 }
  0xb9   : > { %v9474_v15 = vcombine.high %v9441_v37, %v9441_v37  ;;  %v4239_v17 = vsel %vm4237_vm15, %v4213_v19, %v3888_v31  ;;  %v2788_v11 = vrot.slane %v2781_v12, %v8307_v5  ;;  %v3128_v40 = vcombine.low %v9302_v16, %v9306_v22 }
  0xba   : > { %4022 = vrot.lane.b32.xlu1 %v3964_v13, %s8227_s20  ;;  %3392 = vrot.lane.b32.xlu0 %v3127_v52, %s8228_s21  ;;  %v2437_v13 = vcombine.low %v9315_v57, %v9339_v28  ;;  %v3675_v63 = vcombine.low %v9457_v49, %v9460_v53  ;;  %v2453_v62 = vcombine.low %v9343_v27, %v9372_v30  ;;  %v1047_v28 = vrot.slane %v9454_v33, 7 }
  0xbb   : > { %v3129_v58 = vcombine.low %v9312_v56, %v1036_v26  ;;  %v9492_v57 = vrot.slane %v1946_v21, %v8307_v5  ;;  %v9495_v16 = vrot.slane %v1962_v34, %v8307_v5  ;;  %v9499_v22 = vcombine.high %v9454_v33, %v9454_v33 }
  0xbc   : > { %v4009_v7 = vpop.permute.xlu1 %4008  ;;  %v3379_v46 = vpop.permute.xlu0 %3378  ;;  %v9504_v56 = vrot.slane %v657_v10, %v8307_v5  ;;  %v1054_v27 = vrot.slane %v9474_v15, 7  ;;  %v3136_v52 = vrot.slane %v3128_v40, %v8307_v5  ;;  %v3494_v26 = vcombine.low %v9210_v1, %v9250_v44 }
  0xbd   : > { %v4265_v59 = vsel %vm4263_vm0, %v4239_v17, %v4009_v7  ;;  %v2789_v14 = vcombine.low %v9380_v43, %v2788_v11  ;;  %v9516_v31 = vrot.slane %v2437_v13, %v8307_v5  ;;  %v9519_v12 = vrot.slane %v2453_v62, %v8307_v5 }
  0xbe   : > { %3609 = vrot.lane.b32.xlu1 %v9447_v18, %s8222_s15  ;;  %2177 = vrot.lane.b32.xlu0 %v1927_v55, %s8226_s19  ;;  %v3143_v55 = vrot.slane %v3129_v58, %v8307_v5  ;;  %v3814_v41 = vcombine.low %v9492_v57, %v9495_v16  ;;  %v1046_v1 = vrot.slane %v1044_v32, 2  ;;  %v1049_v44 = vrot.slane %v1047_v28, 2 }
  0xbf   : > { %7730 = vmatmul.mubr.msk.f32.gmra.mrb[2].mxu0 %vm4301_vm1, %v4265_v59  ;;  %v1050_v21 = vrot.slane %v9499_v22, 7  ;;  %v7592_v34 = vrot.slane %v9441_v37, 9  ;;  %v1056_v19 = vrot.slane %v1054_v27, 2  ;;  %v1057_v10 = vrot.slane %v9504_v56, 7 }
  0xc0   : > { %v3596_v3 = vpop.permute.xlu1 %3595  ;;  %v9507_v25 = vpop.permute.xlu0 %2163  ;;  %7732 = vmatprep.mubr.msk.f32.mxu0 %vm8232_vm8, %v13110_v48  ;;  %v3501_v11 = vrot.slane %v3494_v26, %v8307_v5  ;;  %v9537_v13 = vcombine.low %v9516_v31, %v9519_v12  ;;  %v3144_v40 = vcombine.low %v3136_v52, %v3143_v55  ;;  %v1522_v32 = vcombine.low %v9372_v30, %v9454_v33 }
  0xc1   : > { %v1538_v59 = vcombine.low %v9441_v37, %v9474_v15  ;;  %v1048_v62 = vsel %vm8444_vm6, %v1046_v1, %v1047_v28  ;;  %v9552_v58 = vsel %vm8444_vm6, %v1049_v44, %v1050_v21  ;;  %v9558_v52 = vsel %vm8444_vm6, %v7592_v34, %v1054_v27 }
  0xc2   : > { %3748 = vrot.lane.b32.xlu1 %v3675_v63, %s8225_s18  ;;  %2668 = vrot.lane.b32.xlu0 %v2418_v9, %s8223_s16  ;;  %v350_v9 = vld [vmem:[%s8304_s14 + $0x88] sm:$0xff]  ;;  %v4084_v63 = vsel %vm4081_vm9, %v8439_v0, %v9377_v38  ;;  %v9562_v0 = vsel %vm8444_vm6, %v1056_v19, %v1057_v10  ;;  %v3502_v55 = vcombine.low %v3501_v11, %v9457_v49 }
  0xc3   : > { %v4110_v30 = vsel %vm4107_vm10, %v4084_v63, %v9403_v23  ;;  %v9565_v38 = vrot.slane %v350_v9, %v8307_v5  ;;  %v1944_v23 = vcombine.low %v9239_v24, %v9353_v61  ;;  %v9579_v1 = vrot.slane %v1538_v59, %v8307_v5 }
  0xc4   : > { %v3735_v17 = vpop.permute.xlu1 %3734  ;;  %v9531_v7 = vpop.permute.xlu0 %2654  ;;  %v4136_v28 = vsel %vm4133_vm11, %v4110_v30, %v9443_v20  ;;  %v1963_v44 = vcombine.low %v1048_v62, %v9552_v58  ;;  %v1979_v24 = vcombine.low %v9558_v52, %v9562_v0  ;;  %v9590_v61 = vcombine.high %v9504_v56, %v9504_v56 }
  0xc5   : > { %v4162_v27 = vsel %vm4159_vm12, %v4136_v28, %v3379_v46  ;;  %13111 = vst [vmem:[#allocation9_spill] sm:$0xff] %v9579_v1  ;;  %v674_v21 = vcombine.high %v350_v9, %v350_v9  ;;  %v9595_v34 = vcombine.high %v9565_v38, %v9565_v38  ;;  %v3145_v9 = vcombine.low %v9424_v51, %v9432_v4 }
  0xc6   : > { %3903 = vrot.lane.b32.xlu1 %v3814_v41, %s8229_s22  ;;  %2903 = vrot.lane.b32.xlu0 %v2789_v14, %s8224_s17  ;;  %v9576_v41 = vrot.slane %v1522_v32, %v8307_v5  ;;  %v4188_v20 = vsel %vm4185_vm13, %v4162_v27, %v3596_v3  ;;  %v2454_v32 = vcombine.low %v9454_v33, %v9499_v22  ;;  %v1063_v4 = vrot.slane %v9565_v38, 7 }
  0xc7   : > { %v4214_v46 = vsel %vm4211_vm14, %v4188_v20, %v3735_v17  ;;  %v2470_v17 = vcombine.low %v9474_v15, %v9504_v56  ;;  %v3146_v63 = vcombine.low %v9438_v39, %v1048_v62  ;;  %v9616_v22 = vrot.slane %v1979_v24, %v8307_v5 }
  0xc8   : > { %v3890_v26 = vpop.permute.xlu1 %3889  ;;  %v9569_v14 = vpop.permute.xlu0 %2889  ;;  %v1060_v15 = vrot.slane %v9590_v61, 7  ;;  %v9621_v51 = vrot.slane %v674_v21, %v8307_v5  ;;  %v1066_v39 = vrot.slane %v9595_v34, 7  ;;  %v9628_v28 = vrot.slane %v2454_v32, %v8307_v5 }
  0xc9   : > { %v4240_v3 = vsel %vm4237_vm15, %v4214_v46, %v3890_v26  ;;  %v9633_v26 = vrot.slane %v2470_v17, %v8307_v5  ;;  %v1059_v27 = vrot.slane %v1057_v10, 2  ;;  %v1065_v24 = vrot.slane %v1063_v4, 2 }
  0xca   : > { %4024 = vrot.lane.b32.xlu1 %v9537_v13, %s8227_s20  ;;  %3394 = vrot.lane.b32.xlu0 %v3144_v40, %s8228_s21  ;;  %v2435_v40 = vcombine.low %v9260_v6, %v9380_v43  ;;  %v3676_v6 = vcombine.low %v9576_v41, %v9579_v1  ;;  %v9613_v43 = vrot.slane %v1963_v44, %v8307_v5  ;;  %v1062_v20 = vrot.slane %v1060_v15, 2 }
  0xcb   : > { %v1068_v46 = vrot.slane %v1066_v39, 2  ;;  %v1069_v21 = vrot.slane %v9621_v51, 7  ;;  %v1555_v10 = vcombine.low %v9565_v38, %v9595_v34 }
  0xcc   : > { %v4011_v19 = vpop.permute.xlu1 %4010  ;;  %v3381_v11 = vpop.permute.xlu0 %3380  ;;  %v3815_v44 = vcombine.low %v9613_v43, %v9616_v22 }
  0xcd   : > { %v4266_v59 = vsel %vm4263_vm0, %v4240_v3, %v4011_v19  ;;  %v351_v3 = vld [vmem:[%s8304_s14 + $0x90] sm:$0xff] }
  0xce   : > { %3611 = vrot.lane.b32.xlu1 %v3502_v55, %s8222_s15  ;;  %2179 = vrot.lane.b32.xlu0 %v1944_v23, %s8226_s19  ;;  %v3153_v55 = vrot.slane %v3145_v9, %v8307_v5  ;;  %v3160_v23 = vrot.slane %v3146_v63, %v8307_v5  ;;  %v1061_v9 = vsel %vm8444_vm6, %v1059_v27, %v1060_v15 }
  0xcf   : > { %7733 = vmatmul.mubr.msk.f32.gmra.mrb[4].mxu0 %vm4301_vm1, %v4266_v59  ;;  %v1539_v59 = vcombine.low %v9504_v56, %v9590_v61  ;;  %v13112_v63 = vcombine.low %v8376_v35, %v8379_v36  ;;  %v9663_v56 = vsel %vm8444_vm6, %v1062_v20, %v1063_v4  ;;  %v690_v1 = vcombine.high %v351_v3, %v351_v3 }
  0xd0   : > { %v3598_v62 = vpop.permute.xlu1 %3597  ;;  %v9625_v30 = vpop.permute.xlu0 %2165  ;;  %7735 = vmatprep.mubr.msk.f32.mxu0 %vm8232_vm8, %v13110_v48  ;;  %v3161_v17 = vcombine.low %v3153_v55, %v3160_v23  ;;  %v9669_v15 = vsel %vm8444_vm6, %v1065_v24, %v1066_v39  ;;  %v9673_v35 = vsel %vm8444_vm6, %v1068_v46, %v1069_v21  ;;  %v9676_v36 = vrot.slane %v351_v3, %v8307_v5 }
  0xd1   : > { %v9687_v39 = vrot.slane %v1539_v59, %v8307_v5  ;;  %v9690_v23 = vrot.slane %v1555_v10, %v8307_v5  ;;  %v2791_v20 = vcombine.low %v9454_v33, %v9441_v37  ;;  %v2487_v10 = vcombine.low %v9595_v34, %v9621_v51 }
  0xd2   : > { %3750 = vrot.lane.b32.xlu1 %v3676_v6, %s8225_s18  ;;  %2670 = vrot.lane.b32.xlu0 %v2435_v40, %s8223_s16  ;;  %v3965_v40 = vcombine.low %v9628_v28, %v9633_v26  ;;  %v4085_v6 = vsel %vm4081_vm9, %v13112_v63, %v9507_v25  ;;  %v1071_v63 = vrot.slane %v1069_v21, 2  ;;  %v7610_v21 = vcombine.high %v9454_v33, %v9441_v37  ;;  %v352_v33 = vld [vmem:[%s8304_s14 + $0x98] sm:$0xff] }
  0xd3   : > { %v4111_v55 = vsel %vm4107_vm10, %v4085_v6, %v9531_v7  ;;  %v9684_v7 = vcombine.low %v9460_v53, %v9576_v41  ;;  %v1996_v53 = vcombine.low %v9669_v15, %v9673_v35  ;;  %v9704_v41 = vrot.slane %v690_v1, %v8307_v5 }
  0xd4   : > { %v3737_v19 = vpop.permute.xlu1 %3736  ;;  %v9643_v32 = vpop.permute.xlu0 %2656  ;;  %v4137_v25 = vsel %vm4133_vm11, %v4111_v55, %v9569_v14  ;;  %v1980_v14 = vcombine.low %v1061_v9, %v9663_v56  ;;  %v3677_v1 = vcombine.low %v9687_v39, %v9690_v23 }
  0xd5   : > { %v4163_v27 = vsel %vm4159_vm12, %v4137_v25, %v3381_v11 }
  0xd6   : > { %3905 = vrot.lane.b32.xlu1 %v3815_v44, %s8229_s22  ;;  %2905 = vrot.lane.b32.xlu0 %v9537_v13, %s8224_s17  ;;  %v1961_v44 = vcombine.low %v9365_v42, %v9492_v57  ;;  %v4189_v24 = vsel %vm4185_vm13, %v4163_v27, %v3598_v62  ;;  %v3162_v42 = vcombine.low %v9552_v58, %v9558_v52 }
  0xd7   : > { %v4215_v11 = vsel %vm4211_vm14, %v4189_v24, %v3737_v19  ;;  %v2452_v57 = vcombine.low %v9389_v54, %v9516_v31  ;;  %v9713_v62 = vcombine.high %v9676_v36, %v9676_v36  ;;  %v9720_v19 = vcombine.high %v9621_v51, %v9621_v51 }
  0xd8   : > { %v3892_v13 = vpop.permute.xlu1 %3891  ;;  %v9680_v4 = vpop.permute.xlu0 %2891  ;;  %v3163_v58 = vcombine.low %v9562_v0, %v1061_v9  ;;  %v2798_v54 = vrot.slane %v2791_v20, %v8307_v5  ;;  %v2471_v31 = vcombine.low %v9590_v61, %v9565_v38  ;;  %v9736_v0 = vrot.slane %v1996_v53, %v8307_v5 }
  0xd9   : > { %v4241_v46 = vsel %vm4237_vm15, %v4215_v11, %v3892_v13  ;;  %v1079_v38 = vrot.slane %v9704_v41, 7  ;;  %v1076_v61 = vrot.slane %v9713_v62, 7  ;;  %v1072_v6 = vrot.slane %v9720_v19, 7 }
  0xda   : > { %4026 = vrot.lane.b32.xlu1 %v3965_v40, %s8227_s20  ;;  %3396 = vrot.lane.b32.xlu0 %v3161_v17, %s8228_s21  ;;  %v9733_v40 = vrot.slane %v1980_v14, %v8307_v5  ;;  %v9740_v17 = vcombine.high %v9704_v41, %v9704_v41  ;;  %v3170_v55 = vrot.slane %v3162_v42, %v8307_v5  ;;  %v7593_v20 = vrot.slane %v9676_v36, 9 }
  0xdb   : > { %v3177_v25 = vrot.slane %v3163_v58, %v8307_v5  ;;  %v2799_v13 = vcombine.low %v2798_v54, %v9633_v26  ;;  %v9754_v27 = vrot.slane %v2471_v31, %v8307_v5  ;;  %v1081_v24 = vrot.slane %v1079_v38, 2 }
  0xdc   : > { %v4013_v3 = vpop.permute.xlu1 %4012  ;;  %v3383_v59 = vpop.permute.xlu0 %3382  ;;  %v3816_v14 = vcombine.low %v9733_v40, %v9736_v0  ;;  %v1082_v53 = vrot.slane %v9740_v17, 7  ;;  %v1078_v11 = vrot.slane %v1076_v61, 2  ;;  %v1556_v58 = vcombine.low %v9621_v51, %v9676_v36 }
  0xdd   : > { %v4267_v52 = vsel %vm4263_vm0, %v4241_v46, %v4013_v3  ;;  %v1073_v3 = vsel %vm8444_vm6, %v1071_v63, %v1072_v6  ;;  %v3178_v37 = vcombine.low %v3170_v55, %v3177_v25  ;;  %v4086_v54 = vsel %vm4081_vm9, %v8678_v47, %v9625_v30 }
  0xde   : > { %3613 = vrot.lane.b32.xlu1 %v9684_v7, %s8222_s15  ;;  %2181 = vrot.lane.b32.xlu0 %v1961_v44, %s8226_s19  ;;  %v9757_v44 = vrot.slane %v2487_v10, %v8307_v5  ;;  %v9788_v31 = vsel %vm8444_vm6, %v7593_v20, %v1076_v61  ;;  %v9794_v10 = vsel %vm8444_vm6, %v1081_v24, %v1082_v53 }
  0xdf   : > { %7736 = vmatmul.mubr.msk.f32.gmra.mrb[6].mxu0 %vm4301_vm1, %v4267_v52  ;;  %v1572_v52 = vcombine.low %v9713_v62, %v9704_v41  ;;  %v4112_v63 = vsel %vm4107_vm10, %v4086_v54, %v9643_v32  ;;  %v9800_v47 = vsel %vm8444_vm6, %v1078_v11, %v1079_v38  ;;  %v707_v30 = vcombine.high %v352_v33, %v352_v33 }
  0xe0   : > { %v3600_v34 = vpop.permute.xlu1 %3599  ;;  %v9745_v9 = vpop.permute.xlu0 %2167  ;;  %7738 = vmatprep.mubr.msk.f32.mxu0 %vm8232_vm8, %v13110_v48  ;;  %v9803_v6 = vrot.slane %v352_v33, %v8307_v5  ;;  %v4138_v61 = vsel %vm4133_vm11, %v4112_v63, %v9680_v4  ;;  %v9814_v38 = vrot.slane %v1556_v58, %v8307_v5  ;;  %v1997_v4 = vcombine.low %v1073_v3, %v9788_v31 }
  0xe1   : > { %v3180_v11 = vcombine.low %v9673_v35, %v1073_v3  ;;  %v2504_v54 = vcombine.low %v9704_v41, %v9740_v17 }
  0xe2   : > { %3752 = vrot.lane.b32.xlu1 %v3677_v1, %s8225_s18  ;;  %2672 = vrot.lane.b32.xlu0 %v2452_v57, %s8223_s16  ;;  %v9774_v57 = vcombine.low %v9754_v27, %v9757_v44  ;;  %v3510_v1 = vrot.slane %v7610_v21, %v8307_v5  ;;  %v4164_v21 = vsel %vm4159_vm12, %v4138_v61, %v3383_v59 }
  0xe3   : > { %v4190_v20 = vsel %vm4185_vm13, %v4164_v21, %v3600_v34  ;;  %v9828_v59 = vrot.slane %v707_v30, %v8307_v5  ;;  %v9832_v24 = vcombine.high %v9803_v6, %v9803_v6  ;;  %v3179_v34 = vcombine.low %v9663_v56, %v9669_v15  ;;  %v353_v21 = vld [vmem:[%s8304_s14 + $0xa0] sm:$0xff] }
  0xe4   : > { %v3739_v42 = vpop.permute.xlu1 %3738  ;;  %v9767_v46 = vpop.permute.xlu0 %2658  ;;  %v3511_v32 = vcombine.low %v3510_v1, %v9687_v39  ;;  %v9850_v15 = vrot.slane %v1997_v4, %v8307_v5  ;;  %v1084_v4 = vrot.slane %v1082_v53, 2 }
  0xe5   : > { %v1088_v41 = vrot.slane %v9832_v24, 7  ;;  %v1091_v3 = vrot.slane %v9828_v59, 7  ;;  %v3187_v61 = vrot.slane %v3179_v34, %v8307_v5 }
  0xe6   : > { %3907 = vrot.lane.b32.xlu1 %v3816_v14, %s8229_s22  ;;  %2907 = vrot.lane.b32.xlu0 %v2799_v13, %s8224_s17  ;;  %v1978_v13 = vcombine.low %v9495_v16, %v9613_v43  ;;  %v9817_v14 = vrot.slane %v1572_v52, %v8307_v5  ;;  %v2013_v16 = vcombine.low %v9800_v47, %v9794_v10 }
  0xe7   : > { %v4216_v43 = vsel %vm4211_vm14, %v4190_v20, %v3739_v42  ;;  %v2469_v42 = vcombine.low %v9519_v12, %v9628_v28  ;;  %v7604_v52 = vcombine.high %v9621_v51, %v9676_v36  ;;  %v1085_v12 = vrot.slane %v9803_v6, 7 }
  0xe8   : > { %v3894_v55 = vpop.permute.xlu1 %3893  ;;  %v9807_v25 = vpop.permute.xlu0 %2893  ;;  %v3678_v56 = vcombine.low %v9814_v38, %v9817_v14  ;;  %v9853_v35 = vrot.slane %v2013_v16, %v8307_v5  ;;  %v9859_v28 = vcombine.high %v9828_v59, %v9828_v59  ;;  %v9876_v20 = vrot.slane %v2504_v54, %v8307_v5 }
  0xe9   : > { %v1401_v16 = vcombine.low %v8607_v60, %v8685_v29  ;;  %v1093_v34 = vrot.slane %v1091_v3, 2  ;;  %v1573_v29 = vcombine.low %v9740_v17, %v9803_v6  ;;  %v1086_v54 = vsel %vm8444_vm6, %v1084_v4, %v1085_v12 }
  0xea   : > { %4028 = vrot.lane.b32.xlu1 %v9774_v57, %s8227_s20  ;;  %3398 = vrot.lane.b32.xlu0 %v3178_v37, %s8228_s21  ;;  %v4242_v37 = vsel %vm4237_vm15, %v4216_v43, %v3894_v55  ;;  %v3194_v55 = vrot.slane %v3180_v11, %v8307_v5  ;;  %v1090_v43 = vrot.slane %v1088_v41, 2  ;;  %v1094_v11 = vrot.slane %v9859_v28, 7 }
  0xeb   : > { %v9908_v17 = vrot.slane %v353_v21, %v8307_v5 }
  0xec   : > { %v4015_v33 = vpop.permute.xlu1 %4014  ;;  %v3385_v1 = vpop.permute.xlu0 %3384  ;;  %v3195_v53 = vcombine.low %v3187_v61, %v3194_v55 }
  0xed   : > { %v4268_v58 = vsel %vm4263_vm0, %v4242_v37, %v4015_v33  ;;  %v723_v37 = vcombine.high %v353_v21, %v353_v21 }
  0xee   : > { %3615 = vrot.lane.b32.xlu1 %v3511_v32, %s8222_s15  ;;  %2183 = vrot.lane.b32.xlu0 %v1978_v13, %s8226_s19  ;;  %v3512_v13 = vcombine.low %v9621_v51, %v9720_v19  ;;  %v9873_v32 = vrot.slane %v7604_v52, %v8307_v5  ;;  %v3817_v51 = vcombine.low %v9850_v15, %v9853_v35  ;;  %v1087_v19 = vrot.slane %v1085_v12, 2 }
  0xef   : > { %7739 = vmatmul.mubr.msk.f32.gmra.mrb[8].mxu0 %vm4301_vm1, %v4268_v58  ;;  %v9914_v12 = vsel %vm8444_vm6, %v1090_v43, %v1091_v3  ;;  %v2801_v3 = vcombine.low %v9676_v36, %v9713_v62  ;;  %v9947_v36 = vcombine.high %v9908_v17, %v9908_v17 }
  0xf0   : > { %v3602_v63 = vpop.permute.xlu1 %3601  ;;  %v9863_v30 = vpop.permute.xlu0 %2169  ;;  %7741 = vmatprep.mubr.msk.f32.mxu0 %vm8232_vm8, %v13110_v48  ;;  %v3519_v52 = vrot.slane %v3512_v13, %v8307_v5  ;;  %v3966_v60 = vcombine.low %v9873_v32, %v9876_v20  ;;  %v9905_v61 = vsel %vm8444_vm6, %v1087_v19, %v1088_v41 }
  0xf2   : > { %3754 = vrot.lane.b32.xlu1 %v3678_v56, %s8225_s18  ;;  %2674 = vrot.lane.b32.xlu0 %v2469_v42, %s8223_s16  ;;  %v1589_v42 = vcombine.low %v9832_v24, %v9828_v59  ;;  %v4087_v56 = vsel %vm4081_vm9, %v1401_v16, %v9745_v9  ;;  %v9918_v9 = vsel %vm8444_vm6, %v1093_v34, %v1094_v11 }
  0xf3   : > { %v4113_v55 = vsel %vm4107_vm10, %v4087_v56, %v9767_v46  ;;  %v3520_v4 = vcombine.low %v9690_v23, %v3519_v52  ;;  %v1995_v46 = vcombine.low %v9616_v22, %v9733_v40  ;;  %v2030_v22 = vcombine.low %v9914_v12, %v9918_v9  ;;  %v9961_v52 = vld [vmem:[%s8304_s14 + $0xa8] sm:$0xff] }
  0xf4   : > { %v3741_v33 = vpop.permute.xlu1 %3740  ;;  %v9887_v58 = vpop.permute.xlu0 %2660  ;;  %v4139_v41 = vsel %vm4133_vm11, %v4113_v55, %v9807_v25  ;;  %v9937_v19 = vrot.slane %v1589_v42, %v8307_v5  ;;  %v2014_v25 = vcombine.low %v1086_v54, %v9905_v61  ;;  %v2486_v11 = vcombine.low %v9633_v26, %v9754_v27 }
  0xf5   : > { %v4165_v16 = vsel %vm4159_vm12, %v4139_v41, %v3385_v1  ;;  %v3197_v42 = vcombine.low %v9794_v10, %v1086_v54  ;;  %v9983_v10 = vrot.slane %v9961_v52, %v8307_v5 }
  0xf6   : > { %3909 = vrot.lane.b32.xlu1 %v3817_v51, %s8229_s22  ;;  %2909 = vrot.lane.b32.xlu0 %v9774_v57, %s8224_s17  ;;  %v9921_v57 = vrot.slane %v723_v37, %v8307_v5  ;;  %v9934_v51 = vrot.slane %v1573_v29, %v8307_v5  ;;  %13113 = vst [vmem:[#allocation10_spill] sm:$0xff] %v9937_v19 }
  0xf7   : > { %v4191_v43 = vsel %vm4185_vm13, %v4165_v16, %v3602_v63  ;;  %v2808_v37 = vrot.slane %v2801_v3, %v8307_v5  ;;  %v2521_v29 = vcombine.low %v9828_v59, %v9859_v28  ;;  %v9974_v27 = vrot.slane %v2014_v25, %v8307_v5 }
  0xf8   : > { %v3896_v13 = vpop.permute.xlu1 %3895  ;;  %v9925_v21 = vpop.permute.xlu0 %2895  ;;  %v4217_v62 = vsel %vm4211_vm14, %v4191_v43, %v3741_v33  ;;  %v9952_v40 = vcombine.high %v9921_v57, %v9921_v57  ;;  %v3679_v26 = vcombine.low %v9934_v51, %v9937_v19  ;;  %v7594_v3 = vrot.slane %v9908_v17, 9 }
  0xf9   : > { %v4243_v1 = vsel %vm4237_vm15, %v4217_v62, %v3896_v13  ;;  %v9995_v55 = vrot.slane %v2521_v29, %v8307_v5  ;;  %v3211_v13 = vrot.slane %v3197_v42, %v8307_v5 }
  0xfa   : > { %4030 = vrot.lane.b32.xlu1 %v3966_v60, %s8227_s20  ;;  %3400 = vrot.lane.b32.xlu0 %v3195_v53, %s8228_s21  ;;  %v3196_v53 = vcombine.low %v9788_v31, %v9800_v47  ;;  %v2505_v60 = vcombine.low %v9803_v6, %v9832_v24  ;;  %v9977_v31 = vrot.slane %v2030_v22, %v8307_v5  ;;  %v1098_v47 = vrot.slane %v9947_v36, 7 }
  0xfb   : > { %v1101_v6 = vrot.slane %v9921_v57, 7  ;;  %v1104_v24 = vrot.slane %v9952_v40, 7  ;;  %v1107_v22 = vrot.slane %v9983_v10, 7 }
  0xfc   : > { %v4017_v63 = vpop.permute.xlu1 %4016  ;;  %v3387_v34 = vpop.permute.xlu0 %3386  ;;  %v9992_v56 = vrot.slane %v2505_v60, %v8307_v5  ;;  %v3204_v41 = vrot.slane %v3196_v53, %v8307_v5  ;;  %v1100_v16 = vrot.slane %v1098_v47, 2  ;;  %v1099_v60 = vsel %vm8444_vm6, %v7594_v3, %v1098_v47 }
  0xfd   : > { %v4269_v33 = vsel %vm4263_vm0, %v4243_v1, %v4017_v63  ;;  %v1103_v25 = vrot.slane %v1101_v6, 2  ;;  %v1106_v43 = vrot.slane %v1104_v24, 2 }
  0xfe   : > { %3617 = vrot.lane.b32.xlu1 %v3520_v4, %s8222_s15  ;;  %2185 = vrot.lane.b32.xlu0 %v1995_v46, %s8226_s19  ;;  %v3818_v4 = vcombine.low %v9974_v27, %v9977_v31  ;;  %v2809_v46 = vcombine.low %v2808_v37, %v9876_v20  ;;  %v3967_v63 = vcombine.low %v9992_v56, %v9995_v55 }
  0xff   : > { %7742 = vmatmul.mubr.msk.f32.gmra.mrb[10].mxu0 %vm4301_vm1, %v4269_v33  ;;  %v3212_v53 = vcombine.low %v3204_v41, %v3211_v13  ;;  %v1606_v37 = vcombine.low %v9921_v57, %v9952_v40  ;;  %v4088_v33 = vsel %vm4081_vm9, %v8866_v8, %v9863_v30  ;;  %v10023_v29 = vsel %vm8444_vm6, %v1100_v16, %v1101_v6  ;;  %v10052_v13 = vld [vmem:[%s8304_s14 + $0xb0] sm:$0xff] }
 0x100   : > { %v3604_v28 = vpop.permute.xlu1 %3603  ;;  %v9987_v54 = vpop.permute.xlu0 %2171  ;;  %7744 = vmatprep.mubr.msk.f32.mxu0 %vm8232_vm8, %v13110_v48  ;;  %v4114_v42 = vsel %vm4107_vm10, %v4088_v33, %v9887_v58  ;;  %v10031_v8 = vsel %vm8444_vm6, %v1103_v25, %v1104_v24  ;;  %v10037_v30 = vsel %vm8444_vm6, %v1106_v43, %v1107_v22  ;;  %v10045_v58 = vcombine.low %v9817_v14, %v9934_v51 }
 0x101   : > { %v4140_v47 = vsel %vm4133_vm11, %v4114_v42, %v9925_v21  ;;  %v2810_v24 = vcombine.low %v9828_v59, %v9908_v17  ;;  %v10059_v21 = vrot.slane %v1606_v37, %v8307_v5  ;;  %v2031_v3 = vcombine.low %v1099_v60, %v10023_v29 }
 0x102   : > { %3756 = vrot.lane.b32.xlu1 %v3679_v26, %s8225_s18  ;;  %2676 = vrot.lane.b32.xlu0 %v2486_v11, %s8223_s16  ;;  %v1590_v11 = vcombine.low %v9908_v17, %v9947_v36  ;;  %v740_v26 = vcombine.high %v9961_v52, %v9961_v52  ;;  %v2012_v52 = vcombine.low %v9736_v0, %v9850_v15 }
 0x103   : > { %v2047_v0 = vcombine.low %v10031_v8, %v10037_v30  ;;  %v10069_v15 = vcombine.high %v9983_v10, %v9983_v10  ;;  %v10077_v16 = vrot.slane %v10052_v13, %v8307_v5  ;;  %v2522_v37 = vcombine.low %v9947_v36, %v9921_v57 }
 0x104   : > { %v3743_v62 = vpop.permute.xlu1 %3742  ;;  %v10006_v1 = vpop.permute.xlu0 %2662  ;;  %v2538_v33 = vcombine.low %v9952_v40, %v9983_v10  ;;  %v3214_v42 = vcombine.low %v9918_v9, %v1099_v60  ;;  %v13115_v40 = vld [vmem:[#allocation4_spill] sm:$0xff]  ;;  %v13116_v60 = vld [vmem:[#allocation3_spill] sm:$0xff] }
 0x105   : > { %v10106_v9 = vcombine.high %v10077_v16, %v10077_v16 }
 0x106   : > { %3911 = vrot.lane.b32.xlu1 %v3818_v4, %s8229_s22  ;;  %2911 = vrot.lane.b32.xlu0 %v2809_v46, %s8224_s17  ;;  %v4166_v4 = vsel %vm4159_vm12, %v4140_v47, %v3387_v34  ;;  %v10056_v46 = vrot.slane %v1590_v11, %v8307_v5  ;;  %v10073_v34 = vrot.slane %v740_v26, %v8307_v5 }
 0x107   : > { %v4192_v14 = vsel %vm4185_vm13, %v4166_v4, %v3604_v28  ;;  %v3213_v11 = vcombine.low %v9905_v61, %v9914_v12  ;;  %v10100_v61 = vrot.slane %v2047_v0, %v8307_v5  ;;  %v1110_v12 = vrot.slane %v10069_v15, 7 }
 0x108   : > { %v3898_v6 = vpop.permute.xlu1 %3897  ;;  %v10041_v41 = vpop.permute.xlu0 %2897  ;;  %13114 = vst [vmem:[#allocation11_spill] sm:$0xff] %v10056_v46  ;;  %v4218_v51 = vsel %vm4211_vm14, %v4192_v14, %v3743_v62  ;;  %v10110_v57 = vcombine.high %v10073_v34, %v10073_v34  ;;  %v1113_v36 = vrot.slane %v10073_v34, 7  ;;  %v1435_v26 = vcombine.low %v13116_v60, %v13115_v40 }
 0x109   : > { %v4244_v28 = vsel %vm4237_vm15, %v4218_v51, %v3898_v6  ;;  %v10127_v14 = vrot.slane %v2538_v33, %v8307_v5  ;;  %v3228_v0 = vrot.slane %v3214_v42, %v8307_v5  ;;  %v1623_v40 = vcombine.low %v10073_v34, %v10077_v16 }
 0x10a   : > { %4032 = vrot.lane.b32.xlu1 %v3967_v63, %s8227_s20  ;;  %3402 = vrot.lane.b32.xlu0 %v3212_v53, %s8228_s21  ;;  %v2503_v63 = vcombine.low %v9757_v44, %v9873_v32  ;;  %v2817_v53 = vrot.slane %v2810_v24, %v8307_v5  ;;  %v3680_v44 = vcombine.low %v10056_v46, %v10059_v21 }
 0x10b   : > { %v10097_v32 = vrot.slane %v2031_v3, %v8307_v5  ;;  %v7611_v24 = vcombine.high %v9828_v59, %v9908_v17  ;;  %v10124_v3 = vrot.slane %v2522_v37, %v8307_v5  ;;  %v1109_v59 = vrot.slane %v1107_v22, 2 }
 0x10c   : > { %v4019_v25 = vpop.permute.xlu1 %4018  ;;  %v3389_v43 = vpop.permute.xlu0 %3388  ;;  %v2818_v4 = vcombine.low %v9992_v56, %v2817_v53  ;;  %v1112_v17 = vrot.slane %v1110_v12, 2  ;;  %v1116_v53 = vrot.slane %v10110_v57, 7 }
 0x10d   : > { %v4270_v62 = vsel %vm4263_vm0, %v4244_v28, %v4019_v25  ;;  %v3819_v51 = vcombine.low %v10097_v32, %v10100_v61  ;;  %v7595_v28 = vrot.slane %v10077_v16, 9  ;;  %v1115_v25 = vrot.slane %v1113_v36, 2 }
 0x10e   : > { %3619 = vrot.lane.b32.xlu1 %v10045_v58, %s8222_s15  ;;  %2187 = vrot.lane.b32.xlu0 %v2012_v52, %s8226_s19  ;;  %v3221_v52 = vrot.slane %v3213_v11, %v8307_v5  ;;  %v1120_v11 = vrot.slane %v10106_v9, 7  ;;  %v3528_v33 = vrot.slane %v7611_v24, %v8307_v5  ;;  %v10146_v22 = vcombine.low %v10124_v3, %v10127_v14 }
 0x10f   : > { %7745 = vmatmul.mubr.msk.f32.gmra.mrb[12].mxu0 %vm4301_vm1, %v4270_v62  ;;  %v756_v62 = vcombine.high %v10052_v13, %v10052_v13  ;;  %v4089_v13 = vsel %vm4081_vm9, %v1435_v26, %v9987_v54  ;;  %v1111_v60 = vsel %vm8444_vm6, %v1109_v59, %v1110_v12  ;;  %v10160_v24 = vsel %vm8444_vm6, %v1112_v17, %v1113_v36  ;;  %v10175_v26 = vld [vmem:[%s8304_s14 + $0xb8] sm:$0xff] }
 0x110   : > { %v3606_v47 = vpop.permute.xlu1 %3605  ;;  %v10115_v6 = vpop.permute.xlu0 %2173  ;;  %7747 = vmatprep.mubr.msk.f32.mxu0 %vm8232_vm8, %v13110_v48  ;;  %v3229_v42 = vcombine.low %v3221_v52, %v3228_v0  ;;  %v10166_v52 = vsel %vm8444_vm6, %v1115_v25, %v1116_v53  ;;  %v10172_v54 = vsel %vm8444_vm6, %v7595_v28, %v1120_v11  ;;  %v3529_v0 = vcombine.low %v9937_v19, %v3528_v33 }
 0x111   : > { %v10178_v12 = vrot.slane %v756_v62, %v8307_v5  ;;  %v10192_v28 = vrot.slane %v1623_v40, %v8307_v5  ;;  %v2048_v25 = vcombine.low %v1111_v60, %v10160_v24  ;;  %v7605_v40 = vcombine.high %v10073_v34, %v10077_v16 }
 0x112   : > { %3758 = vrot.lane.b32.xlu1 %v3680_v44, %s8225_s18  ;;  %2678 = vrot.lane.b32.xlu0 %v2503_v63, %s8223_s16  ;;  %v1607_v44 = vcombine.low %v9983_v10, %v10069_v15  ;;  %v4115_v10 = vsel %vm4107_vm10, %v4089_v13, %v10006_v1 }
 0x113   : > { %v4141_v36 = vsel %vm4133_vm11, %v4115_v10, %v10041_v41  ;;  %13117 = vst [vmem:[#allocation4_spill] sm:$0xff] %v10192_v28  ;;  %v10208_v53 = vcombine.high %v10178_v12, %v10178_v12  ;;  %v3230_v10 = vcombine.low %v10023_v29, %v10031_v8  ;;  %v1123_v29 = vrot.slane %v10178_v12, 7 }
 0x114   : > { %v3745_v37 = vpop.permute.xlu1 %3744  ;;  %v10141_v63 = vpop.permute.xlu0 %2664  ;;  %v4167_v59 = vsel %vm4159_vm12, %v4141_v36, %v3389_v43  ;;  %v10189_v17 = vrot.slane %v1607_v44, %v8307_v5  ;;  %v2539_v44 = vcombine.low %v10069_v15, %v10073_v34  ;;  %v3231_v36 = vcombine.low %v10037_v30, %v1111_v60 }
 0x115   : > { %v4193_v41 = vsel %vm4185_vm13, %v4167_v59, %v3606_v47  ;;  %v1126_v8 = vrot.slane %v10208_v53, 7  ;;  %v13118_v59 = vld [vmem:[#allocation6_spill] sm:$0xff]  ;;  %v1624_v19 = vcombine.low %v10106_v9, %v10178_v12 }
 0x116   : > { %3913 = vrot.lane.b32.xlu1 %v3819_v51, %s8229_s22  ;;  %2913 = vrot.lane.b32.xlu0 %v2818_v4, %s8224_s17  ;;  %v2029_v51 = vcombine.low %v9853_v35, %v9974_v27  ;;  %v2064_v35 = vcombine.low %v10166_v52, %v10172_v54  ;;  %v10203_v27 = vrot.slane %v10175_v26, %v8307_v5 }
 0x117   : > { %v4219_v43 = vsel %vm4211_vm14, %v4193_v41, %v3745_v37  ;;  %v3681_v37 = vcombine.low %v10189_v17, %v10192_v28  ;;  %v1128_v28 = vrot.slane %v1126_v8, 2 }
 0x118   : > { %v3900_v4 = vpop.permute.xlu1 %3899  ;;  %v10182_v1 = vpop.permute.xlu0 %2899  ;;  %v10233_v15 = vcombine.high %v10203_v27, %v10203_v27 }
 0x119   : > { %v4245_v47 = vsel %vm4237_vm15, %v4219_v43, %v3900_v4  ;;  %v1129_v4 = vrot.slane %v10203_v27, 7  ;;  %v3245_v43 = vrot.slane %v3231_v36, %v8307_v5 }
 0x11a   : > { %4034 = vrot.lane.b32.xlu1 %v10146_v22, %s8227_s20  ;;  %3404 = vrot.lane.b32.xlu0 %v3229_v42, %s8228_s21  ;;  %v2520_v42 = vcombine.low %v9876_v20, %v9992_v56  ;;  %v10226_v20 = vrot.slane %v2048_v25, %v8307_v5  ;;  %v10229_v56 = vrot.slane %v2064_v35, %v8307_v5  ;;  %v13119_v25 = vld [vmem:[#allocation5_spill] sm:$0xff] }
 0x11b   : > { %v1452_v41 = vcombine.low %v13119_v25, %v13118_v59  ;;  %v3238_v35 = vrot.slane %v3230_v10, %v8307_v5 }
 0x11c   : > { %v4021_v62 = vpop.permute.xlu1 %4020  ;;  %v3391_v33 = vpop.permute.xlu0 %3390 }
 0x11d   : > { %v4271_v13 = vsel %vm4263_vm0, %v4245_v47, %v4021_v62  ;;  %v3820_v47 = vcombine.low %v10226_v20, %v10229_v56  ;;  %v1122_v62 = vrot.slane %v1120_v11, 2  ;;  %v3246_v36 = vcombine.low %v3238_v35, %v3245_v43 }
 0x11e   : > { %3621 = vrot.lane.b32.xlu1 %v3529_v0, %s8222_s15  ;;  %2189 = vrot.lane.b32.xlu0 %v2029_v51, %s8226_s19  ;;  %v10242_v0 = vrot.slane %v2539_v44, %v8307_v5  ;;  %v10245_v51 = vrot.slane %v7605_v40, %v8307_v5  ;;  %v1131_v44 = vrot.slane %v1129_v4, 2  ;;  %v1640_v11 = vcombine.low %v10208_v53, %v10203_v27 }
 0x11f   : > { %7748 = vmatmul.mubr.msk.f32.gmra.mrb[14].mxu0 %vm4301_vm1, %v4271_v13  ;;  %v1125_v13 = vrot.slane %v1123_v29, 2  ;;  %v4090_v40 = vsel %vm4081_vm9, %v1452_v41, %v10115_v6  ;;  %v1124_v35 = vsel %vm8444_vm6, %v1122_v62, %v1123_v29  ;;  %v13120_v43 = vrot.slane %v10233_v15, 7 }
 0x120   : > { %v3608_v30 = vpop.permute.xlu1 %3607  ;;  %v10239_v60 = vpop.permute.xlu0 %2175  ;;  %7750 = vmatprep.mubr.msk.f32.mxu0 %vm8232_vm8, %v13110_v48  ;;  %v3968_v10 = vcombine.low %v10242_v0, %v10245_v51  ;;  %v4116_v46 = vsel %vm4107_vm10, %v4090_v40, %v10141_v63  ;;  %v10292_v41 = vsel %vm8444_vm6, %v1128_v28, %v1129_v4  ;;  %v10303_v63 = vcombine.low %v10059_v21, %v10189_v17 }
 0x121   : > { %v10288_v6 = vsel %vm8444_vm6, %v1125_v13, %v1126_v8  ;;  %v4142_v29 = vsel %vm4133_vm11, %v4116_v46, %v10182_v1  ;;  %v2046_v8 = vcombine.low %v9977_v31, %v10097_v32  ;;  %v2820_v28 = vcombine.low %v10077_v16, %v10106_v9 }
 0x122   : > { %3760 = vrot.lane.b32.xlu1 %v3681_v37, %s8225_s18  ;;  %2680 = vrot.lane.b32.xlu0 %v2520_v42, %s8223_s16  ;;  %v357_v37 = vld [vmem:[%s8304_s14 + $0xc0] sm:$0xff]  ;;  %v773_v42 = vcombine.high %v10175_v26, %v10175_v26  ;;  %v10282_v26 = vsel %vm8444_vm6, %v1131_v44, %v13120_v43  ;;  %v4168_v4 = vsel %vm4159_vm12, %v4142_v29, %v3391_v33 }
 0x123   : > { %v10314_v46 = vrot.slane %v1624_v19, %v8307_v5  ;;  %v10317_v1 = vrot.slane %v1640_v11, %v8307_v5  ;;  %v4194_v21 = vsel %vm4185_vm13, %v4168_v4, %v3608_v30  ;;  %v2065_v31 = vcombine.low %v1124_v35, %v10288_v6 }
 0x124   : > { %v3747_v59 = vpop.permute.xlu1 %3746  ;;  %v10260_v25 = vpop.permute.xlu0 %2666  ;;  %v10311_v44 = vrot.slane %v773_v42, %v8307_v5  ;;  %v2081_v16 = vcombine.low %v10292_v41, %v10282_v26  ;;  %v2537_v19 = vcombine.low %v9995_v55, %v10124_v3  ;;  %v789_v9 = vcombine.high %v357_v37, %v357_v37 }
 0x125   : > { %v4220_v32 = vsel %vm4211_vm14, %v4194_v21, %v3747_v59  ;;  %v2827_v13 = vrot.slane %v2820_v28, %v8307_v5  ;;  %v3247_v59 = vcombine.low %v10160_v24, %v10166_v52  ;;  %v3682_v55 = vcombine.low %v10314_v46, %v10317_v1 }
 0x126   : > { %3915 = vrot.lane.b32.xlu1 %v3820_v47, %s8229_s22  ;;  %2915 = vrot.lane.b32.xlu0 %v10146_v22, %s8224_s17  ;;  %v10295_v22 = vrot.slane %v357_v37, %v8307_v5  ;;  %v2556_v3 = vcombine.low %v10178_v12, %v10208_v53  ;;  %v3248_v37 = vcombine.low %v10172_v54, %v1124_v35  ;;  %v1135_v42 = vrot.slane %v10311_v44, 7 }
 0x127   : > { %v10351_v24 = vrot.slane %v2081_v16, %v8307_v5  ;;  %v10355_v52 = vcombine.high %v10311_v44, %v10311_v44  ;;  %v10360_v54 = vrot.slane %v789_v9, %v8307_v5  ;;  %v3530_v43 = vcombine.low %v10073_v34, %v10110_v57 }
 0x128   : > { %v3902_v47 = vpop.permute.xlu1 %3901  ;;  %v10299_v62 = vpop.permute.xlu0 %2901  ;;  %v10330_v17 = vcombine.high %v10295_v22, %v10295_v22  ;;  %v2828_v29 = vcombine.low %v10242_v0, %v2827_v13  ;;  %v3262_v28 = vrot.slane %v3248_v37, %v8307_v5  ;;  %v13121_v21 = vrot.slane %v10233_v15, 7 }
 0x129   : > { %v4246_v33 = vsel %vm4237_vm15, %v4220_v32, %v3902_v47  ;;  %v10374_v47 = vrot.slane %v2556_v3, %v8307_v5  ;;  %v1137_v57 = vrot.slane %v1135_v42, 2  ;;  %v7596_v16 = vrot.slane %v10295_v22, 9  ;;  %v13122_v3 = vld [vmem:[#allocation7_spill] sm:$0xff] }
 0x12a   : > { %4036 = vrot.lane.b32.xlu1 %v3968_v10, %s8227_s20  ;;  %3406 = vrot.lane.b32.xlu0 %v3246_v36, %s8228_s21  ;;  %v2572_v10 = vcombine.low %v10203_v27, %v10233_v15  ;;  %v10348_v27 = vrot.slane %v2065_v31, %v8307_v5  ;;  %v1142_v12 = vrot.slane %v10330_v17, 7  ;;  %v1134_v34 = vrot.slane %v13121_v21, 2 }
 0x12b   : > { %v1138_v31 = vrot.slane %v10355_v52, 7  ;;  %v1145_v9 = vrot.slane %v10360_v54, 7  ;;  %v3537_v13 = vrot.slane %v3530_v43, %v8307_v5  ;;  %v4091_v37 = vsel %vm4081_vm9, %v13122_v3, %v10239_v60 }
 0x12c   : > { %v4023_v30 = vpop.permute.xlu1 %4022  ;;  %v3393_v40 = vpop.permute.xlu0 %3392  ;;  %v10366_v35 = vrot.slane %v2572_v10, %v8307_v5  ;;  %v3821_v4 = vcombine.low %v10348_v27, %v10351_v24  ;;  %v1144_v32 = vrot.slane %v1142_v12, 2  ;;  %v1136_v43 = vsel %vm8444_vm6, %v1134_v34, %v1135_v42 }
 0x12d   : > { %v4272_v36 = vsel %vm4263_vm0, %v4246_v33, %v4023_v30  ;;  %v3538_v34 = vcombine.low %v3537_v13, %v10314_v46  ;;  %v2589_v3 = vcombine.low %v10330_v17, %v10360_v54 }
 0x12e   : > { %3623 = vrot.lane.b32.xlu1 %v10303_v63, %s8222_s15  ;;  %2191 = vrot.lane.b32.xlu0 %v2046_v8, %s8226_s19  ;;  %v3255_v8 = vrot.slane %v3247_v59, %v8307_v5  ;;  %v10393_v10 = vcombine.low %v10374_v47, %v10366_v35  ;;  %v10418_v60 = vsel %vm8444_vm6, %v1144_v32, %v1145_v9 }
 0x12f   : > { %7751 = vmatmul.mubr.msk.f32.gmra.mrb[16].mxu0 %vm4301_vm1, %v4272_v36  ;;  %v1641_v36 = vcombine.low %v10233_v15, %v10311_v44  ;;  %v4117_v15 = vsel %vm4107_vm10, %v4091_v37, %v10260_v25  ;;  %v2063_v25 = vcombine.low %v10100_v61, %v10226_v20  ;;  %v10446_v20 = vcombine.high %v10360_v54, %v10360_v54 }
 0x130   : > { %v3610_v53 = vpop.permute.xlu1 %3609  ;;  %v10363_v11 = vpop.permute.xlu0 %2177  ;;  %7753 = vmatprep.mubr.msk.f32.mxu0 %vm8232_vm8, %v13110_v48  ;;  %v3263_v59 = vcombine.low %v3255_v8, %v3262_v28  ;;  %v10408_v8 = vsel %vm8444_vm6, %v1137_v57, %v1138_v31  ;;  %v10414_v28 = vsel %vm8444_vm6, %v7596_v16, %v1142_v12  ;;  %v4143_v42 = vsel %vm4133_vm11, %v4117_v15, %v10299_v62 }
 0x131   : > { %v4169_v12 = vsel %vm4159_vm12, %v4143_v42, %v3393_v40  ;;  %v10432_v57 = vrot.slane %v1641_v36, %v8307_v5  ;;  %v2082_v16 = vcombine.low %v1136_v43, %v10408_v8  ;;  %v2098_v61 = vcombine.low %v10414_v28, %v10418_v60 }
 0x132   : > { %3762 = vrot.lane.b32.xlu1 %v3682_v55, %s8225_s18  ;;  %2682 = vrot.lane.b32.xlu0 %v2537_v19, %s8223_s16  ;;  %v358_v19 = vld [vmem:[%s8304_s14 + $0xc8] sm:$0xff]  ;;  %v1657_v55 = vcombine.low %v10295_v22, %v10330_v17  ;;  %v4195_v62 = vsel %vm4185_vm13, %v4169_v12, %v3610_v53  ;;  %v3265_v15 = vcombine.low %v10282_v26, %v1136_v43 }
 0x133   : > { %v806_v32 = vcombine.high %v358_v19, %v358_v19  ;;  %v10469_v42 = vrot.slane %v2082_v16, %v8307_v5  ;;  %v10472_v17 = vrot.slane %v2098_v61, %v8307_v5  ;;  %v1147_v16 = vrot.slane %v1145_v9, 2 }
 0x134   : > { %v3749_v33 = vpop.permute.xlu1 %3748  ;;  %v10387_v30 = vpop.permute.xlu0 %2668  ;;  %v10435_v31 = vrot.slane %v1657_v55, %v8307_v5  ;;  %v3279_v12 = vrot.slane %v3265_v15, %v8307_v5  ;;  %v1658_v15 = vcombine.low %v10360_v54, %v10446_v20 }
 0x135   : > { %v4221_v40 = vsel %vm4211_vm14, %v4195_v62, %v3749_v33  ;;  %v2554_v33 = vcombine.low %v10127_v14, %v10242_v0  ;;  %v1148_v14 = vrot.slane %v10446_v20, 7  ;;  %v10477_v0 = vrot.slane %v806_v32, %v8307_v5  ;;  %v13124_v62 = vld [vmem:[#allocation8_spill] sm:$0xff] }
 0x136   : > { %3917 = vrot.lane.b32.xlu1 %v3821_v4, %s8229_s22  ;;  %2917 = vrot.lane.b32.xlu0 %v2828_v29, %s8224_s17  ;;  %v10421_v29 = vrot.slane %v358_v19, %v8307_v5  ;;  %13123 = vst [vmem:[#allocation3_spill] sm:$0xff] %v10435_v31  ;;  %v3264_v19 = vcombine.low %v10288_v6, %v10292_v41 }
 0x137   : > { %v1486_v61 = vcombine.low %v9082_v45, %v13124_v62  ;;  %v1150_v32 = vrot.slane %v1148_v14, 2 }
 0x138   : > { %v3904_v4 = vpop.permute.xlu1 %3903  ;;  %v10425_v21 = vpop.permute.xlu0 %2903  ;;  %v10451_v13 = vcombine.high %v10421_v29, %v10421_v29  ;;  %v1151_v26 = vrot.slane %v10421_v29, 7 }
 0x139   : > { %v4247_v53 = vsel %vm4237_vm15, %v4221_v40, %v3904_v4  ;;  %v3822_v40 = vcombine.low %v10469_v42, %v10472_v17  ;;  %v4092_v62 = vsel %vm4081_vm9, %v1486_v61, %v10363_v11 }
 0x13a   : > { %4038 = vrot.lane.b32.xlu1 %v10393_v10, %s8227_s20  ;;  %3408 = vrot.lane.b32.xlu0 %v3263_v59, %s8228_s21  ;;  %v2573_v59 = vcombine.low %v10311_v44, %v10355_v52  ;;  %v3683_v52 = vcombine.low %v10432_v57, %v10435_v31  ;;  %v1154_v6 = vrot.slane %v10451_v13, 7 }
 0x13c   : > { %v4025_v36 = vpop.permute.xlu1 %4024  ;;  %v3395_v55 = vpop.permute.xlu0 %3394  ;;  %v10484_v4 = vrot.slane %v2573_v59, %v8307_v5  ;;  %v1157_v59 = vrot.slane %v10477_v0, 7 }
 0x13d   : > { %v4273_v37 = vsel %vm4263_vm0, %v4247_v53, %v4025_v36  ;;  %v1153_v53 = vrot.slane %v1151_v26, 2  ;;  %v1156_v36 = vrot.slane %v1154_v6, 2 }
 0x13e   : > { %3625 = vrot.lane.b32.xlu1 %v3538_v34, %s8222_s15  ;;  %2193 = vrot.lane.b32.xlu0 %v2063_v25, %s8226_s19  ;;  %v10487_v34 = vrot.slane %v2589_v3, %v8307_v5  ;;  %v3272_v25 = vrot.slane %v3264_v19, %v8307_v5  ;;  %v359_v3 = vld [vmem:[%s8304_s14 + $0xd0] sm:$0xff] }
 0x13f   : > { %7754 = vmatmul.mubr.msk.f32.gmra.mrb[18].mxu0 %vm4301_vm1, %v4273_v37  ;;  %v10521_v54 = vrot.slane %v359_v3, %v8307_v5  ;;  %v10533_v11 = vsel %vm8444_vm6, %v1156_v36, %v1157_v59 }
 0x140   : > { %v3612_v41 = vpop.permute.xlu1 %3611  ;;  %v10481_v43 = vpop.permute.xlu0 %2179  ;;  %7756 = vmatprep.mubr.msk.f32.mxu0 %vm8232_vm8, %v13110_v48  ;;  %v3969_v9 = vcombine.low %v10484_v4, %v10487_v34  ;;  %v3280_v45 = vcombine.low %v3272_v25, %v3279_v12  ;;  %v10518_v25 = vsel %vm8444_vm6, %v1150_v32, %v1151_v26  ;;  %v4118_v12 = vsel %vm4107_vm10, %v4092_v62, %v10387_v30 }
 0x141   : > { %v4144_v26 = vsel %vm4133_vm11, %v4118_v12, %v10425_v21  ;;  %v10541_v30 = vcombine.low %v10317_v1, %v10432_v57  ;;  %v10562_v1 = vcombine.high %v10521_v54, %v10521_v54  ;;  %v2571_v57 = vcombine.low %v10245_v51, %v10374_v47 }
 0x142   : > { %3764 = vrot.lane.b32.xlu1 %v3683_v52, %s8225_s18  ;;  %2684 = vrot.lane.b32.xlu0 %v2554_v33, %s8223_s16  ;;  %v1674_v33 = vcombine.low %v10421_v29, %v10451_v13  ;;  %v1149_v52 = vsel %vm8444_vm6, %v1147_v16, %v1148_v14  ;;  %v10527_v14 = vsel %vm8444_vm6, %v1153_v53, %v1154_v6 }
 0x143   : > { %13125 = vst [vmem:[#allocation6_spill] sm:$0xff] %v10541_v30  ;;  %v2080_v6 = vcombine.low %v10229_v56, %v10348_v27  ;;  %v4170_v32 = vsel %vm4159_vm12, %v4144_v26, %v3395_v55  ;;  %v10549_v53 = vrot.slane %v1658_v15, %v8307_v5  ;;  %v2099_v36 = vcombine.low %v1149_v52, %v10518_v25 }
 0x144   : > { %v3751_v37 = vpop.permute.xlu1 %3750  ;;  %v10501_v19 = vpop.permute.xlu0 %2670  ;;  %v10552_v21 = vrot.slane %v1674_v33, %v8307_v5  ;;  %v2115_v56 = vcombine.low %v10527_v14, %v10533_v11  ;;  %v2590_v33 = vcombine.low %v10446_v20, %v10421_v29  ;;  %v2606_v62 = vcombine.low %v10451_v13, %v10477_v0 }
 0x145   : > { %13126 = vst [vmem:[#allocation5_spill] sm:$0xff] %v10549_v53  ;;  %v3281_v51 = vcombine.low %v10408_v8, %v10414_v28  ;;  %v3282_v47 = vcombine.low %v10418_v60, %v1149_v52  ;;  %v10582_v12 = vcombine.high %v10477_v0, %v10477_v0  ;;  %v10590_v20 = vrot.slane %v2099_v36, %v8307_v5 }
 0x146   : > { %3919 = vrot.lane.b32.xlu1 %v3822_v40, %s8229_s22  ;;  %2919 = vrot.lane.b32.xlu0 %v10393_v10, %s8224_s17  ;;  %v822_v10 = vcombine.high %v359_v3, %v359_v3  ;;  %v2830_v40 = vcombine.low %v10311_v44, %v10295_v22  ;;  %v4196_v3 = vsel %vm4185_vm13, %v4170_v32, %v3612_v41  ;;  %v1164_v8 = vrot.slane %v10562_v1, 7 }
 0x147   : > { %v4222_v27 = vsel %vm4211_vm14, %v4196_v3, %v3751_v37  ;;  %v3684_v29 = vcombine.low %v10549_v53, %v10552_v21  ;;  %v10593_v13 = vrot.slane %v2115_v56, %v8307_v5  ;;  %v10605_v26 = vrot.slane %v2590_v33, %v8307_v5 }
 0x148   : > { %v3906_v16 = vpop.permute.xlu1 %3905  ;;  %v10537_v61 = vpop.permute.xlu0 %2905  ;;  %v10568_v55 = vrot.slane %v822_v10, %v8307_v5  ;;  %v3296_v32 = vrot.slane %v3282_v47, %v8307_v5  ;;  %v1159_v36 = vrot.slane %v1157_v59, 2  ;;  %v1160_v3 = vrot.slane %v10582_v12, 7 }
 0x149   : > { %v4248_v41 = vsel %vm4237_vm15, %v4222_v27, %v3906_v16  ;;  %v10608_v16 = vrot.slane %v2606_v62, %v8307_v5  ;;  %v3823_v56 = vcombine.low %v10590_v20, %v10593_v13 }
 0x14a   : > { %4040 = vrot.lane.b32.xlu1 %v3969_v9, %s8227_s20  ;;  %3410 = vrot.lane.b32.xlu0 %v3280_v45, %s8228_s21  ;;  %v2837_v45 = vrot.slane %v2830_v40, %v8307_v5  ;;  %v10599_v28 = vcombine.high %v10568_v55, %v10568_v55  ;;  %v1167_v60 = vrot.slane %v10568_v55, 7  ;;  %v3289_v40 = vrot.slane %v3281_v51, %v8307_v5 }
 0x14b   : > { %v10630_v59 = vcombine.low %v10605_v26, %v10608_v16  ;;  %v1691_v47 = vcombine.low %v10562_v1, %v10568_v55 }
 0x14c   : > { %v4027_v9 = vpop.permute.xlu1 %4026  ;;  %v3397_v15 = vpop.permute.xlu0 %3396  ;;  %v2838_v27 = vcombine.low %v2837_v45, %v10487_v34  ;;  %v3297_v51 = vcombine.low %v3289_v40, %v3296_v32  ;;  %v1675_v45 = vcombine.low %v10477_v0, %v10521_v54 }
 0x14d   : > { %v4274_v37 = vsel %vm4263_vm0, %v4248_v41, %v4027_v9  ;;  %v1169_v41 = vrot.slane %v1167_v60, 2  ;;  %v4093_v9 = vsel %vm4081_vm9, %v9447_v18, %v10481_v43 }
 0x14e   : > { %3627 = vrot.lane.b32.xlu1 %v10541_v30, %s8222_s15  ;;  %2195 = vrot.lane.b32.xlu0 %v2080_v6, %s8226_s19  ;;  %v7612_v6 = vcombine.high %v10311_v44, %v10295_v22  ;;  %v7597_v22 = vrot.slane %v10521_v54, 9  ;;  %v1166_v44 = vrot.slane %v1164_v8, 2  ;;  %v4119_v32 = vsel %vm4107_vm10, %v4093_v9, %v10501_v19 }
 0x14f   : > { %7757 = vmatmul.mubr.msk.f32.gmra.mrb[20].mxu0 %vm4301_vm1, %v4274_v37  ;;  %v360_v37 = vld [vmem:[%s8304_s14 + $0xd8] sm:$0xff] }
 0x150   : > { %v3614_v52 = vpop.permute.xlu1 %3613  ;;  %v10602_v10 = vpop.permute.xlu0 %2181  ;;  %7759 = vmatprep.mubr.msk.f32.mxu0 %vm8232_vm8, %v13110_v48  ;;  %v10651_v40 = vsel %vm8444_vm6, %v1166_v44, %v1167_v60  ;;  %v839_v43 = vcombine.high %v360_v37, %v360_v37  ;;  %v2097_v60 = vcombine.low %v10351_v24, %v10469_v42  ;;  %v10673_v44 = vrot.slane %v1675_v45, %v8307_v5 }
 0x152   : > { %3766 = vrot.lane.b32.xlu1 %v3684_v29, %s8225_s18  ;;  %2686 = vrot.lane.b32.xlu0 %v2571_v57, %s8223_s16  ;;  %v3546_v57 = vrot.slane %v7612_v6, %v8307_v5  ;;  %v1161_v29 = vsel %vm8444_vm6, %v1159_v36, %v1160_v3  ;;  %v10647_v6 = vsel %vm8444_vm6, %v7597_v22, %v1164_v8  ;;  %v13127_v36 = vrot.slane %v10599_v28, 7 }
 0x153   : > { %v10662_v3 = vrot.slane %v360_v37, %v8307_v5  ;;  %v4145_v8 = vsel %vm4133_vm11, %v4119_v32, %v10537_v61  ;;  %13128 = vst [vmem:[#allocation7_spill] sm:$0xff] %v10673_v44  ;;  %v2116_v61 = vcombine.low %v1161_v29, %v10647_v6 }
 0x154   : > { %v3753_v33 = vpop.permute.xlu1 %3752  ;;  %v10626_v62 = vpop.permute.xlu0 %2672  ;;  %v10659_v18 = vsel %vm8444_vm6, %v1169_v41, %v13127_v36  ;;  %v4171_v19 = vsel %vm4159_vm12, %v4145_v8, %v3397_v15  ;;  %v3547_v22 = vcombine.low %v3546_v57, %v10549_v53  ;;  %v10676_v41 = vrot.slane %v1691_v47, %v8307_v5 }
 0x155   : > { %v4197_v9 = vsel %vm4185_vm13, %v4171_v19, %v3614_v52  ;;  %v2132_v24 = vcombine.low %v10651_v40, %v10659_v18  ;;  %v10687_v15 = vrot.slane %v839_v43, %v8307_v5  ;;  %v10691_v57 = vcombine.high %v10662_v3, %v10662_v3 }
 0x156   : > { %3921 = vrot.lane.b32.xlu1 %v3823_v56, %s8229_s22  ;;  %2921 = vrot.lane.b32.xlu0 %v2838_v27, %s8224_s17  ;;  %v4223_v42 = vsel %vm4211_vm14, %v4197_v9, %v3753_v33  ;;  %v7606_v47 = vcombine.high %v10477_v0, %v10521_v54  ;;  %v2623_v33 = vcombine.low %v10568_v55, %v10599_v28  ;;  %v1173_v55 = vrot.slane %v10662_v3, 7 }
 0x157   : > { %v3298_v36 = vcombine.low %v10518_v25, %v10527_v14  ;;  %v3299_v43 = vcombine.low %v10533_v11, %v1161_v29  ;;  %v10712_v8 = vrot.slane %v2132_v24, %v8307_v5  ;;  %v10718_v25 = vcombine.high %v10687_v15, %v10687_v15 }
 0x158   : > { %v3908_v56 = vpop.permute.xlu1 %3907  ;;  %v10666_v27 = vpop.permute.xlu0 %2907  ;;  %v1176_v14 = vrot.slane %v10691_v57, 7  ;;  %v1179_v11 = vrot.slane %v10687_v15, 7  ;;  %v3548_v19 = vcombine.low %v10477_v0, %v10582_v12  ;;  %v10733_v9 = vrot.slane %v2623_v33, %v8307_v5 }
 0x159   : > { %v4249_v52 = vsel %vm4237_vm15, %v4223_v42, %v3908_v56  ;;  %v3313_v24 = vrot.slane %v3299_v43, %v8307_v5  ;;  %v13129_v42 = vrot.slane %v10599_v28, 7  ;;  %v1175_v12 = vrot.slane %v1173_v55, 2 }
 0x15a   : > { %4042 = vrot.lane.b32.xlu1 %v10630_v59, %s8227_s20  ;;  %3412 = vrot.lane.b32.xlu0 %v3297_v51, %s8228_s21  ;;  %v2588_v51 = vcombine.low %v10366_v35, %v10484_v4  ;;  %v3685_v35 = vcombine.low %v10673_v44, %v10676_v41  ;;  %v10709_v4 = vrot.slane %v2116_v61, %v8307_v5  ;;  %v1182_v33 = vrot.slane %v10718_v25, 7 }
 0x15b   : > { %v3306_v61 = vrot.slane %v3298_v36, %v8307_v5  ;;  %v1708_v31 = vcombine.low %v10691_v57, %v10687_v15 }
 0x15c   : > { %v4029_v37 = vpop.permute.xlu1 %4028  ;;  %v3399_v45 = vpop.permute.xlu0 %3398  ;;  %v3824_v0 = vcombine.low %v10709_v4, %v10712_v8 }
 0x15d   : > { %v4275_v32 = vsel %vm4263_vm0, %v4249_v52, %v4029_v37  ;;  %v1172_v52 = vrot.slane %v13129_v42, 2  ;;  %v1520_v37 = vcombine.low %v9321_v50, %v9457_v49  ;;  %v3555_v42 = vrot.slane %v3548_v19, %v8307_v5 }
 0x15e   : > { %3629 = vrot.lane.b32.xlu1 %v3547_v22, %s8222_s15  ;;  %2197 = vrot.lane.b32.xlu0 %v2097_v60, %s8226_s19  ;;  %v10725_v60 = vrot.slane %v7606_v47, %v8307_v5  ;;  %v361_v22 = vld [vmem:[%s8304_s14 + $0xe0] sm:$0xff]  ;;  %v1178_v47 = vrot.slane %v1176_v14, 2  ;;  %v2114_v50 = vcombine.low %v10472_v17, %v10590_v20  ;;  %v1692_v49 = vcombine.low %v10599_v28, %v10662_v3 }
 0x15f   : > { %7760 = vmatmul.mubr.msk.f32.gmra.mrb[22].mxu0 %vm4301_vm1, %v4275_v32  ;;  %v1181_v32 = vrot.slane %v1179_v11, 2  ;;  %v1186_v36 = vcombine.high %v361_v22, %v361_v22  ;;  %v1174_v53 = vsel %vm8444_vm6, %v1172_v52, %v1173_v55  ;;  %v4094_v30 = vsel %vm4081_vm9, %v1520_v37, %v10602_v10 }
 0x160   : > { %v3616_v29 = vpop.permute.xlu1 %3615  ;;  %v10722_v56 = vpop.permute.xlu0 %2183  ;;  %7762 = vmatprep.mubr.msk.f32.mxu0 %vm8232_vm8, %v13110_v48  ;;  %v10766_v17 = vsel %vm8444_vm6, %v1175_v12, %v1176_v14  ;;  %v10769_v20 = vrot.slane %v361_v22, %v8307_v5  ;;  %v4120_v28 = vsel %vm4107_vm10, %v4094_v30, %v10626_v62  ;;  %v10775_v55 = vsel %vm8444_vm6, %v1178_v47, %v1179_v11 }
 0x161   : > { %v10779_v10 = vsel %vm8444_vm6, %v1181_v32, %v1182_v33  ;;  %v4146_v14 = vsel %vm4133_vm11, %v4120_v28, %v10666_v27  ;;  %v1706_v30 = vrot.slane %v1692_v49, %v8307_v5  ;;  %v2840_v62 = vcombine.low %v10521_v54, %v10562_v1 }
 0x162   : > { %3768 = vrot.lane.b32.xlu1 %v3685_v35, %s8225_s18  ;;  %2688 = vrot.lane.b32.xlu0 %v2588_v51, %s8223_s16  ;;  %v3970_v51 = vcombine.low %v10725_v60, %v10733_v9  ;;  %v3314_v35 = vcombine.low %v3306_v61, %v3313_v24  ;;  %v3556_v61 = vcombine.low %v10552_v21, %v3555_v42 }
 0x163   : > { %v4172_v11 = vsel %vm4159_vm12, %v4146_v14, %v3399_v45  ;;  %v10794_v24 = vrot.slane %v1708_v31, %v8307_v5  ;;  %v2133_v52 = vcombine.low %v1174_v53, %v10766_v17  ;;  %v2624_v27 = vcombine.low %v10662_v3, %v10691_v57  ;;  %v13130_v45 = vld [vmem:[#allocation9_spill] sm:$0xff] }
 0x164   : > { %v3755_v43 = vpop.permute.xlu1 %3754  ;;  %v10746_v44 = vpop.permute.xlu0 %2674  ;;  %v4198_v37 = vsel %vm4185_vm13, %v4172_v11, %v3616_v29  ;;  %v2149_v54 = vcombine.low %v10775_v55, %v10779_v10  ;;  %v10806_v1 = vcombine.high %v10769_v20, %v10769_v20  ;;  %v2640_v3 = vcombine.low %v10687_v15, %v10718_v25 }
 0x165   : > { %v4224_v31 = vsel %vm4211_vm14, %v4198_v37, %v3755_v43  ;;  %v2847_v32 = vrot.slane %v2840_v62, %v8307_v5  ;;  %v3315_v33 = vcombine.low %v10647_v6, %v10651_v40  ;;  %v362_v43 = vld [vmem:[%s8304_s14 + $0xe8] sm:$0xff]  ;;  %v3686_v25 = vcombine.low %v1706_v30, %v10794_v24 }
 0x166   : > { %3923 = vrot.lane.b32.xlu1 %v3824_v0, %s8229_s22  ;;  %2923 = vrot.lane.b32.xlu0 %v10630_v59, %s8224_s17  ;;  %v10782_v59 = vrot.slane %v1186_v36, %v8307_v5  ;;  %v3316_v36 = vcombine.low %v10659_v18, %v1174_v53  ;;  %v2605_v49 = vcombine.low %v10487_v34, %v10605_v26  ;;  %v1222_v6 = vrot.slane %v10806_v1, 7 }
 0x167   : > { %v10838_v53 = vrot.slane %v2149_v54, %v8307_v5  ;;  %v2849_v40 = vcombine.low %v10687_v15, %v10769_v20  ;;  %v10845_v34 = vrot.slane %v2640_v3, %v8307_v5  ;;  %v10848_v26 = vrot.slane %v362_v43, %v8307_v5 }
 0x168   : > { %v3910_v19 = vpop.permute.xlu1 %3909  ;;  %v10786_v22 = vpop.permute.xlu0 %2909  ;;  %v10815_v57 = vcombine.high %v10782_v59, %v10782_v59  ;;  %v1225_v18 = vrot.slane %v10782_v59, 7  ;;  %v3330_v62 = vrot.slane %v3316_v36, %v8307_v5  ;;  %v10860_v11 = vcombine.low %v10676_v41, %v1706_v30 }
 0x169   : > { %v4250_v29 = vsel %vm4237_vm15, %v4224_v31, %v3910_v19  ;;  %v2848_v19 = vcombine.low %v2847_v32, %v10733_v9  ;;  %v1203_v37 = vcombine.high %v362_v43, %v362_v43  ;;  %v7598_v54 = vrot.slane %v10769_v20, 9 }
 0x16a   : > { %4044 = vrot.lane.b32.xlu1 %v3970_v51, %s8227_s20  ;;  %3414 = vrot.lane.b32.xlu0 %v3314_v35, %s8228_s21  ;;  %v10830_v51 = vrot.slane %v2624_v27, %v8307_v5  ;;  %v10835_v35 = vrot.slane %v2133_v52, %v8307_v5  ;;  %v3566_v52 = vcombine.low %v10782_v59, %v10815_v57  ;;  %v1224_v30 = vrot.slane %v1222_v6, 2 }
 0x16b   : > { %v3687_v27 = vcombine.low %v10769_v20, %v10806_v1  ;;  %v2131_v41 = vcombine.low %v10593_v13, %v10709_v4  ;;  %v10874_v3 = vrot.slane %v2849_v40, %v8307_v5  ;;  %v2858_v13 = vcombine.low %v10806_v1, %v10782_v59 }
 0x16c   : > { %v4031_v12 = vpop.permute.xlu1 %4030  ;;  %v10818_v47 = vpop.permute.xlu0 %3400  ;;  %v3825_v31 = vcombine.low %v10835_v35, %v10838_v53  ;;  %v10887_v4 = vcombine.high %v10848_v26, %v10848_v26  ;;  %v10896_v0 = vrot.slane %v1203_v37, %v8307_v5  ;;  %v4095_v59 = vsel %vm4081_vm9, %v9684_v7, %v10722_v56 }
 0x16d   : > { %v4276_v42 = vsel %vm4263_vm0, %v4250_v29, %v4031_v12  ;;  %v3971_v29 = vcombine.low %v10830_v51, %v10845_v34  ;;  %v1227_v12 = vrot.slane %v1225_v18, 2  ;;  %v10893_v40 = vrot.slane %v3687_v27, %v8307_v5 }
 0x16e   : > { %3631 = vrot.lane.b32.xlu1 %v3556_v61, %s8222_s15  ;;  %2199 = vrot.lane.b32.xlu0 %v2114_v50, %s8226_s19  ;;  %v1228_v50 = vrot.slane %v10815_v57, 7  ;;  %v3323_v61 = vrot.slane %v3315_v33, %v8307_v5  ;;  %v1231_v33 = vrot.slane %v10848_v26, 7  ;;  %v10908_v1 = vsel %vm8444_vm6, %v1224_v30, %v1225_v18 }
 0x16f   : > { %7763 = vmatmul.mubr.msk.f32.gmra.mrb[24].mxu0 %vm4301_vm1, %v4276_v42  ;;  %v4121_v27 = vsel %vm4107_vm10, %v4095_v59, %v10746_v44  ;;  %v2859_v56 = vcombine.low %v10815_v57, %v10848_v26 }
 0x170   : > { %v3618_v28 = vpop.permute.xlu1 %3617  ;;  %v10852_v14 = vpop.permute.xlu0 %2185  ;;  %7765 = vmatprep.mubr.msk.f32.mxu0 %vm8232_vm8, %v13110_v48  ;;  %v1230_v32 = vrot.slane %v1228_v50, 2  ;;  %v3331_v42 = vcombine.low %v3323_v61, %v3330_v62  ;;  %v1223_v61 = vsel %vm8444_vm6, %v7598_v54, %v1222_v6  ;;  %v363_v62 = vld [vmem:[%s8304_s14 + $0xf0] sm:$0xff]  ;;  %v10916_v6 = vsel %vm8444_vm6, %v1227_v12, %v1228_v50 }
 0x171   : > { %v4147_v18 = vsel %vm4133_vm11, %v4121_v27, %v10786_v22  ;;  %v2866_v54 = vrot.slane %v2858_v13, %v8307_v5  ;;  %v10930_v44 = vrot.slane %v363_v62, %v8307_v5  ;;  %v1234_v50 = vrot.slane %v10887_v4, 7 }
 0x172   : > { %3770 = vrot.lane.b32.xlu1 %v3686_v25, %s8225_s18  ;;  %2690 = vrot.lane.b32.xlu0 %v2605_v49, %s8223_s16  ;;  %v2622_v25 = vcombine.low %v10608_v16, %v10725_v60  ;;  %v10890_v49 = vrot.slane %v3566_v52, %v8307_v5  ;;  %v2857_v52 = vcombine.low %v10830_v51, %v10874_v3 }
 0x173   : > { %v10920_v7 = vsel %vm8444_vm6, %v1230_v32, %v1231_v33  ;;  %v3826_v57 = vcombine.low %v1223_v61, %v10908_v1  ;;  %v3332_v22 = vcombine.low %v10766_v17, %v10775_v55  ;;  %v3333_v13 = vcombine.low %v10779_v10, %v1223_v61 }
 0x174   : > { %v3757_v36 = vpop.permute.xlu1 %3756  ;;  %v10879_v43 = vpop.permute.xlu0 %2676  ;;  %v3695_v30 = vcombine.low %v10893_v40, %v10890_v49  ;;  %v3827_v32 = vcombine.low %v10916_v6, %v10920_v7  ;;  %v7613_v40 = vcombine.high %v10687_v15, %v10769_v20  ;;  %v3567_v17 = vcombine.low %v10848_v26, %v10887_v4 }
 0x175   : > { %v10953_v55 = vcombine.high %v10896_v0, %v10896_v0  ;;  %v3696_v10 = vcombine.low %v10896_v0, %v10930_v44  ;;  %v2873_v20 = vrot.slane %v2859_v56, %v8307_v5  ;;  %v1237_v26 = vrot.slane %v10896_v0, 7 }
 0x176   : > { %3925 = vrot.lane.b32.xlu1 %v3825_v31, %s8229_s22  ;;  %2925 = vrot.lane.b32.xlu0 %v2848_v19, %s8224_s17  ;;  %v4173_v31 = vsel %vm4159_vm12, %v4147_v18, %v10818_v47  ;;  %v1233_v47 = vrot.slane %v1231_v33, 2  ;;  %v1236_v33 = vrot.slane %v1234_v50, 2  ;;  %v10965_v61 = vcombine.high %v10930_v44, %v10930_v44 }
 0x177   : > { %v4199_v12 = vsel %vm4185_vm13, %v4173_v31, %v3618_v28  ;;  %v3834_v27 = vrot.slane %v3826_v57, %v8307_v5  ;;  %v3841_v18 = vrot.slane %v3827_v32, %v8307_v5  ;;  %v3347_v56 = vrot.slane %v3333_v13, %v8307_v5 }
 0x178   : > { %v3912_v19 = vpop.permute.xlu1 %3911  ;;  %v10926_v37 = vpop.permute.xlu0 %2911  ;;  %v4225_v59 = vsel %vm4211_vm14, %v4199_v12, %v3757_v36  ;;  %v1244_v36 = vcombine.high %v363_v62, %v363_v62  ;;  %v3340_v62 = vrot.slane %v3332_v22, %v8307_v5  ;;  %v10979_v31 = vrot.slane %v3567_v17, %v8307_v5 }
 0x179   : > { %v4251_v28 = vsel %vm4237_vm15, %v4225_v59, %v3912_v19  ;;  %v10976_v19 = vrot.slane %v7613_v40, %v8307_v5  ;;  %v10983_v12 = vsel %vm8444_vm6, %v1233_v47, %v1234_v50  ;;  %v10993_v22 = vrot.slane %v3696_v10, %v8307_v5 }
 0x17a   : > { %4046 = vrot.lane.b32.xlu1 %v3971_v29, %s8227_s20  ;;  %3416 = vrot.lane.b32.xlu0 %v3331_v42, %s8228_s21  ;;  %v10997_v13 = vsel %vm8444_vm6, %v1236_v33, %v1237_v26  ;;  %v1240_v59 = vrot.slane %v10953_v55, 7  ;;  %v11001_v50 = vrot.slane %v1244_v36, %v8307_v5  ;;  %v1239_v47 = vrot.slane %v1237_v26, 2 }
 0x17b   : > { %v7599_v40 = vrot.slane %v10930_v44, 9  ;;  %v1280_v17 = vrot.slane %v10965_v61, 7  ;;  %v7614_v10 = vcombine.high %v10896_v0, %v10930_v44  ;;  %v11018_v36 = vcombine.low %v2866_v54, %v2873_v20 }
 0x17c   : > { %v4033_v29 = vpop.permute.xlu1 %4032  ;;  %v10956_v42 = vpop.permute.xlu0 %3402  ;;  %v3565_v60 = vcombine.low %v10794_v24, %v10976_v19  ;;  %v3349_v54 = vcombine.low %v10908_v1, %v10916_v6  ;;  %v11034_v44 = vcombine.high %v11001_v50, %v11001_v50  ;;  %v13131_v1 = vcombine.low %v13130_v45, %v9687_v39 }
 0x17d   : > { %v4277_v15 = vsel %vm4263_vm0, %v4251_v28, %v4033_v29  ;;  %v2875_v28 = vcombine.low %v10887_v4, %v10896_v0  ;;  %v3842_v29 = vcombine.low %v3834_v27, %v3841_v18  ;;  %v2148_v4 = vcombine.low %v10712_v8, %v10835_v35  ;;  %v11060_v18 = vld [vmem:[%s13069_s2] ss:$0 sm:$0xff] }
 0x17e   : > { %3633 = vrot.lane.b32.xlu1 %v10860_v11, %s8222_s15  ;;  %2201 = vrot.lane.b32.xlu0 %v2131_v41, %s8226_s19  ;;  %v10986_v41 = vld [vmem:[%s8304_s14 + $0xf8] sm:$0xff]  ;;  %v3704_v8 = vcombine.low %v10979_v31, %v10993_v22  ;;  %v11040_v35 = vsel %vm8444_vm6, %v1239_v47, %v1240_v59  ;;  %v1281_v20 = vsel %vm8444_vm6, %v7599_v40, %v1280_v17 }
 0x17f   : > { %7766 = vmatmul.mubr.msk.f32.gmra.mrb[26].mxu0 %vm4301_vm1, %v4277_v15  ;;  %v11016_v33 = vrot.slane %v10986_v41, %v8307_v5  ;;  %v3348_v15 = vcombine.low %v3340_v62, %v3347_v56  ;;  %v11045_v27 = vrot.slane %v2875_v28, %v8307_v5  ;;  %v4096_v6 = vsel %vm4081_vm9, %v13131_v1, %v10852_v14 }
 0x180   : > { %v3620_v57 = vpop.permute.xlu1 %3619  ;;  %v10988_v32 = vpop.permute.xlu0 %2187  ;;  %7768 = vmatprep.mubr.msk.f32.mxu0 %vm8232_vm8, %v13110_v48  ;;  %v11063_v62 = vrot.slane %v7614_v10, %v8307_v5  ;;  %v1283_v56 = vrot.slane %v11001_v50, 7  ;;  %v4122_v45 = vsel %vm4107_vm10, %v4096_v6, %v10879_v43  ;;  %v3350_v3 = vcombine.low %v10920_v7, %v10983_v12 }
 0x181   : > { %v1289_v39 = vrot.slane %v11016_v33, 7  ;;  %v4148_v19 = vsel %vm4133_vm11, %v4122_v45, %v10926_v37  ;;  %v3844_v40 = vcombine.low %v11040_v35, %v1281_v20  ;;  %v1282_v28 = vrot.slane %v1280_v17, 2 }
 0x182   : > { %3772 = vrot.lane.b32.xlu1 %v3695_v30, %s8225_s18  ;;  %2692 = vrot.lane.b32.xlu0 %v2622_v25, %s8223_s16  ;;  %v3843_v30 = vcombine.low %v10983_v12, %v10997_v13  ;;  %v1286_v43 = vrot.slane %v11034_v44, 7  ;;  %v1261_v37 = vcombine.high %v10986_v41, %v10986_v41  ;;  %v1285_v17 = vrot.slane %v1283_v56, 2 }
 0x183   : > { %v1291_v20 = vrot.slane %v1289_v39, 2 }
 0x184   : > { %v3759_v26 = vpop.permute.xlu1 %3758  ;;  %v11024_v16 = vpop.permute.xlu0 %2678  ;;  %v11070_v14 = vrot.slane %v3843_v30, %v8307_v5  ;;  %v11088_v30 = vrot.slane %v3349_v54, %v8307_v5 }
 0x186   : > { %3927 = vrot.lane.b32.xlu1 %v3842_v29, %s8229_s22  ;;  %2927 = vrot.lane.b32.xlu0 %v2857_v52, %s8224_s17  ;;  %v11076_v52 = vcombine.high %v11016_v33, %v11016_v33  ;;  %v4174_v29 = vsel %vm4159_vm12, %v4148_v19, %v10956_v42  ;;  %v3705_v42 = vcombine.low %v10965_v61, %v11001_v50 }
 0x187   : > { %v4200_v1 = vsel %vm4185_vm13, %v4174_v29, %v3620_v57  ;;  %v11102_v57 = vrot.slane %v3350_v3, %v8307_v5  ;;  %v1287_v3 = vsel %vm8444_vm6, %v1285_v17, %v1286_v43  ;;  %v3582_v17 = vcombine.low %v10890_v49, %v10979_v31 }
 0x188   : > { %v3914_v59 = vpop.permute.xlu1 %3913  ;;  %v4447_v47 = vpop.f32.mrb[0].mxu0  ;;  %v4226_v6 = vsel %vm4211_vm14, %v4200_v1, %v3759_v26  ;;  %v1292_v45 = vrot.slane %v11076_v52, 7  ;;  %v3858_v26 = vrot.slane %v3844_v40, %v8307_v5  ;;  %v1284_v1 = vsel %vm8444_vm6, %v1282_v28, %v1283_v56 }
 0x189   : > { %v4448_v10 = vadd.f32 %v11060_v18, %v4447_v47  ;;  %v11085_v7 = vpop.permute.xlu0 %2913  ;;  %v7728_v12 = vpop.f32.mrb[1].mxu0  ;;  %v4252_v41 = vsel %vm4237_vm15, %v4226_v6, %v3914_v59  ;;  %v1288_v47 = vrot.slane %v1286_v43, 2  ;;  %v11121_v40 = vrot.slane %v3705_v42, %v8307_v5 }
 0x18a   : > { %4048 = vrot.lane.b32.xlu1 %v11018_v36, %s8227_s20  ;;  %3418 = vrot.lane.b32.xlu0 %v3348_v15, %s8228_s21  ;;  %v3706_v15 = vcombine.low %v11034_v44, %v11016_v33  ;;  %v1293_v56 = vsel %vm8444_vm6, %v1291_v20, %v1292_v45  ;;  %v11126_v28 = vrot.slane %v1261_v37, %v8307_v5 }
 0x18b   : > { %vm4571_vm2 = vcmp.ge.f32.partialorder %v4448_v10, 0.0  ;;  %v4596_v54 = vmul.f32 0.1, %v4448_v10  ;;  %v3365_v37 = vcombine.low %v11088_v30, %v11102_v57  ;;  %v3860_v20 = vcombine.low %v1284_v1, %v1287_v3 }
 0x18c   : > { %v4035_v19 = vpop.permute.xlu1 %4034  ;;  %v3859_v30 = vcombine.low %v11070_v14, %v3858_v26  ;;  %v1295_v14 = vrot.slane %v11126_v28, 7 }
 0x18d   : > { %v4621_v29 = vsel %vm4571_vm2, %v4448_v10, %v4596_v54  ;;  %v4278_v61 = vsel %vm4263_vm0, %v4252_v41, %v4035_v19  ;;  %v3405_v12 = vpop.permute.xlu0 %3404  ;;  %v1571_v10 = vcombine.low %v9690_v23, %v9814_v38  ;;  %v11138_v23 = vrot.slane %v3706_v15, %v8307_v5 }
 0x18e   : > { %v4671_v25 = vcombine.high %v4621_v29, %v4621_v29  ;;  %v11111_v59 = vrot.slane %v4621_v29, %v8307_v5  ;;  %3635 = vrot.lane.b32.xlu1 %v3565_v60, %s8222_s15  ;;  %2203 = vrot.lane.b32.xlu0 %v2148_v4, %s8226_s19  ;;  %v1290_v38 = vsel %vm8444_vm6, %v1288_v47, %v1289_v39 }
 0x18f   : > { %7769 = vmatmul.mubr.msk.f32.gmra.mrb[28].mxu0 %vm4301_vm1, %v4278_v61  ;;  %v3861_v15 = vcombine.low %v1290_v38, %v1293_v56  ;;  %v3982_v47 = vcombine.low %v11016_v33, %v11076_v52  ;;  %v11171_v29 = vcombine.high %v11126_v28, %v11126_v28  ;;  %v4097_v61 = vsel %vm4081_vm9, %v1571_v10, %v10988_v32 }
 0x190   : > { %v11129_v60 = vrot.slane %v4671_v25, %v8307_v5  ;;  %v11133_v4 = vcombine.high %v11111_v59, %v11111_v59  ;;  %v3622_v43 = vpop.permute.xlu1 %3621  ;;  %7771 = vmatprep.mubr.msk.f32.mxu0 %vm8232_vm8, %v13110_v48  ;;  %v3980_v25 = vcombine.low %v11045_v27, %v11063_v62  ;;  %v13132_v62 = vcombine.low %v10733_v9, %v10830_v51 }
 0x191   : > { %v11142_v42 = vpop.permute.xlu0 %2189  ;;  %v3981_v9 = vcombine.low %v11001_v50, %v11034_v44  ;;  %v11177_v51 = vrot.slane %v1292_v45, 2  ;;  %v11185_v3 = vrot.slane %v3860_v20, %v8307_v5  ;;  %v4123_v56 = vsel %vm4107_vm10, %v4097_v61, %v11024_v16 }
 0x192   : > { %v11152_v6 = vcombine.high %v11129_v60, %v11129_v60  ;;  %v5089_v54 = vrot.slane %v11133_v4, 7  ;;  %v5353_v39 = vcombine.low %v11111_v59, %v11133_v4  ;;  %v4452_v41 = vpop.f32.mrb[2].mxu0  ;;  %3774 = vrot.lane.b32.xlu1 %v3704_v8, %s8225_s18  ;;  %2694 = vrot.lane.b32.xlu0 %v13132_v62, %s8223_s16  ;;  %v3721_v8 = vcombine.low %v11121_v40, %v11138_v23 }
 0x193   : > { %v4453_v19 = vadd.f32 %v11060_v18, %v4452_v41  ;;  %v7731_v57 = vpop.f32.mrb[3].mxu0  ;;  %v5092_v50 = vrot.slane %v11129_v60, 7  ;;  %v4149_v44 = vsel %vm4133_vm11, %v4123_v56, %v11085_v7  ;;  %v11198_v10 = vrot.slane %v3861_v15, %v8307_v5 }
 0x194   : > { %v3761_v22 = vpop.permute.xlu1 %3760  ;;  %v5091_v38 = vrot.slane %v5089_v54, 2  ;;  %v5354_v32 = vcombine.low %v11129_v60, %v11152_v6  ;;  %v1298_v16 = vrot.slane %v11171_v29, 7  ;;  %v4175_v20 = vsel %vm4159_vm12, %v4149_v44, %v3405_v12 }
 0x195   : > { %vm4572_vm3 = vcmp.ge.f32.partialorder %v4453_v19, 0.0  ;;  %v4597_v26 = vmul.f32 0.1, %v4453_v19  ;;  %v11182_v1 = vpop.permute.xlu0 %2680  ;;  %v7642_v57 = vrot.slane %v11111_v59, 9  ;;  %v11210_v7 = vrot.slane %v5353_v39, %v8307_v5 }
 0x196   : > { %3929 = vrot.lane.b32.xlu1 %v3859_v30, %s8229_s22  ;;  %2929 = vrot.lane.b32.xlu0 %v11018_v36, %s8224_s17  ;;  %v6037_v36 = vcombine.low %v11133_v4, %v11129_v60  ;;  %v5095_v30 = vrot.slane %v11152_v6, 7  ;;  %v11216_v12 = vrot.slane %v5354_v32, %v8307_v5  ;;  %v5094_v61 = vrot.slane %v5092_v50, 2 }
 0x197   : > { %v4622_v45 = vsel %vm4572_vm3, %v4453_v19, %v4597_v26  ;;  %v4201_v19 = vsel %vm4185_vm13, %v4175_v20, %v3622_v43  ;;  %v5093_v59 = vsel %vm8444_vm6, %v5091_v38, %v5092_v50  ;;  %v1297_v43 = vrot.slane %v1295_v14, 2 }
 0x198   : > { %v11203_v41 = vrot.slane %v4622_v45, %v8307_v5  ;;  %v3916_v62 = vpop.permute.xlu1 %3915  ;;  %v4227_v4 = vsel %vm4211_vm14, %v4201_v19, %v3761_v22  ;;  %v5097_v38 = vrot.slane %v5095_v30, 2  ;;  %v4688_v56 = vcombine.high %v4622_v45, %v4622_v45 }
 0x199   : > { %v11213_v15 = vpop.permute.xlu0 %2915  ;;  %v4253_v32 = vsel %vm4237_vm15, %v4227_v4, %v3916_v62 }
 0x19a   : > { %v11220_v26 = vcombine.high %v11203_v41, %v11203_v41  ;;  %v5098_v60 = vrot.slane %v11203_v41, 7  ;;  %4050 = vrot.lane.b32.xlu1 %v3980_v25, %s8227_s20  ;;  %3420 = vrot.lane.b32.xlu0 %v3365_v37, %s8228_s21  ;;  %v6038_v39 = vcombine.low %v11152_v6, %v11203_v41  ;;  %v11236_v25 = vrot.slane %v6037_v36, %v8307_v5 }
 0x19b   : > { %v5090_v37 = vsel %vm8444_vm6, %v7642_v57, %v5089_v54  ;;  %v5096_v54 = vsel %vm8444_vm6, %v5094_v61, %v5095_v30  ;;  %v3366_v36 = vcombine.low %v10997_v13, %v11040_v35  ;;  %v3583_v13 = vcombine.low %v10896_v0, %v10953_v55 }
 0x19c   : > { %v4037_v44 = vpop.permute.xlu1 %4036  ;;  %v5370_v22 = vcombine.low %v11203_v41, %v11220_v26  ;;  %v11244_v6 = vrot.slane %v6038_v39, %v8307_v5  ;;  %v5677_v19 = vcombine.low %v5090_v37, %v5093_v59  ;;  %v5099_v62 = vsel %vm8444_vm6, %v5097_v38, %v5098_v60 }
 0x19d   : > { %v4279_v50 = vsel %vm4263_vm0, %v4253_v32, %v4037_v44  ;;  %v3407_v20 = vpop.permute.xlu0 %3406  ;;  %v5678_v57 = vcombine.low %v5096_v54, %v5099_v62  ;;  %v5101_v49 = vrot.slane %v11220_v26, 7  ;;  %v1296_v30 = vsel %vm8444_vm6, %v11177_v51, %v1295_v14 }
 0x19e   : > { %3637 = vrot.lane.b32.xlu1 %v3582_v17, %s8222_s15  ;;  %2205 = vrot.lane.b32.xlu0 %v10838_v53, %s8226_s19  ;;  %v6053_v45 = vcombine.low %v11236_v25, %v11244_v6  ;;  %v3989_v53 = vrot.slane %v3981_v9, %v8307_v5  ;;  %v3996_v17 = vrot.slane %v3982_v47, %v8307_v5 }
 0x19f   : > { %7772 = vmatmul.mubr.msk.f32.gmra.mrb[30].mxu0 %vm4301_vm1, %v4279_v50  ;;  %v1299_v9 = vsel %vm8444_vm6, %v1297_v43, %v1298_v16  ;;  %v11281_v33 = vrot.slane %v5677_v19, %v8307_v5  ;;  %v11284_v47 = vrot.slane %v5678_v57, %v8307_v5  ;;  %v11287_v61 = vrot.slane %v4688_v56, %v8307_v5 }
 0x1a0   : > { %v3624_v31 = vpop.permute.xlu1 %3623  ;;  %7774 = vmatprep.mubr.msk.f32.mxu0 %vm8232_vm8, %v13110_v48  ;;  %v3876_v55 = vcombine.low %v11185_v3, %v11198_v10  ;;  %v3722_v51 = vcombine.low %v11076_v52, %v11126_v28  ;;  %v3998_v59 = vcombine.low %v11126_v28, %v11171_v29  ;;  %v3373_v23 = vrot.slane %v3366_v36, %v8307_v5 }
 0x1a1   : > { %v11271_v35 = vpop.permute.xlu0 %2191  ;;  %v5693_v4 = vcombine.low %v11281_v33, %v11284_v47  ;;  %v5103_v43 = vrot.slane %v5101_v49, 2  ;;  %v4098_v52 = vsel %vm4081_vm9, %v10045_v58, %v11142_v42  ;;  %v5100_v3 = vrot.slane %v5098_v60, 2 }
 0x1a2   : > { %v4457_v0 = vpop.f32.mrb[4].mxu0  ;;  %3776 = vrot.lane.b32.xlu1 %v3721_v8, %s8225_s18  ;;  %2696 = vrot.lane.b32.xlu0 %v10845_v34, %s8223_s16  ;;  %v3590_v34 = vrot.slane %v3583_v13, %v8307_v5  ;;  %v3877_v8 = vcombine.low %v1296_v30, %v1299_v9  ;;  %v5104_v28 = vrot.slane %v11287_v61, 7  ;;  %v4124_v29 = vsel %vm4107_vm10, %v4098_v52, %v11182_v1 }
 0x1a3   : > { %v4458_v14 = vadd.f32 %v11060_v18, %v4457_v0  ;;  %v7734_v16 = vpop.f32.mrb[5].mxu0  ;;  %v3997_v56 = vcombine.low %v3989_v53, %v3996_v17  ;;  %v3729_v32 = vrot.slane %v3722_v51, %v8307_v5  ;;  %v4704_v58 = vcombine.high %v11287_v61, %v11287_v61 }
 0x1a4   : > { %v3763_v40 = vpop.permute.xlu1 %3762  ;;  %v4150_v42 = vsel %vm4133_vm11, %v4124_v29, %v11213_v15  ;;  %v4005_v44 = vrot.slane %v3998_v59, %v8307_v5  ;;  %v6054_v19 = vcombine.low %v11220_v26, %v11287_v61  ;;  %v3884_v15 = vrot.slane %v3877_v8, %v8307_v5 }
 0x1a5   : > { %vm4573_vm4 = vcmp.ge.f32.partialorder %v4458_v14, 0.0  ;;  %v4598_v10 = vmul.f32 0.1, %v4458_v14  ;;  %v11309_v39 = vpop.permute.xlu0 %2682  ;;  %v4176_v37 = vsel %vm4159_vm12, %v4150_v42, %v3407_v20  ;;  %v5102_v36 = vsel %vm8444_vm6, %v5100_v3, %v5101_v49 }
 0x1a6   : > { %3931 = vrot.lane.b32.xlu1 %v3876_v55, %s8229_s22  ;;  %2931 = vrot.lane.b32.xlu0 %v11045_v27, %s8224_s17  ;;  %v5105_v27 = vsel %vm8444_vm6, %v5103_v43, %v5104_v28  ;;  %v4202_v54 = vsel %vm4185_vm13, %v4176_v37, %v3624_v31  ;;  %v7643_v13 = vrot.slane %v4704_v58, 9  ;;  %v11362_v52 = vrot.slane %v5370_v22, %v8307_v5  ;;  %v13133_v37 = vld [vmem:[#allocation11_spill] sm:$0xff] }
 0x1a7   : > { %v4623_v60 = vsel %vm4573_vm4, %v4458_v14, %v4598_v10  ;;  %v4228_v17 = vsel %vm4211_vm14, %v4202_v54, %v3763_v40  ;;  %v5694_v30 = vcombine.low %v5102_v36, %v5105_v27  ;;  %v6062_v3 = vrot.slane %v6054_v19, %v8307_v5 }
 0x1a8   : > { %v4705_v1 = vcombine.high %v4623_v60, %v4623_v60  ;;  %v4712_v38 = vrot.slane %v4623_v60, %v8307_v5  ;;  %v3918_v50 = vpop.permute.xlu1 %3917 }
 0x1a9   : > { %v11330_v62 = vpop.permute.xlu0 %2917  ;;  %v4254_v31 = vsel %vm4237_vm15, %v4228_v17, %v3918_v50  ;;  %v5702_v42 = vrot.slane %v5694_v30, %v8307_v5 }
 0x1aa   : > { %v11336_v20 = vrot.slane %v4705_v1, %v8307_v5  ;;  %v4720_v57 = vcombine.high %v4712_v38, %v4712_v38  ;;  %v5108_v53 = vrot.slane %v4712_v38, 7  ;;  %4052 = vrot.lane.b32.xlu1 %v3997_v56, %s8227_s20  ;;  %3422 = vrot.lane.b32.xlu0 %v3373_v23, %s8228_s21  ;;  %v5371_v9 = vcombine.low %v4704_v58, %v4712_v38  ;;  %v13134_v1 = vld [vmem:[#allocation10_spill] sm:$0xff] }
 0x1ac   : > { %v11344_v61 = vcombine.high %v11336_v20, %v11336_v20  ;;  %v5110_v49 = vrot.slane %v5108_v53, 2  ;;  %v5111_v0 = vrot.slane %v4720_v57, 7  ;;  %v5114_v55 = vrot.slane %v11336_v20, 7  ;;  %v4039_v51 = vpop.permute.xlu1 %4038 }
 0x1ad   : > { %v4280_v14 = vsel %vm4263_vm0, %v4254_v31, %v4039_v51  ;;  %v3409_v16 = vpop.permute.xlu0 %3408  ;;  %v6055_v59 = vcombine.low %v4712_v38, %v4720_v57  ;;  %v5109_v40 = vsel %vm8444_vm6, %v7643_v13, %v5108_v53  ;;  %v11351_v23 = vrot.slane %v5371_v9, %v8307_v5 }
 0x1ae   : > { %3778 = vrot.lane.b32.xlu1 %v3729_v32, %s8225_s18  ;;  %3639 = vrot.lane.b32.xlu0 %v3590_v34, %s8222_s15  ;;  %v5112_v8 = vsel %vm8444_vm6, %v5110_v49, %v5111_v0  ;;  %v5387_v43 = vcombine.low %v4720_v57, %v11336_v20  ;;  %v5113_v34 = vrot.slane %v5111_v0, 2  ;;  %v5116_v29 = vrot.slane %v5114_v55, 2  ;;  %s8236_s18 = smov 96  }
 0x1af   : > { %7775 = vmatmul.mubr.msk.f32.gmra.mrb[32].mxu0 %vm4301_vm1, %v4280_v14  ;;  %v11367_v10 = vrot.slane %v6055_v59, %v8307_v5  ;;  %v5695_v28 = vcombine.low %v5109_v40, %v5112_v8  ;;  %v5117_v41 = vrot.slane %v11344_v61, 7  ;;  %v5386_v26 = vcombine.low %v11362_v52, %v11351_v23 }
 0x1b0   : > { %v3626_v56 = vpop.permute.xlu1 %3625  ;;  %7777 = vmatprep.mubr.msk.f32.mxu0 %vm8232_vm8, %v13110_v48  ;;  %v11372_v32 = vrot.slane %v5387_v43, %v8307_v5  ;;  %v1605_v38 = vcombine.low %v13134_v1, %v13133_v37  ;;  %v5115_v53 = vsel %vm8444_vm6, %v5113_v34, %v5114_v55  ;;  %v6071_v55 = vcombine.low %v11336_v20, %v11344_v61  ;;  %v7005_v1 = vld [vmem:[%s13070_s3] sm:$0xff] }
 0x1b1   : > { %v11377_v22 = vpop.permute.xlu0 %2193  ;;  %v6070_v58 = vcombine.low %v6062_v3, %v11367_v10  ;;  %v11382_v60 = vrot.slane %v5695_v28, %v8307_v5  ;;  %v5119_v8 = vrot.slane %v5117_v41, 2 }
 0x1b2   : > { %v4462_v50 = vpop.f32.mrb[6].mxu0  ;;  %4054 = vrot.lane.b32.xlu1 %v4005_v44, %s8227_s20  ;;  %3933 = vrot.lane.b32.xlu0 %v3884_v15, %s8229_s22  ;;  %v6397_v27 = vcombine.low %v11351_v23, %v11372_v32  ;;  %v5118_v44 = vsel %vm8444_vm6, %v5116_v29, %v5117_v41  ;;  %v4099_v25 = vsel %vm4081_vm9, %v1605_v38, %v11271_v35  ;;  %v7006_v38 = vld [vmem:[%s13070_s3 + $0x8] sm:$0xff]  ;;  %s8235_s22 = smov 64  }
 0x1b3   : > { %v4463_v19 = vadd.f32 %v11060_v18, %v4462_v50  ;;  %v7737_v54 = vpop.f32.mrb[7].mxu0  ;;  %v7880_v36 = vpack.i.bf16 %v6070_v58, %v6053_v45  ;;  %v5710_v57 = vcombine.low %v5702_v42, %v11382_v60  ;;  %v5711_v6 = vcombine.low %v5115_v53, %v5118_v44  ;;  %v7007_v50 = vld [vmem:[%s13070_s3 + $0x10] sm:$0xff] }
 0x1b4   : > { %v3765_v17 = vpop.permute.xlu1 %3764  ;;  %v4125_v45 = vsel %vm4107_vm10, %v4099_v25, %v11309_v39  ;;  %v11442_v37 = vrot.slane %v6071_v55, %v8307_v5 }
 0x1b5   : > { %vm4574_vm5 = vcmp.ge.f32.partialorder %v4463_v19, 0.0  ;;  %v4599_v15 = vmul.f32 0.1, %v4463_v19  ;;  %v11399_v13 = vpop.permute.xlu0 %2684  ;;  %v7875_v31 = vpack.i.bf16 %v5710_v57, %v5693_v4  ;;  %v4151_v9 = vsel %vm4133_vm11, %v4125_v45, %v11330_v62  ;;  %v7008_v57 = vld [vmem:[%s13070_s3 + $0x18] sm:$0xff] }
 0x1b6   : > { %7881 = vrot.lane.b32.xlu1 %v7880_v36, %s8227_s20  ;;  %v11414_v47 = vrot.slane %v5711_v6, %v8307_v5  ;;  %v4177_v35 = vsel %vm4159_vm12, %v4151_v9, %v3409_v16  ;;  %v7820_v36 = vpack.c.bf16 %v7006_v38, %v7005_v1  ;;  %v7823_v6 = vpack.c.bf16 %v7008_v57, %v7007_v50 }
 0x1b7   : > { %v4624_v30 = vsel %vm4574_vm5, %v4463_v19, %v4599_v15  ;;  %7876 = vrot.lane.b32.xlu0 %v7875_v31, %s8228_s21  ;;  %v4203_v39 = vsel %vm4185_vm13, %v4177_v35, %v3626_v56 }
 0x1b8   : > { %v4722_v49 = vcombine.high %v4624_v30, %v4624_v30  ;;  %v4729_v0 = vrot.slane %v4624_v30, %v8307_v5  ;;  %v3920_v33 = vpop.permute.xlu1 %3919  ;;  %v4229_v59 = vsel %vm4211_vm14, %v4203_v39, %v3765_v17  ;;  %v6493_v43 = vcombine.low %v11382_v60, %v11414_v47  ;;  %7821 = vmatpush1.bf16.msra.mxu1 %v7820_v36 }
 0x1b9   : > { %v2920_v4 = vpop.permute.xlu0 %2919  ;;  %v4255_v3 = vsel %vm4237_vm15, %v4229_v59, %v3920_v33  ;;  %v4100_v59 = vsel %vm4081_vm9, %v10303_v63, %v11377_v22 }
 0x1ba   : > { %v11421_v51 = vrot.slane %v4722_v49, %v8307_v5  ;;  %v5120_v14 = vrot.slane %v4729_v0, 7  ;;  %v5388_v62 = vcombine.low %v11344_v61, %v4729_v0  ;;  %v4737_v40 = vcombine.high %v4729_v0, %v4729_v0 }
 0x1bb   : > { %v13135_v49 = vmov 0.0|0.0  }
 0x1bc   : > { %v11429_v16 = vcombine.high %v11421_v51, %v11421_v51  ;;  %v5122_v20 = vrot.slane %v5120_v14, 2  ;;  %v4041_v28 = vpop.permute.xlu1 %4040  ;;  %v11433_v34 = vrot.slane %v5388_v62, %v8307_v5  ;;  %v5123_v56 = vrot.slane %v4737_v40, 7  ;;  %7822 = vmatprep.subr.bf16.mxu1 %v13135_v49 }
 0x1bd   : > { %v4281_v61 = vsel %vm4263_vm0, %v4255_v3, %v4041_v28  ;;  %v3411_v29 = vpop.permute.xlu0 %3410  ;;  %v6072_v58 = vcombine.low %v4729_v0, %v4737_v40  ;;  %v5121_v41 = vsel %vm8444_vm6, %v5119_v8, %v5120_v14  ;;  %7824 = vmatpush1.bf16.msra.mxu1 %v7823_v6  ;;  %v7010_v3 = vld [vmem:[%s13070_s3 + $0x28] sm:$0xff]  ;;  %v7644_v36 = vrot.slane %v11421_v51, 9 }
 0x1be   : > { %v5404_v42 = vcombine.low %v11421_v51, %v11429_v16  ;;  %7778 = vmatmul.mubr.msk.f32.gmra.mrb[34].mxu0 %vm4301_vm1, %v4281_v61  ;;  %v5124_v54 = vsel %vm8444_vm6, %v5122_v20, %v5123_v56  ;;  %v5403_v53 = vcombine.low %v11372_v32, %v11433_v34  ;;  %7825 = vmatprep.subr.bf16.mxu1 %v13135_v49  ;;  %v5127_v40 = vrot.slane %v11429_v16, 7  ;;  %v7009_v20 = vld [vmem:[%s13070_s3 + $0x20] sm:$0xff] }
 0x1bf   : > { %7780 = vmatprep.mubr.msk.f32.mxu0 %vm8232_vm8, %v13110_v48  ;;  %v11456_v19 = vrot.slane %v6072_v58, %v8307_v5  ;;  %v5712_v15 = vcombine.low %v5121_v41, %v5124_v54  ;;  %v7826_v56 = vpack.c.bf16 %v7010_v3, %v7009_v20  ;;  %v13136_v20 = vld [vmem:[#allocation4_spill] sm:$0xff] }
 0x1c0   : > { %v3628_v17 = vpop.permute.xlu1 %3627  ;;  %v11466_v44 = vrot.slane %v5404_v42, %v8307_v5  ;;  %v5129_v54 = vrot.slane %v5127_v40, 2  ;;  %v1639_v3 = vcombine.low %v13136_v20, %v10314_v46 }
 0x1c1   : > { %v11468_v31 = vpop.permute.xlu0 %2195  ;;  %v6087_v25 = vcombine.low %v11442_v37, %v11456_v19  ;;  %v11475_v9 = vrot.slane %v5712_v15, %v8307_v5  ;;  %7827 = vmatpush1.bf16.msra.mxu1 %v7826_v56 }
 0x1c2   : > { %v4467_v45 = vpop.f32.mrb[8].mxu0  ;;  %v6398_v30 = vcombine.low %v11433_v34, %v11466_v44  ;;  %7828 = vmatprep.subr.bf16.mxu1 %v13135_v49 }
 0x1c3   : > { %v4468_v0 = vadd.f32 %v11060_v18, %v4467_v45  ;;  %v7740_v33 = vpop.f32.mrb[9].mxu0  ;;  %v5727_v39 = vcombine.low %v11414_v47, %v11475_v9 }
 0x1c4   : > { %v3767_v35 = vpop.permute.xlu1 %3766  ;;  %v7885_v55 = vpack.i.bf16 %v6398_v30, %v6397_v27  ;;  %v4126_v27 = vsel %vm4107_vm10, %v4100_v59, %v11399_v13  ;;  %v6589_v59 = vcombine.low %v11367_v10, %v11442_v37 }
 0x1c5   : > { %vm4575_vm7 = vcmp.ge.f32.partialorder %v4468_v0, 0.0  ;;  %v4600_v14 = vmul.f32 0.1, %v4468_v0  ;;  %v11484_v62 = vpop.permute.xlu0 %2686  ;;  %v4152_v63 = vsel %vm4133_vm11, %v4126_v27, %v2920_v4 }
 0x1c6   : > { %7886 = vrot.lane.b32.xlu0 %v7885_v55, %s8233_s26  ;;  %v4178_v58 = vsel %vm4159_vm12, %v4152_v63, %v3411_v29  ;;  %v5128_v55 = vsel %vm8444_vm6, %v7644_v36, %v5127_v40  ;;  %v4101_v36 = vsel %vm4081_vm9, %v1639_v3, %v11468_v31  ;;  %v7014_v31 = vld [vmem:[%s13070_s3 + $0x48] sm:$0xff] }
 0x1c7   : > { %v4625_v8 = vsel %vm4575_vm7, %v4468_v0, %v4600_v14  ;;  %v4204_v13 = vsel %vm4185_vm13, %v4178_v58, %v3628_v17 }
 0x1c8   : > { %v4739_v22 = vcombine.high %v4625_v8, %v4625_v8  ;;  %v4746_v28 = vrot.slane %v4625_v8, %v8307_v5  ;;  %v3922_v61 = vpop.permute.xlu1 %3921  ;;  %v4230_v50 = vsel %vm4211_vm14, %v4204_v13, %v3767_v35 }
 0x1c9   : > { %v11503_v41 = vpop.permute.xlu0 %2921  ;;  %v4256_v29 = vsel %vm4237_vm15, %v4230_v50, %v3922_v61 }
 0x1ca   : > { %v11507_v42 = vrot.slane %v4739_v22, %v8307_v5  ;;  %v5130_v1 = vrot.slane %v4746_v28, 7  ;;  %v4754_v38 = vcombine.high %v4746_v28, %v4746_v28  ;;  %v6088_v4 = vcombine.low %v11429_v16, %v4746_v28 }
 0x1cc   : > { %v4043_v57 = vpop.permute.xlu1 %4042  ;;  %v5133_v15 = vrot.slane %v4754_v38, 7  ;;  %v6089_v17 = vcombine.low %v4754_v38, %v11507_v42  ;;  %v5132_v6 = vrot.slane %v5130_v1, 2  ;;  %v6096_v0 = vrot.slane %v6088_v4, %v8307_v5 }
 0x1cd   : > { %v4282_v45 = vsel %vm4263_vm0, %v4256_v29, %v4043_v57  ;;  %v3413_v30 = vpop.permute.xlu0 %3412  ;;  %v5131_v16 = vsel %vm8444_vm6, %v5129_v54, %v5130_v1  ;;  %v5136_v33 = vrot.slane %v11507_v42, 7  ;;  %v5405_v8 = vcombine.low %v4746_v28, %v4754_v38 }
 0x1ce   : > { %7781 = vmatmul.mubr.msk.f32.gmra.mrb[36].mxu0 %vm4301_vm1, %v4282_v45  ;;  %v5135_v51 = vrot.slane %v5133_v15, 2  ;;  %v11522_v35 = vrot.slane %v6089_v17, %v8307_v5  ;;  %v6590_v14 = vcombine.low %v11456_v19, %v6096_v0  ;;  %v5728_v27 = vcombine.low %v5128_v55, %v5131_v16  ;;  %v7011_v19 = vld [vmem:[%s13070_s3 + $0x30] sm:$0xff]  ;;  %v7013_v45 = vld [vmem:[%s13070_s3 + $0x40] sm:$0xff] }
 0x1cf   : > { %7783 = vmatprep.mubr.msk.f32.mxu0 %vm8232_vm8, %v13110_v48  ;;  %v11540_v10 = vrot.slane %v5405_v8, %v8307_v5  ;;  %v5134_v28 = vsel %vm8444_vm6, %v5132_v6, %v5133_v15  ;;  %v11553_v50 = vcombine.high %v11507_v42, %v11507_v42  ;;  %v4127_v15 = vsel %vm4107_vm10, %v4101_v36, %v11484_v62  ;;  %v7016_v8 = vld [vmem:[%s13070_s3 + $0x58] sm:$0xff]  ;;  %v7017_v36 = vld [vmem:[%s13070_s3 + $0x60] sm:$0xff] }
 0x1d0   : > { %v3630_v63 = vpop.permute.xlu1 %3629  ;;  %v6104_v22 = vcombine.low %v6096_v0, %v11522_v35  ;;  %v5137_v61 = vsel %vm8444_vm6, %v5135_v51, %v5136_v33  ;;  %v7895_v56 = vpack.i.bf16 %v6590_v14, %v6589_v59  ;;  %v5736_v58 = vrot.slane %v5728_v27, %v8307_v5 }
 0x1d1   : > { %v11536_v40 = vpop.permute.xlu0 %2197  ;;  %v5729_v1 = vcombine.low %v5134_v28, %v5137_v61  ;;  %v11559_v37 = vcombine.low %v11466_v44, %v11540_v10  ;;  %v4153_v0 = vsel %vm4133_vm11, %v4127_v15, %v11503_v41  ;;  %v5139_v51 = vrot.slane %v11553_v50, 7 }
 0x1d2   : > { %v4472_v13 = vpop.f32.mrb[10].mxu0  ;;  %v11547_v46 = vpack.i.bf16 %v6104_v22, %v6087_v25  ;;  %7657 = vmatprep.mubr.msk.f32.mxu1 %vm4159_vm12, %v6104_v22  ;;  %7896 = vrot.lane.b32.xlu0 %v7895_v56, %s8234_s12  ;;  %v6494_v54 = vcombine.low %v11475_v9, %v5736_v58  ;;  %v7012_v25 = vld [vmem:[%s13070_s3 + $0x38] sm:$0xff]  ;;  %v4179_v60 = vsel %vm4159_vm12, %v4153_v0, %v3413_v30  ;;  %v7015_v30 = vld [vmem:[%s13070_s3 + $0x50] sm:$0xff]  ;;  %v5138_v20 = vrot.slane %v5136_v33, 2 }
 0x1d3   : > { %v4473_v38 = vadd.f32 %v11060_v18, %v4472_v13  ;;  %v7743_v4 = vpop.f32.mrb[11].mxu0  ;;  %v11570_v57 = vrot.slane %v5729_v1, %v8307_v5  ;;  %v7829_v16 = vpack.c.bf16 %v7012_v25, %v7011_v19  ;;  %v7832_v27 = vpack.c.bf16 %v7014_v31, %v7013_v45 }
 0x1d4   : > { %v3769_v29 = vpop.permute.xlu1 %3768  ;;  %v7890_v17 = vpack.i.bf16 %v6494_v54, %v6493_v43  ;;  %v4205_v3 = vsel %vm4185_vm13, %v4179_v60, %v3630_v63  ;;  %v5421_v47 = vcombine.low %v11507_v42, %v11553_v50  ;;  %v5141_v28 = vrot.slane %v5139_v51, 2 }
 0x1d5   : > { %vm4576_vm2 = vcmp.ge.f32.partialorder %v4473_v38, 0.0  ;;  %v4601_v44 = vmul.f32 0.1, %v4473_v38  ;;  %v11577_v6 = vpop.permute.xlu0 %2688  ;;  %v11588_v62 = vcombine.low %v5736_v58, %v11570_v57  ;;  %7830 = vmatpush1.bf16.msra.mxu1 %v7829_v16  ;;  %v4231_v58 = vsel %vm4211_vm14, %v4205_v3, %v3769_v29  ;;  %v7018_v29 = vld [vmem:[%s13070_s3 + $0x68] sm:$0xff]  ;;  %v7020_v3 = vld [vmem:[%s13070_s3 + $0x78] sm:$0xff] }
 0x1d6   : > { %7891 = vrot.lane.b32.xlu1 %v7890_v17, %s8235_s22  ;;  %7831 = vmatprep.subr.bf16.mxu1 %v13135_v49  ;;  %v7835_v13 = vpack.c.bf16 %v7016_v8, %v7015_v30  ;;  %v5140_v45 = vsel %vm8444_vm6, %v5138_v20, %v5139_v51  ;;  %v7019_v20 = vld [vmem:[%s13070_s3 + $0x70] sm:$0xff] }
 0x1d7   : > { %v4626_v43 = vsel %vm4576_vm2, %v4473_v38, %v4601_v44  ;;  %v11598_v41 = vpack.i.bf16 %v11588_v62, %v5727_v39  ;;  %v11633_v44 = vrot.slane %v5421_v47, %v8307_v5  ;;  %vm6967_vm2 = vcmask 785408  }
 0x1d8   : > { %v4756_v55 = vcombine.high %v4626_v43, %v4626_v43  ;;  %v4763_v14 = vrot.slane %v4626_v43, %v8307_v5  ;;  %v3924_v59 = vpop.permute.xlu1 %3923 }
 0x1d9   : > { %v11607_v22 = vpop.permute.xlu0 %2923  ;;  %v4257_v38 = vsel %vm4237_vm15, %v4231_v58, %v3924_v59  ;;  %7833 = vmatpush1.bf16.msra.mxu1 %v7832_v27 }
 0x1da   : > { %v4770_v9 = vrot.slane %v4756_v55, %v8307_v5  ;;  %v4771_v39 = vcombine.high %v4763_v14, %v4763_v14  ;;  %v5142_v61 = vrot.slane %v4763_v14, 7  ;;  %v6105_v56 = vcombine.low %v11553_v50, %v4763_v14  ;;  %7834 = vmatprep.subr.bf16.mxu1 %v13135_v49 }
 0x1db   : > { %v7838_v14 = vpack.c.bf16 %v7018_v29, %v7017_v36 }
 0x1dc   : > { %v11615_v33 = vcombine.high %v4770_v9, %v4770_v9  ;;  %v5146_v63 = vrot.slane %v4770_v9, 7  ;;  %v5422_v1 = vcombine.low %v4771_v39, %v4770_v9  ;;  %v4045_v4 = vpop.permute.xlu1 %4044  ;;  %v7645_v42 = vrot.slane %v4771_v39, 9 }
 0x1dd   : > { %v11619_v54 = vrot.slane %v6105_v56, %v8307_v5  ;;  %v4283_v19 = vsel %vm4263_vm0, %v4257_v38, %v4045_v4  ;;  %v3415_v25 = vpop.permute.xlu0 %3414  ;;  %v5143_v50 = vsel %vm8444_vm6, %v5141_v28, %v5142_v61  ;;  %7836 = vmatpush1.bf16.msra.mxu1 %v7835_v13  ;;  %v13137_v13 = vld [vmem:[#allocation6_spill] sm:$0xff] }
 0x1de   : > { %v5148_v15 = vrot.slane %v5146_v63, 2  ;;  %7784 = vmatmul.mubr.msk.f32.gmra.mrb[38].mxu0 %vm4301_vm1, %v4283_v19  ;;  %v11636_v17 = vrot.slane %v5422_v1, %v8307_v5  ;;  %v5149_v0 = vrot.slane %v11615_v33, 7  ;;  %v5745_v16 = vcombine.low %v5140_v45, %v5143_v50  ;;  %7837 = vmatprep.subr.bf16.mxu1 %v13135_v49  ;;  %v7021_v4 = vld [vmem:[%s13070_s3 + $0x80] sm:$0xff] }
 0x1df   : > { %v6591_v31 = vcombine.low %v11522_v35, %v11619_v54  ;;  %7786 = vmatprep.mubr.msk.f32.mxu0 %vm8232_vm8, %v13110_v48  ;;  %v6106_v60 = vcombine.low %v4770_v9, %v11615_v33  ;;  %v5147_v51 = vsel %vm8444_vm6, %v7645_v42, %v5146_v63  ;;  %v4102_v63 = vsel %vm4081_vm9, %v13137_v13, %v11536_v40  ;;  %v7022_v42 = vld [vmem:[%s13070_s3 + $0x88] sm:$0xff] }
 0x1e0   : > { %v3632_v43 = vpop.permute.xlu1 %3631  ;;  %v11648_v55 = vcombine.low %v11633_v44, %v11636_v17  ;;  %v5150_v27 = vsel %vm8444_vm6, %v5148_v15, %v5149_v0  ;;  %v11657_v30 = vrot.slane %v5745_v16, %v8307_v5  ;;  %v4128_v40 = vsel %vm4107_vm10, %v4102_v63, %v11577_v6 }
 0x1e1   : > { %v11650_v59 = vpop.permute.xlu0 %2199  ;;  %v11660_v8 = vrot.slane %v6106_v60, %v8307_v5  ;;  %v5746_v39 = vcombine.low %v5147_v51, %v5150_v27  ;;  %7839 = vmatpush1.bf16.msra.mxu1 %v7838_v14  ;;  %v4154_v36 = vsel %vm4133_vm11, %v4128_v40, %v11607_v22  ;;  %v7844_v16 = vpack.c.bf16 %v7022_v42, %v7021_v4 }
 0x1e2   : > { %v4477_v47 = vpop.f32.mrb[12].mxu0  ;;  %v7900_v9 = vpack.i.bf16 %v11648_v55, %v11559_v37  ;;  %v6495_v58 = vcombine.low %v11570_v57, %v11657_v30  ;;  %7840 = vmatprep.subr.bf16.mxu1 %v13135_v49  ;;  %v4180_v15 = vsel %vm4159_vm12, %v4154_v36, %v3415_v25  ;;  %v6399_v40 = vcombine.low %v11540_v10, %v11633_v44 }
 0x1e3   : > { %v4478_v61 = vadd.f32 %v11060_v18, %v4477_v47  ;;  %v7746_v56 = vpop.f32.mrb[13].mxu0  ;;  %v11676_v28 = vcombine.low %v11619_v54, %v11660_v8  ;;  %v11683_v38 = vrot.slane %v5746_v39, %v8307_v5  ;;  %v7841_v18 = vpack.c.bf16 %v7020_v3, %v7019_v20 }
 0x1e4   : > { %7901 = vrot.lane.b32.xlu1 %v7900_v9, %s8236_s18  ;;  %v3771_v1 = vpop.permute.xlu1 %3770  ;;  %v4206_v22 = vsel %vm4185_vm13, %v4180_v15, %v3632_v43  ;;  %v5151_v9 = vrot.slane %v5149_v0, 2 }
 0x1e5   : > { %vm4577_vm3 = vcmp.ge.f32.partialorder %v4478_v61, 0.0  ;;  %v4602_v19 = vmul.f32 0.1, %v4478_v61  ;;  %v11693_v50 = vpop.permute.xlu0 %2690  ;;  %v11700_v29 = vcombine.low %v11657_v30, %v11683_v38  ;;  %7842 = vmatpush1.bf16.msra.mxu1 %v7841_v18  ;;  %v4232_v47 = vsel %vm4211_vm14, %v4206_v22, %v3771_v1 }
 0x1e6   : > { %7843 = vmatprep.subr.bf16.mxu1 %v13135_v49 }
 0x1e7   : > { %v4627_v45 = vsel %vm4577_vm3, %v4478_v61, %v4602_v19  ;;  %v7905_v51 = vpack.i.bf16 %v11700_v29, %v11588_v62  ;;  %vm6986_vm3 = vcmask 916480  }
 0x1e8   : > { %v4773_v60 = vcombine.high %v4627_v45, %v4627_v45  ;;  %v4780_v6 = vrot.slane %v4627_v45, %v8307_v5  ;;  %7911 = vrot.lane.b32.xlu1 %v11598_v41, %s8228_s21  ;;  %v3926_v14 = vpop.permute.xlu1 %3925 }
 0x1e9   : > { %v11709_v27 = vpop.permute.xlu0 %2925  ;;  %7906 = vrot.lane.b32.xlu0 %v7905_v51, %s8237_s28  ;;  %v4258_v41 = vsel %vm4237_vm15, %v4232_v47, %v3926_v14  ;;  %7845 = vmatpush1.bf16.msra.mxu1 %v7844_v16  ;;  %v13138_v14 = vld [vmem:[#allocation5_spill] sm:$0xff]  ;;  %v13139_v51 = vld [vmem:[#allocation3_spill] sm:$0xff] }
 0x1ea   : > { %v11713_v25 = vrot.slane %v4773_v60, %v8307_v5  ;;  %v4788_v20 = vcombine.high %v4780_v6, %v4780_v6  ;;  %v5152_v3 = vrot.slane %v4780_v6, 7  ;;  %v5438_v62 = vcombine.low %v11615_v33, %v4780_v6  ;;  %7846 = vmatprep.subr.bf16.mxu1 %v13135_v49 }
 0x1eb   : > { %v1673_v22 = vcombine.low %v13139_v51, %v13138_v14 }
 0x1ec   : > { %v11721_v43 = vcombine.high %v11713_v25, %v11713_v25  ;;  %v5154_v39 = vrot.slane %v5152_v3, 2  ;;  %v5155_v61 = vrot.slane %v4788_v20, 7  ;;  %v5158_v56 = vrot.slane %v11713_v25, 7  ;;  %v4047_v13 = vpop.permute.xlu1 %4046 }
 0x1ed   : > { %v4284_v63 = vsel %vm4263_vm0, %v4258_v41, %v4047_v13  ;;  %v3417_v1 = vpop.permute.xlu0 %3416  ;;  %v5446_v18 = vrot.slane %v5438_v62, %v8307_v5  ;;  %v6122_v4 = vcombine.low %v4780_v6, %v4788_v20  ;;  %v5153_v33 = vsel %vm8444_vm6, %v5151_v9, %v5152_v3  ;;  %7916 = vrot.lane.b32.xlu0 %v11547_v46, %s8227_s20  ;;  %v11762_v41 = vld [vmem:[%s13069_s2] ss:$0 sm:$0xff] }
 0x1ee   : > { %v5160_v0 = vrot.slane %v5158_v56, 2  ;;  %v5161_v42 = vrot.slane %v11721_v43, 7  ;;  %7787 = vmatmul.mubr.msk.f32.gmra.mrb[40].mxu0 %vm4301_vm1, %v4284_v63  ;;  %v5156_v19 = vsel %vm8444_vm6, %v5154_v39, %v5155_v61  ;;  %v5439_v45 = vcombine.low %v4788_v20, %v11713_v25 }
 0x1ef   : > { %v6400_v36 = vcombine.low %v11636_v17, %v5446_v18  ;;  %v11739_v15 = vrot.slane %v6122_v4, %v8307_v5  ;;  %v5762_v49 = vcombine.low %v5153_v33, %v5156_v19  ;;  %7789 = vmatprep.mubr.msk.f32.mxu0 %vm8232_vm8, %v13110_v48  ;;  %v5157_v16 = vrot.slane %v5155_v61, 2 }
 0x1f0   : > { %v3634_v46 = vpop.permute.xlu1 %3633  ;;  %v5162_v60 = vsel %vm8444_vm6, %v5160_v0, %v5161_v42  ;;  %v11754_v47 = vrot.slane %v5439_v45, %v8307_v5  ;;  %v4103_v0 = vsel %vm4081_vm9, %v1673_v22, %v11650_v59 }
 0x1f1   : > { %v11746_v10 = vpop.permute.xlu0 %2201  ;;  %v7920_v44 = vpack.i.bf16 %v6400_v36, %v6399_v40  ;;  %v6592_v17 = vcombine.low %v11660_v8, %v11739_v15  ;;  %v5770_v6 = vrot.slane %v5762_v49, %v8307_v5  ;;  %v5159_v20 = vsel %vm8444_vm6, %v5157_v16, %v5158_v56 }
 0x1f2   : > { %v4482_v3 = vpop.f32.mrb[14].mxu0  ;;  %v5763_v61 = vcombine.low %v5159_v20, %v5162_v60  ;;  %v11770_v56 = vcombine.low %v5446_v18, %v11754_v47  ;;  %v4129_v54 = vsel %vm4107_vm10, %v4103_v0, %v11693_v50  ;;  %v6123_v49 = vcombine.low %v11713_v25, %v11721_v43 }
 0x1f3   : > { %7921 = vrot.lane.b32.xlu1 %v7920_v44, %s8233_s26  ;;  %v4483_v8 = vadd.f32 %v11762_v41, %v4482_v3  ;;  %v7749_v62 = vpop.f32.mrb[15].mxu0  ;;  %v7930_v9 = vpack.i.bf16 %v6592_v17, %v6591_v31  ;;  %v6496_v39 = vcombine.low %v11683_v38, %v5770_v6  ;;  %v4155_v38 = vsel %vm4133_vm11, %v4129_v54, %v11709_v27 }
 0x1f4   : > { %v3773_v13 = vpop.permute.xlu1 %3772  ;;  %v11778_v35 = vrot.slane %v5763_v61, %v8307_v5  ;;  %v11818_v62 = vrot.slane %v6123_v49, %v8307_v5 }
 0x1f5   : > { %vm4578_vm4 = vcmp.ge.f32.partialorder %v4483_v8, 0.0  ;;  %v4603_v63 = vmul.f32 0.1, %v4483_v8  ;;  %v2693_v4 = vpop.permute.xlu0 %2692  ;;  %v7925_v33 = vpack.i.bf16 %v6496_v39, %v6495_v58  ;;  %v4181_v58 = vsel %vm4159_vm12, %v4155_v38, %v3417_v1 }
 0x1f6   : > { %v11788_v59 = vcombine.low %v5770_v6, %v11778_v35  ;;  %v4207_v50 = vsel %vm4185_vm13, %v4181_v58, %v3634_v46 }
 0x1f7   : > { %v4628_v31 = vsel %vm4578_vm4, %v4483_v8, %v4603_v63  ;;  %7931 = vrot.lane.b32.xlu1 %v7930_v9, %s8234_s12  ;;  %7926 = vrot.lane.b32.xlu0 %v7925_v33, %s8235_s22  ;;  %v4233_v36 = vsel %vm4211_vm14, %v4207_v50, %v3773_v13  ;;  %v13140_v13 = vld [vmem:[#allocation7_spill] sm:$0xff] }
 0x1f8   : > { %v4790_v18 = vcombine.high %v4628_v31, %v4628_v31  ;;  %v4797_v57 = vrot.slane %v4628_v31, %v8307_v5  ;;  %v3928_v30 = vpop.permute.xlu1 %3927  ;;  %v7945_v27 = vpack.i.bf16 %v11788_v59, %v11700_v29  ;;  %v1690_v63 = vcombine.low %v10552_v21, %v13140_v13 }
 0x1f9   : > { %v2928_v42 = vpop.permute.xlu0 %2927  ;;  %v4259_v1 = vsel %vm4237_vm15, %v4233_v36, %v3928_v30 }
 0x1fa   : > { %v4804_v40 = vrot.slane %v4790_v18, %v8307_v5  ;;  %v4805_v19 = vcombine.high %v4797_v57, %v4797_v57  ;;  %v7646_v22 = vrot.slane %v4797_v57, 9 }
 0x1fc   : > { %v11798_v45 = vcombine.high %v4804_v40, %v4804_v40  ;;  %v5165_v16 = vrot.slane %v4805_v19, 7  ;;  %v5455_v60 = vcombine.low %v4797_v57, %v4805_v19  ;;  %v4049_v44 = vpop.permute.xlu1 %4048  ;;  %v6139_v6 = vcombine.low %v4805_v19, %v4804_v40 }
 0x1fd   : > { %v4285_v46 = vsel %vm4263_vm0, %v4259_v1, %v4049_v44  ;;  %v3419_v17 = vpop.permute.xlu0 %3418  ;;  %v5168_v51 = vrot.slane %v4804_v40, 7 }
 0x1fe   : > { %v5167_v14 = vrot.slane %v5165_v16, 2  ;;  %7790 = vmatmul.mubr.msk.f32.gmra.mrb[42].mxu0 %vm4301_vm1, %v4285_v46  ;;  %v5456_v29 = vcombine.low %v4804_v40, %v11798_v45  ;;  %v11805_v25 = vrot.slane %v5455_v60, %v8307_v5  ;;  %v11810_v43 = vrot.slane %v6139_v6, %v8307_v5 }
 0x1ff   : > { %7792 = vmatprep.mubr.msk.f32.mxu0 %vm8232_vm8, %v13110_v48  ;;  %v5166_v61 = vsel %vm8444_vm6, %v7646_v22, %v5165_v16  ;;  %v4104_v40 = vsel %vm4081_vm9, %v1690_v63, %v11746_v10  ;;  %v5171_v16 = vrot.slane %v11798_v45, 7  ;;  %v5170_v60 = vrot.slane %v5168_v51, 2 }
 0x200   : > { %v3636_v3 = vpop.permute.xlu1 %3635  ;;  %v11813_v20 = vrot.slane %v5456_v29, %v8307_v5  ;;  %v5169_v8 = vsel %vm8444_vm6, %v5167_v14, %v5168_v51  ;;  %v6401_v39 = vcombine.low %v11754_v47, %v11805_v25  ;;  %v6593_v31 = vcombine.low %v11818_v62, %v11810_v43 }
 0x201   : > { %v11820_v9 = vpop.permute.xlu0 %2203  ;;  %v5779_v54 = vcombine.low %v5166_v61, %v5169_v8  ;;  %v4130_v36 = vsel %vm4107_vm10, %v4104_v40, %v2693_v4  ;;  %v5173_v51 = vrot.slane %v5171_v16, 2 }
 0x202   : > { %v4487_v33 = vpop.f32.mrb[16].mxu0  ;;  %v11830_v0 = vcombine.low %v11805_v25, %v11813_v20  ;;  %v4156_v1 = vsel %vm4133_vm11, %v4130_v36, %v2928_v42 }
 0x203   : > { %v4488_v38 = vadd.f32 %v11762_v41, %v4487_v33  ;;  %v7752_v18 = vpop.f32.mrb[17].mxu0  ;;  %v11838_v58 = vrot.slane %v5779_v54, %v8307_v5  ;;  %v4182_v14 = vsel %vm4159_vm12, %v4156_v1, %v3419_v17  ;;  %v5172_v17 = vsel %vm8444_vm6, %v5170_v60, %v5171_v16 }
 0x204   : > { %v3775_v57 = vpop.permute.xlu1 %3774  ;;  %v7935_v30 = vpack.i.bf16 %v11830_v0, %v11770_v56  ;;  %v4208_v29 = vsel %vm4185_vm13, %v4182_v14, %v3636_v3 }
 0x205   : > { %vm4579_vm5 = vcmp.ge.f32.partialorder %v4488_v38, 0.0  ;;  %v4604_v21 = vmul.f32 0.1, %v4488_v38  ;;  %v11840_v50 = vpop.permute.xlu0 %2694  ;;  %v6497_v19 = vcombine.low %v11778_v35, %v11838_v58  ;;  %v4234_v4 = vsel %vm4211_vm14, %v4208_v29, %v3775_v57 }
 0x206   : > { %7936 = vrot.lane.b32.xlu0 %v7935_v30, %s8236_s18 }
 0x207   : > { %v4629_v49 = vsel %vm4579_vm5, %v4488_v38, %v4604_v21 }
 0x208   : > { %v4807_v44 = vcombine.high %v4629_v49, %v4629_v49  ;;  %v4814_v46 = vrot.slane %v4629_v49, %v8307_v5  ;;  %v3930_v6 = vpop.permute.xlu1 %3929 }
 0x209   : > { %v2930_v10 = vpop.permute.xlu0 %2929  ;;  %v4260_v33 = vsel %vm4237_vm15, %v4234_v4, %v3930_v6 }
 0x20a   : > { %v4821_v22 = vrot.slane %v4807_v44, %v8307_v5  ;;  %v4822_v8 = vcombine.high %v4814_v46, %v4814_v46  ;;  %v5174_v61 = vrot.slane %v4814_v46, 7  ;;  %7946 = vrot.lane.b32.xlu0 %v7945_v27, %s8228_s21  ;;  %v6140_v42 = vcombine.low %v11798_v45, %v4814_v46 }
 0x20c   : > { %v5176_v13 = vrot.slane %v5174_v61, 2  ;;  %v5177_v63 = vrot.slane %v4822_v8, 7  ;;  %v4051_v54 = vpop.permute.xlu1 %4050  ;;  %v6156_v3 = vcombine.low %v4822_v8, %v4821_v22  ;;  %v5472_v30 = vcombine.low %v4814_v46, %v4822_v8 }
 0x20d   : > { %v4286_v38 = vsel %vm4263_vm0, %v4260_v33, %v4051_v54  ;;  %v3421_v18 = vpop.permute.xlu0 %3420  ;;  %v5175_v27 = vsel %vm8444_vm6, %v5173_v51, %v5174_v61  ;;  %v6154_v45 = vrot.slane %v6140_v42, %v8307_v5  ;;  %v5180_v21 = vrot.slane %v4821_v22, 7 }
 0x20e   : > { %7793 = vmatmul.mubr.msk.f32.gmra.mrb[44].mxu0 %vm4301_vm1, %v4286_v38  ;;  %v5780_v57 = vcombine.low %v5172_v17, %v5175_v27  ;;  %v11866_v40 = vrot.slane %v5472_v30, %v8307_v5  ;;  %v11869_v36 = vrot.slane %v6156_v3, %v8307_v5  ;;  %v5179_v49 = vrot.slane %v5177_v63, 2 }
 0x20f   : > { %7795 = vmatprep.mubr.msk.f32.mxu0 %vm8232_vm8, %v13110_v48  ;;  %v11875_v1 = vcombine.low %v11810_v43, %v6154_v45  ;;  %v5178_v14 = vsel %vm8444_vm6, %v5176_v13, %v5177_v63  ;;  %v11893_v33 = vcombine.low %v11739_v15, %v11818_v62  ;;  %v4105_v17 = vsel %vm4081_vm9, %v10860_v11, %v11820_v9 }
 0x210   : > { %v3638_v16 = vpop.permute.xlu1 %3637  ;;  %v5794_v60 = vrot.slane %v5780_v57, %v8307_v5  ;;  %v6402_v46 = vcombine.low %v11813_v20, %v11866_v40  ;;  %v6594_v6 = vcombine.low %v6154_v45, %v11869_v36  ;;  %v5181_v29 = vsel %vm8444_vm6, %v5179_v49, %v5180_v21 }
 0x211   : > { %v2206_v44 = vpop.permute.xlu0 %2205  ;;  %v5796_v4 = vcombine.low %v5178_v14, %v5181_v29  ;;  %v4131_v15 = vsel %vm4107_vm10, %v4105_v17, %v11840_v50 }
 0x212   : > { %v4492_v8 = vpop.f32.mrb[18].mxu0  ;;  %v11885_v61 = vcombine.low %v11838_v58, %v5794_v60  ;;  %v7955_v20 = vpack.i.bf16 %v6402_v46, %v6401_v39  ;;  %v7965_v42 = vpack.i.bf16 %v6594_v6, %v6593_v31  ;;  %v4157_v62 = vsel %vm4133_vm11, %v4131_v15, %v2930_v10 }
 0x213   : > { %v4493_v43 = vadd.f32 %v11762_v41, %v4492_v8  ;;  %v7755_v51 = vpop.f32.mrb[19].mxu0  ;;  %v11898_v54 = vrot.slane %v5796_v4, %v8307_v5  ;;  %v7950_v31 = vpack.i.bf16 %v11893_v33, %v11676_v28  ;;  %v4183_v11 = vsel %vm4159_vm12, %v4157_v62, %v3421_v18 }
 0x214   : > { %v3777_v13 = vpop.permute.xlu1 %3776  ;;  %v7940_v63 = vpack.i.bf16 %v11885_v61, %v11788_v59  ;;  %7956 = vrot.lane.b32.xlu0 %v7955_v20, %s8233_s26  ;;  %v4823_v59 = vcombine.high %v4821_v22, %v4821_v22  ;;  %v4209_v27 = vsel %vm4185_vm13, %v4183_v11, %v3638_v16  ;;  %v4106_v49 = vsel %vm4081_vm9, %v10794_v24, %v2206_v44 }
 0x215   : > { %vm4580_vm7 = vcmp.ge.f32.partialorder %v4493_v43, 0.0  ;;  %v4605_v3 = vmul.f32 0.1, %v4493_v43  ;;  %v2697_v47 = vpop.permute.xlu0 %2696  ;;  %v6498_v25 = vcombine.low %v5794_v60, %v11898_v54  ;;  %v4235_v18 = vsel %vm4211_vm14, %v4209_v27, %v3777_v13 }
 0x216   : > { %7941 = vrot.lane.b32.xlu1 %v7940_v63, %s8237_s28  ;;  %v7647_v21 = vrot.slane %v4823_v59, 9 }
 0x217   : > { %v4630_v39 = vsel %vm4580_vm7, %v4493_v43, %v4605_v3  ;;  %v7960_v50 = vpack.i.bf16 %v6498_v25, %v6497_v19  ;;  %v4132_v43 = vsel %vm4107_vm10, %v4106_v49, %v2697_v47 }
 0x218   : > { %v4824_v9 = vcombine.high %v4630_v39, %v4630_v39  ;;  %v4831_v38 = vrot.slane %v4630_v39, %v8307_v5  ;;  %v3932_v30 = vpop.permute.xlu1 %3931  ;;  %7966 = vrot.lane.b32.xlu0 %v7965_v42, %s8234_s12 }
 0x219   : > { %v2932_v22 = vpop.permute.xlu0 %2931  ;;  %v4261_v35 = vsel %vm4237_vm15, %v4235_v18, %v3932_v30 }
 0x21a   : > { %v11919_v10 = vrot.slane %v4824_v9, %v8307_v5  ;;  %v4839_v57 = vcombine.high %v4831_v38, %v4831_v38  ;;  %v5184_v45 = vrot.slane %v4831_v38, 7  ;;  %7951 = vrot.lane.b32.xlu1 %v7950_v31, %s8227_s20  ;;  %v5473_v58 = vcombine.low %v4823_v59, %v4831_v38 }
 0x21b   : > { %v4158_v3 = vsel %vm4133_vm11, %v4132_v43, %v2932_v22 }
 0x21c   : > { %v11928_v19 = vcombine.high %v11919_v10, %v11919_v10  ;;  %v5186_v16 = vrot.slane %v5184_v45, 2  ;;  %v5187_v60 = vrot.slane %v4839_v57, 7  ;;  %v5190_v46 = vrot.slane %v11919_v10, 7  ;;  %v4053_v6 = vpop.permute.xlu1 %4052 }
 0x21d   : > { %v4287_v14 = vsel %vm4263_vm0, %v4261_v35, %v4053_v6  ;;  %v3423_v29 = vpop.permute.xlu0 %3422  ;;  %v11933_v8 = vrot.slane %v5473_v58, %v8307_v5  ;;  %v5489_v24 = vcombine.low %v4839_v57, %v11919_v10  ;;  %v5185_v44 = vsel %vm8444_vm6, %v7647_v21, %v5184_v45 }
 0x21e   : > { %v5192_v4 = vrot.slane %v5190_v46, 2  ;;  %7961 = vrot.lane.b32.xlu1 %v7960_v50, %s8235_s22  ;;  %7796 = vmatmul.mubr.msk.f32.gmra.mrb[46].mxu0 %vm4301_vm1, %v4287_v14  ;;  %v5188_v51 = vsel %vm8444_vm6, %v5186_v16, %v5187_v60  ;;  %v5189_v20 = vrot.slane %v5187_v60, 2  ;;  %v5193_v17 = vrot.slane %v11928_v19, 7 }
 0x21f   : > { %7798 = vmatprep.mubr.msk.f32.mxu0 %vm8232_vm8, %v13110_v48  ;;  %v11947_v42 = vcombine.low %v11866_v40, %v11933_v8  ;;  %v11950_v13 = vrot.slane %v5489_v24, %v8307_v5  ;;  %v5797_v63 = vcombine.low %v5185_v44, %v5188_v51  ;;  %v6157_v25 = vcombine.low %v4831_v38, %v4839_v57 }
 0x220   : > { %v3779_v47 = vpop.permute.xlu1 %3778  ;;  %v5191_v15 = vsel %vm8444_vm6, %v5189_v20, %v5190_v46  ;;  %v4184_v59 = vsel %vm4159_vm12, %v4158_v3, %v3423_v29  ;;  %v5194_v40 = vsel %vm8444_vm6, %v5192_v4, %v5193_v17  ;;  %v5195_v24 = vrot.slane %v5193_v17, 2 }
 0x221   : > { %v3640_v62 = vpop.permute.xlu0 %3639  ;;  %v11958_v39 = vrot.slane %v5797_v63, %v8307_v5  ;;  %v6403_v31 = vcombine.low %v11933_v8, %v11950_v13  ;;  %v5813_v30 = vcombine.low %v5191_v15, %v5194_v40  ;;  %v11966_v50 = vrot.slane %v6157_v25, %v8307_v5 }
 0x222   : > { %v4210_v11 = vsel %vm4185_vm13, %v4184_v59, %v3640_v62  ;;  %v4497_v9 = vpop.f32.mrb[20].mxu0  ;;  %v6173_v63 = vcombine.low %v11919_v10, %v11928_v19  ;;  %vm6910_vm13 = vcmask 392192  }
 0x223   : > { %v4498_v38 = vadd.f32 %v11762_v41, %v4497_v9  ;;  %v7758_v27 = vpop.f32.mrb[21].mxu0  ;;  %v5812_v22 = vcombine.low %v11898_v54, %v11958_v39  ;;  %v11972_v45 = vrot.slane %v5813_v30, %v8307_v5  ;;  %v11976_v18 = vcombine.low %v11869_v36, %v11966_v50 }
 0x224   : > { %v4055_v57 = vpop.permute.xlu1 %4054  ;;  %v4236_v49 = vsel %vm4211_vm14, %v4210_v11, %v3779_v47  ;;  %v6181_v11 = vrot.slane %v6173_v63, %v8307_v5  ;;  %vm6929_vm14 = vcmask 523264  }
 0x225   : > { %vm4581_vm9 = vcmp.ge.f32.partialorder %v4498_v38, 0.0  ;;  %v4606_v21 = vmul.f32 0.1, %v4498_v38  ;;  %v3934_v35 = vpop.permute.xlu0 %3933  ;;  %v7980_v58 = vpack.i.bf16 %v5812_v22, %v11885_v61  ;;  %v6499_v54 = vcombine.low %v11958_v39, %v11972_v45 }
 0x226   : > { %v4262_v16 = vsel %vm4237_vm15, %v4236_v49, %v3934_v35  ;;  %v6595_v63 = vcombine.low %v11966_v50, %v6181_v11 }
 0x227   : > { %v4631_v60 = vsel %vm4581_vm9, %v4498_v38, %v4606_v21  ;;  %v4288_v46 = vsel %vm4263_vm0, %v4262_v16, %v4055_v57 }
 0x228   : > { %v4841_v6 = vcombine.high %v4631_v60, %v4631_v60  ;;  %v4848_v14 = vrot.slane %v4631_v60, %v8307_v5  ;;  %7799 = vmatmul.mubr.msk.f32.gmra.mrb[48].mxu0 %vm4301_vm1, %v4288_v46  ;;  %vm6948_vm1 = vcmask 654336  }
 0x229   : > { %7810 = vmatprep.mubr.msk.f32.mxu0 %vm8232_vm8, %v13110_v48 }
 0x22a   : > { %v4855_v36 = vrot.slane %v4841_v6, %v8307_v5  ;;  %v4856_v29 = vcombine.high %v4848_v14, %v4848_v14  ;;  %v5196_v61 = vrot.slane %v4848_v14, 7  ;;  %v5490_v8 = vcombine.low %v11928_v19, %v4848_v14 }
 0x22c   : > { %v4857_v44 = vcombine.high %v4855_v36, %v4855_v36  ;;  %v5198_v4 = vrot.slane %v5196_v61, 2  ;;  %v5199_v43 = vrot.slane %v4856_v29, 7  ;;  %v5504_v51 = vrot.slane %v5490_v8, %v8307_v5 }
 0x22d   : > { %v5197_v20 = vsel %vm8444_vm6, %v5195_v24, %v5196_v61  ;;  %v6174_v17 = vcombine.low %v4848_v14, %v4856_v29  ;;  %v7648_v6 = vrot.slane %v4855_v36, 9  ;;  %v7985_v14 = vpack.i.bf16 %v11976_v18, %v11875_v1 }
 0x22e   : > { %v5506_v3 = vcombine.low %v4855_v36, %v4857_v44  ;;  %v5200_v47 = vsel %vm8444_vm6, %v5198_v4, %v5199_v43  ;;  %v11998_v15 = vcombine.low %v11950_v13, %v5504_v51  ;;  %v5203_v35 = vrot.slane %v4857_v44, 7 }
 0x22f   : > { %v5814_v25 = vcombine.low %v5197_v20, %v5200_v47  ;;  %v6188_v10 = vrot.slane %v6174_v17, %v8307_v5 }
 0x230   : > { %v5514_v59 = vrot.slane %v5506_v3, %v8307_v5  ;;  %v7970_v62 = vpack.i.bf16 %v11998_v15, %v11947_v42  ;;  %v5204_v4 = vsel %vm8444_vm6, %v7648_v6, %v5203_v35 }
 0x231   : > { %v5828_v40 = vrot.slane %v5814_v25, %v8307_v5  ;;  %v12011_v27 = vcombine.low %v6181_v11, %v6188_v10 }
 0x232   : > { %v4502_v19 = vpop.f32.mrb[22].mxu0  ;;  %v6404_v9 = vcombine.low %v5504_v51, %v5514_v59  ;;  %7971 = vrot.lane.b32.xlu1 %v7970_v62, %s8236_s18 }
 0x233   : > { %v4503_v13 = vadd.f32 %v11762_v41, %v4502_v19  ;;  %v7761_v30 = vpop.f32.mrb[23].mxu0  ;;  %v12009_v38 = vcombine.low %v11972_v45, %v5828_v40 }
 0x234   : > { %v7990_v57 = vpack.i.bf16 %v6404_v9, %v6403_v31 }
 0x235   : > { %vm4582_vm10 = vcmp.ge.f32.partialorder %v4503_v13, 0.0  ;;  %v4607_v21 = vmul.f32 0.1, %v4503_v13  ;;  %v7975_v49 = vpack.i.bf16 %v12009_v38, %v5812_v22  ;;  %v5205_v22 = vrot.slane %v5203_v35, 2 }
 0x236   : > { %7981 = vrot.lane.b32.xlu1 %v7980_v58, %s8228_s21 }
 0x237   : > { %v4632_v16 = vsel %vm4582_vm10, %v4503_v13, %v4607_v21  ;;  %7976 = vrot.lane.b32.xlu0 %v7975_v49, %s8237_s28 }
 0x238   : > { %v4858_v60 = vcombine.high %v4632_v16, %v4632_v16  ;;  %v4865_v46 = vrot.slane %v4632_v16, %v8307_v5 }
 0x23a   : > { %v4872_v29 = vrot.slane %v4858_v60, %v8307_v5  ;;  %v4873_v31 = vcombine.high %v4865_v46, %v4865_v46  ;;  %v5206_v61 = vrot.slane %v4865_v46, 7  ;;  %v6190_v8 = vcombine.low %v4857_v44, %v4865_v46  ;;  %7991 = vrot.lane.b32.xlu1 %v7990_v57, %s8233_s26 }
 0x23b   : > { %7986 = vrot.lane.b32.xlu0 %v7985_v14, %s8227_s20 }
 0x23c   : > { %v5209_v58 = vrot.slane %v4873_v31, 7  ;;  %v6198_v24 = vrot.slane %v6190_v8, %v8307_v5  ;;  %v5208_v36 = vrot.slane %v5206_v61, 2  ;;  %v5207_v43 = vsel %vm8444_vm6, %v5205_v22, %v5206_v61 }
 0x23d   : > { %v5507_v51 = vcombine.low %v4865_v46, %v4873_v31  ;;  %v6191_v20 = vcombine.low %v4873_v31, %v4872_v29  ;;  %v5830_v3 = vcombine.low %v5204_v4, %v5207_v43  ;;  %v5212_v47 = vrot.slane %v4872_v29, 7  ;;  %v7877_v31 = vpop.permute.xlu0 %7876 }
 0x23e   : > { %v6596_v44 = vcombine.low %v6188_v10, %v6198_v24  ;;  %v5211_v17 = vrot.slane %v5209_v58, 2  ;;  %v5210_v30 = vsel %vm8444_vm6, %v5208_v36, %v5209_v58  ;;  %v4874_v35 = vcombine.high %v4872_v29, %v4872_v29 }
 0x23f   : > { %v12029_v25 = vrot.slane %v5507_v51, %v8307_v5  ;;  %v5838_v19 = vrot.slane %v5830_v3, %v8307_v5  ;;  %v12033_v9 = vrot.slane %v6191_v20, %v8307_v5  ;;  %v5214_v45 = vrot.slane %v5212_v47, 2  ;;  %v7882_v51 = vpop.permute.xlu1 %7881 }
 0x240   : > { %v8000_v62 = vpack.i.bf16 %v6596_v44, %v6595_v63  ;;  %v5213_v50 = vsel %vm8444_vm6, %v5211_v17, %v5212_v47  ;;  %v5215_v14 = vrot.slane %v4874_v35, 7  ;;  %v7879_v36 = vunpack.i.h.bf16 %v7877_v31 }
 0x241   : > { %v12036_v13 = vcombine.low %v5514_v59, %v12029_v25  ;;  %v6500_v10 = vcombine.low %v5828_v40, %v5838_v19  ;;  %v5831_v57 = vcombine.low %v5210_v30, %v5213_v50  ;;  %v12044_v21 = vcombine.low %v6198_v24, %v12033_v9 }
 0x242   : > { %8001 = vrot.lane.b32.xlu1 %v8000_v62, %s8234_s12  ;;  %v4507_v11 = vpop.f32.mrb[24].mxu0  ;;  %v5217_v43 = vrot.slane %v5215_v14, 2  ;;  %v7878_v17 = vunpack.i.l.bf16 %v7877_v31  ;;  %v5216_v50 = vsel %vm8444_vm6, %v5214_v45, %v5215_v14  ;;  %v6875_v31 = vsel %vm4159_vm12, %v5386_v26, %v7879_v36 }
 0x243   : > { %v4508_v49 = vadd.f32 %v11762_v41, %v4507_v11  ;;  %v7764_v16 = vpop.f32.mrb[25].mxu0  ;;  %v7995_v59 = vpack.i.bf16 %v6500_v10, %v6499_v54  ;;  %v12051_v60 = vrot.slane %v5831_v57, %v8307_v5  ;;  %v5523_v54 = vcombine.low %v4872_v29, %v4874_v35 }
 0x244   : > { %v7884_v10 = vunpack.i.h.bf16 %v7882_v51  ;;  %v7883_v57 = vunpack.i.l.bf16 %v7882_v51 }
 0x245   : > { %vm4583_vm11 = vcmp.ge.f32.partialorder %v4508_v49, 0.0  ;;  %v4608_v46 = vmul.f32 0.1, %v4508_v49  ;;  %7996 = vrot.lane.b32.xlu0 %v7995_v59, %s8235_s22  ;;  %v12055_v40 = vcombine.low %v5838_v19, %v12051_v60  ;;  %v12064_v62 = vrot.slane %v5523_v54, %v8307_v5 }
 0x247   : > { %v4633_v6 = vsel %vm4583_vm11, %v4508_v49, %v4608_v46  ;;  %v8015_v39 = vpack.i.bf16 %v12055_v40, %v12009_v38  ;;  %v7887_v49 = vpop.permute.xlu0 %7886  ;;  %v6405_v38 = vcombine.low %v12029_v25, %v12064_v62 }
 0x248   : > { %v4875_v61 = vcombine.high %v4633_v6, %v4633_v6  ;;  %v4882_v8 = vrot.slane %v4633_v6, %v8307_v5 }
 0x24a   : > { %v4889_v22 = vrot.slane %v4875_v61, %v8307_v5  ;;  %v4890_v58 = vcombine.high %v4882_v8, %v4882_v8  ;;  %v5218_v24 = vrot.slane %v4882_v8, 7  ;;  %v6207_v4 = vcombine.low %v4874_v35, %v4882_v8  ;;  %v7892_v61 = vpop.permute.xlu1 %7891 }
 0x24c   : > { %v12061_v20 = vcombine.high %v4889_v22, %v4889_v22  ;;  %v7649_v63 = vrot.slane %v4890_v58, 9  ;;  %v5222_v44 = vrot.slane %v4889_v22, 7  ;;  %v5524_v3 = vcombine.low %v4890_v58, %v4889_v22 }
 0x24d   : > { %v5219_v29 = vsel %vm8444_vm6, %v5217_v43, %v5218_v24  ;;  %v12069_v47 = vrot.slane %v6207_v4, %v8307_v5  ;;  %v7889_v24 = vunpack.i.h.bf16 %v7887_v49  ;;  %v7888_v4 = vunpack.i.l.bf16 %v7887_v49 }
 0x24e   : > { %v5224_v19 = vrot.slane %v5222_v44, 2  ;;  %v12072_v30 = vrot.slane %v5524_v3, %v8307_v5  ;;  %v5225_v11 = vrot.slane %v12061_v20, 7  ;;  %v5847_v35 = vcombine.low %v5216_v50, %v5219_v29 }
 0x24f   : > { %v6208_v16 = vcombine.low %v4889_v22, %v12061_v20  ;;  %v5223_v46 = vsel %vm8444_vm6, %v7649_v63, %v5222_v44  ;;  %v6597_v14 = vcombine.low %v12033_v9, %v12069_v47  ;;  %v13141_v22 = vcombine.low %v11210_v7, %v11216_v12 }
 0x250   : > { %v12080_v59 = vcombine.low %v12064_v62, %v12072_v30  ;;  %v5226_v6 = vsel %vm8444_vm6, %v5224_v19, %v5225_v11  ;;  %v12095_v45 = vrot.slane %v5847_v35, %v8307_v5  ;;  %v7894_v12 = vunpack.i.h.bf16 %v7892_v61  ;;  %v7897_v19 = vpop.permute.xlu0 %7896 }
 0x251   : > { %v5848_v8 = vcombine.low %v5223_v46, %v5226_v6  ;;  %v12098_v54 = vrot.slane %v6208_v16, %v8307_v5  ;;  %v6874_v58 = vsel %vm4159_vm12, %v13141_v22, %v7878_v17  ;;  %v7893_v63 = vunpack.i.l.bf16 %v7892_v61 }
 0x252   : > { %v4512_v43 = vpop.f32.mrb[26].mxu0  ;;  %v8005_v23 = vpack.i.bf16 %v12080_v59, %v12036_v13  ;;  %v6501_v51 = vcombine.low %v12051_v60, %v12095_v45  ;;  %v6892_v17 = vsel %vm4263_vm0, %v6874_v58, %v7883_v57  ;;  %v6893_v29 = vsel %vm4263_vm0, %v6875_v31, %v7884_v10 }
 0x253   : > { %v4513_v52 = vadd.f32 %v11762_v41, %v4512_v43  ;;  %v7767_v26 = vpop.f32.mrb[27].mxu0  ;;  %v12108_v36 = vrot.slane %v5848_v8, %v8307_v5  ;;  %v12114_v7 = vcombine.low %v12069_v47, %v12098_v54  ;;  %v6911_v49 = vsel %vm6910_vm13, %v6892_v17, %v7888_v4 }
 0x254   : > { %8006 = vrot.lane.b32.xlu0 %v8005_v23, %s8236_s18  ;;  %v6912_v35 = vsel %vm6910_vm13, %v6893_v29, %v7889_v24  ;;  %v6930_v6 = vsel %vm6929_vm14, %v6911_v49, %v7893_v63  ;;  %v7899_v10 = vunpack.i.h.bf16 %v7897_v19  ;;  %v7898_v31 = vunpack.i.l.bf16 %v7897_v19 }
 0x255   : > { %vm4584_vm15 = vcmp.ge.f32.partialorder %v4513_v52, 0.0  ;;  %v4609_v44 = vmul.f32 0.1, %v4513_v52  ;;  %v12119_v3 = vcombine.low %v12095_v45, %v12108_v36  ;;  %v6931_v61 = vsel %vm6929_vm14, %v6912_v35, %v7894_v12 }
 0x256   : > { %v7902_v50 = vpop.permute.xlu1 %7901  ;;  %v8020_v23 = vpack.i.bf16 %v12044_v21, %v12011_v27  ;;  %v5227_v25 = vrot.slane %v5225_v11, 2 }
 0x257   : > { %v4634_v16 = vsel %vm4584_vm15, %v4513_v52, %v4609_v44  ;;  %v8010_v46 = vpack.i.bf16 %v12119_v3, %v12055_v40  ;;  %v7903_v22 = vunpack.i.l.bf16 %v7902_v50  ;;  %v6949_v52 = vsel %vm6948_vm1, %v6930_v6, %v7898_v31 }
 0x258   : > { %v4892_v8 = vcombine.high %v4634_v16, %v4634_v16  ;;  %v4899_v57 = vrot.slane %v4634_v16, %v8307_v5  ;;  %8016 = vrot.lane.b32.xlu0 %v8015_v39, %s8228_s21  ;;  %v6950_v40 = vsel %vm6948_vm1, %v6931_v61, %v7899_v10  ;;  %v7904_v17 = vunpack.i.h.bf16 %v7902_v50 }
 0x259   : > { %8011 = vrot.lane.b32.xlu1 %v8010_v46, %s8237_s28  ;;  %v6968_v19 = vsel %vm6967_vm2, %v6949_v52, %v7903_v22 }
 0x25a   : > { %v12136_v58 = vrot.slane %v4892_v8, %v8307_v5  ;;  %v4907_v24 = vcombine.high %v4899_v57, %v4899_v57  ;;  %v5228_v4 = vrot.slane %v4899_v57, 7  ;;  %v5540_v43 = vcombine.low %v12061_v20, %v4899_v57 }
 0x25b   : > { %v7907_v44 = vpop.permute.xlu0 %7906 }
 0x25c   : > { %v12147_v39 = vcombine.high %v12136_v58, %v12136_v58  ;;  %v5230_v26 = vrot.slane %v5228_v4, 2  ;;  %v5231_v12 = vrot.slane %v4907_v24, 7  ;;  %v5234_v63 = vrot.slane %v12136_v58, 7 }
 0x25d   : > { %v7908_v29 = vunpack.i.l.bf16 %v7907_v44  ;;  %8021 = vrot.lane.b32.xlu1 %v8020_v23, %s8227_s20  ;;  %v5548_v35 = vrot.slane %v5540_v43, %v8307_v5  ;;  %v6224_v16 = vcombine.low %v4899_v57, %v4907_v24  ;;  %v7909_v46 = vunpack.i.h.bf16 %v7907_v44 }
 0x25e   : > { %v5236_v62 = vrot.slane %v5234_v63, 2  ;;  %v5237_v49 = vrot.slane %v12147_v39, 7  ;;  %v5229_v50 = vsel %vm8444_vm6, %v5227_v25, %v5228_v4  ;;  %v5232_v61 = vsel %vm8444_vm6, %v5230_v26, %v5231_v12 }
 0x25f   : > { %v6987_v6 = vsel %vm6986_vm3, %v6968_v19, %v7908_v29  ;;  %v6406_v8 = vcombine.low %v12072_v30, %v5548_v35  ;;  %v12163_v20 = vrot.slane %v6224_v16, %v8307_v5  ;;  %v5864_v11 = vcombine.low %v5229_v50, %v5232_v61 }
 0x260   : > { %7131 = vmatmul.mubr.f32.vlgmr.msra.gmra.mrb[0].mxu1 %v6987_v6  ;;  %v5541_v10 = vcombine.low %v4907_v24, %v12136_v58  ;;  %v6969_v57 = vsel %vm6967_vm2, %v6950_v40, %v7904_v17  ;;  %v5233_v31 = vrot.slane %v5231_v12, 2  ;;  %v5238_v22 = vsel %vm8444_vm6, %v5236_v62, %v5237_v49 }
 0x261   : > { %7658 = vmatprep.mubr.msk.f32.mxu1 %vm4159_vm12, %v11676_v28  ;;  %v8025_v43 = vpack.i.bf16 %v6406_v8, %v6405_v38  ;;  %v6598_v30 = vcombine.low %v12098_v54, %v12163_v20  ;;  %v5872_v23 = vrot.slane %v5864_v11, %v8307_v5  ;;  %v6988_v28 = vsel %vm6986_vm3, %v6969_v57, %v7909_v46 }
 0x262   : > { %v4517_v4 = vpop.f32.mrb[28].mxu0  ;;  %v12175_v52 = vrot.slane %v5541_v10, %v8307_v5  ;;  %v5235_v40 = vsel %vm8444_vm6, %v5233_v31, %v5234_v63  ;;  %v6225_v45 = vcombine.low %v12136_v58, %v12147_v39 }
 0x263   : > { %v4518_v24 = vadd.f32 %v11762_v41, %v4517_v4  ;;  %v7770_v26 = vpop.f32.mrb[29].mxu0  ;;  %8026 = vrot.lane.b32.xlu0 %v8025_v43, %s8233_s26  ;;  %v8035_v54 = vpack.i.bf16 %v6598_v30, %v6597_v14  ;;  %v6502_v38 = vcombine.low %v12108_v36, %v5872_v23  ;;  %v5865_v17 = vcombine.low %v5235_v40, %v5238_v22  ;;  %v7917_v40 = vpop.permute.xlu0 %7916 }
 0x264   : > { %7136 = vmatmul.mubr.f32.gmra.mrb[2].mxu1 %v6988_v28  ;;  %v12187_v12 = vcombine.low %v5548_v35, %v12175_v52  ;;  %v12212_v61 = vrot.slane %v6225_v45, %v8307_v5 }
 0x265   : > { %vm4585_vm4 = vcmp.ge.f32.partialorder %v4518_v24, 0.0  ;;  %v4610_v44 = vmul.f32 0.1, %v4518_v24  ;;  %7659 = vmatprep.mubr.msk.f32.mxu1 %vm4159_vm12, %v11893_v33  ;;  %v8030_v63 = vpack.i.bf16 %v6502_v38, %v6501_v51  ;;  %v12195_v19 = vrot.slane %v5865_v17, %v8307_v5 }
 0x267   : > { %v4635_v29 = vsel %vm4585_vm4, %v4518_v24, %v4610_v44  ;;  %8036 = vrot.lane.b32.xlu0 %v8035_v54, %s8234_s12  ;;  %8031 = vrot.lane.b32.xlu1 %v8030_v63, %s8235_s22  ;;  %v12201_v14 = vcombine.low %v5872_v23, %v12195_v19  ;;  %v7912_v23 = vpop.permute.xlu1 %7911 }
 0x268   : > { %v4909_v9 = vcombine.high %v4635_v29, %v4635_v29  ;;  %v4916_v47 = vrot.slane %v4635_v29, %v8307_v5  ;;  %v7914_v54 = vunpack.i.h.bf16 %v7912_v23  ;;  %v7913_v44 = vunpack.i.l.bf16 %v7912_v23 }
 0x269   : > { %v8050_v60 = vpack.i.bf16 %v12201_v14, %v12119_v3 }
 0x26a   : > { %v4923_v33 = vrot.slane %v4909_v9, %v8307_v5  ;;  %v4924_v36 = vcombine.high %v4916_v47, %v4916_v47  ;;  %v7650_v49 = vrot.slane %v4916_v47, 9  ;;  %v7918_v9 = vunpack.i.l.bf16 %v7917_v40 }
 0x26c   : > { %v4925_v51 = vcombine.high %v4923_v33, %v4923_v33  ;;  %v5241_v25 = vrot.slane %v4924_v36, 7  ;;  %v5557_v62 = vcombine.low %v4916_v47, %v4924_v36  ;;  %v6241_v35 = vcombine.low %v4924_v36, %v4923_v33 }
 0x26d   : > { %v5244_v46 = vrot.slane %v4923_v33, 7 }
 0x26e   : > { %v5243_v16 = vrot.slane %v5241_v25, 2  ;;  %v5558_v6 = vcombine.low %v4923_v33, %v4925_v51  ;;  %v12209_v50 = vrot.slane %v5557_v62, %v8307_v5  ;;  %v12215_v8 = vrot.slane %v6241_v35, %v8307_v5  ;;  %v7922_v33 = vpop.permute.xlu1 %7921 }
 0x26f   : > { %v5242_v39 = vsel %vm8444_vm6, %v7650_v49, %v5241_v25  ;;  %v5247_v29 = vrot.slane %v4925_v51, 7  ;;  %v5246_v47 = vrot.slane %v5244_v46, 2  ;;  %v6877_v49 = vsel %vm4159_vm12, %v11559_v37, %v7914_v54 }
 0x270   : > { %v12218_v3 = vrot.slane %v5558_v6, %v8307_v5  ;;  %v6407_v58 = vcombine.low %v12175_v52, %v12209_v50  ;;  %v5245_v11 = vsel %vm8444_vm6, %v5243_v16, %v5244_v46  ;;  %v6599_v57 = vcombine.low %v12212_v61, %v12215_v8  ;;  %v7927_v6 = vpop.permute.xlu0 %7926 }
 0x271   : > { %v5881_v10 = vcombine.low %v5242_v39, %v5245_v11  ;;  %v6876_v35 = vsel %vm4159_vm12, %v5403_v53, %v7913_v44  ;;  %v7919_v16 = vunpack.i.h.bf16 %v7917_v40  ;;  %v5249_v46 = vrot.slane %v5247_v29, 2 }
 0x272   : > { %v4522_v31 = vpop.f32.mrb[30].mxu0  ;;  %v12230_v22 = vcombine.low %v12209_v50, %v12218_v3  ;;  %v6894_v11 = vsel %vm4263_vm0, %v6876_v35, %v7918_v9  ;;  %v7924_v34 = vunpack.i.h.bf16 %v7922_v33  ;;  %v7928_v53 = vunpack.i.l.bf16 %v7927_v6 }
 0x273   : > { %v4523_v4 = vadd.f32 %v11762_v41, %v4522_v31  ;;  %v7773_v43 = vpop.f32.mrb[31].mxu0  ;;  %v12234_v30 = vrot.slane %v5881_v10, %v8307_v5  ;;  %v7923_v10 = vunpack.i.l.bf16 %v7922_v33  ;;  %v7929_v9 = vunpack.i.h.bf16 %v7927_v6 }
 0x274   : > { %v8040_v24 = vpack.i.bf16 %v12230_v22, %v12187_v12 }
 0x275   : > { %vm4586_vm5 = vcmp.ge.f32.partialorder %v4523_v4, 0.0  ;;  %v4611_v26 = vmul.f32 0.1, %v4523_v4  ;;  %v6503_v28 = vcombine.low %v12195_v19, %v12234_v30 }
 0x276   : > { %8041 = vrot.lane.b32.xlu1 %v8040_v24, %s8236_s18 }
 0x277   : > { %v4636_v38 = vsel %vm4586_vm5, %v4523_v4, %v4611_v26 }
 0x278   : > { %v4926_v17 = vcombine.high %v4636_v38, %v4636_v38  ;;  %v4933_v63 = vrot.slane %v4636_v38, %v8307_v5  ;;  %v6913_v38 = vsel %vm6910_vm13, %v6894_v11, %v7923_v10  ;;  %v7937_v44 = vpop.permute.xlu0 %7936  ;;  %v6895_v11 = vsel %vm4263_vm0, %v6877_v49, %v7919_v16 }
 0x279   : > { %v6932_v10 = vsel %vm6929_vm14, %v6913_v38, %v7928_v53  ;;  %v7939_v53 = vunpack.i.h.bf16 %v7937_v44 }
 0x27a   : > { %v4940_v36 = vrot.slane %v4926_v17, %v8307_v5  ;;  %v4941_v45 = vcombine.high %v4933_v63, %v4933_v63  ;;  %v5250_v25 = vrot.slane %v4933_v63, 7  ;;  %8051 = vrot.lane.b32.xlu1 %v8050_v60, %s8228_s21  ;;  %v6242_v62 = vcombine.low %v4925_v51, %v4933_v63 }
 0x27b   : > { %v5248_v60 = vsel %vm8444_vm6, %v5246_v47, %v5247_v29  ;;  %v12271_v29 = vcombine.low %v12163_v20, %v12212_v61 }
 0x27c   : > { %v5253_v39 = vrot.slane %v4941_v45, 7  ;;  %v6258_v31 = vcombine.low %v4941_v45, %v4940_v36  ;;  %v5574_v4 = vcombine.low %v4933_v63, %v4941_v45  ;;  %v5252_v43 = vrot.slane %v5250_v25, 2 }
 0x27d   : > { %v5251_v37 = vsel %vm8444_vm6, %v5249_v46, %v5250_v25  ;;  %v6256_v32 = vrot.slane %v6242_v62, %v8307_v5  ;;  %v5256_v24 = vrot.slane %v4940_v36, 7  ;;  %v7932_v62 = vpop.permute.xlu1 %7931  ;;  %v8055_v61 = vpack.i.bf16 %v12271_v29, %v12114_v7 }
 0x27e   : > { %v12257_v51 = vrot.slane %v5574_v4, %v8307_v5  ;;  %v5882_v23 = vcombine.low %v5248_v60, %v5251_v37  ;;  %v12260_v26 = vrot.slane %v6258_v31, %v8307_v5  ;;  %v5255_v40 = vrot.slane %v5253_v39, 2 }
 0x27f   : > { %v12263_v54 = vcombine.low %v12215_v8, %v6256_v32  ;;  %v5254_v45 = vsel %vm8444_vm6, %v5252_v43, %v5253_v39  ;;  %v7938_v39 = vunpack.i.l.bf16 %v7937_v44  ;;  %v7934_v4 = vunpack.i.h.bf16 %v7932_v62 }
 0x280   : > { %v6408_v17 = vcombine.low %v12218_v3, %v12257_v51  ;;  %v5896_v63 = vrot.slane %v5882_v23, %v8307_v5  ;;  %v6600_v33 = vcombine.low %v6256_v32, %v12260_v26  ;;  %v5257_v25 = vsel %vm8444_vm6, %v5255_v40, %v5256_v24 }
 0x281   : > { %v5898_v6 = vcombine.low %v5254_v45, %v5257_v25  ;;  %v7933_v49 = vunpack.i.l.bf16 %v7932_v62 }
 0x282   : > { %v4527_v47 = vpop.f32.mrb[32].mxu0  ;;  %v8060_v46 = vpack.i.bf16 %v6408_v17, %v6407_v58  ;;  %v12283_v20 = vcombine.low %v12234_v30, %v5896_v63  ;;  %v8070_v31 = vpack.i.bf16 %v6600_v33, %v6599_v57  ;;  %v6914_v58 = vsel %vm6910_vm13, %v6895_v11, %v7924_v34 }
 0x283   : > { %v4528_v35 = vadd.f32 %v11762_v41, %v4527_v47  ;;  %v7776_v3 = vpop.f32.mrb[33].mxu0  ;;  %v5906_v50 = vrot.slane %v5898_v6, %v8307_v5  ;;  %v6933_v16 = vsel %vm6929_vm14, %v6914_v58, %v7929_v9  ;;  %v4942_v57 = vcombine.high %v4940_v36, %v4940_v36 }
 0x284   : > { %8061 = vrot.lane.b32.xlu1 %v8060_v46, %s8233_s26  ;;  %v8045_v52 = vpack.i.bf16 %v12283_v20, %v12201_v14  ;;  %v6951_v32 = vsel %vm6948_vm1, %v6932_v10, %v7933_v49  ;;  %v6952_v9 = vsel %vm6948_vm1, %v6933_v16, %v7934_v4 }
 0x285   : > { %vm4587_vm7 = vcmp.ge.f32.partialorder %v4528_v35, 0.0  ;;  %v4612_v41 = vmul.f32 0.1, %v4528_v35  ;;  %v6504_v8 = vcombine.low %v5896_v63, %v5906_v50  ;;  %v6970_v23 = vsel %vm6967_vm2, %v6951_v32, %v7938_v39 }
 0x286   : > { %8046 = vrot.lane.b32.xlu0 %v8045_v52, %s8237_s28  ;;  %v7651_v47 = vrot.slane %v4942_v57, 9  ;;  %v6971_v19 = vsel %vm6967_vm2, %v6952_v9, %v7939_v53  ;;  %v12342_v52 = vld [vmem:[%s13069_s2] ss:$0 sm:$0xff] }
 0x287   : > { %v4637_v43 = vsel %vm4587_vm7, %v4528_v35, %v4612_v41  ;;  %v8065_v24 = vpack.i.bf16 %v6504_v8, %v6503_v28 }
 0x288   : > { %v4943_v60 = vcombine.high %v4637_v43, %v4637_v43  ;;  %v4950_v37 = vrot.slane %v4637_v43, %v8307_v5  ;;  %v7942_v14 = vpop.permute.xlu1 %7941  ;;  %8071 = vrot.lane.b32.xlu1 %v8070_v31, %s8234_s12 }
 0x289   : > { %v7943_v34 = vunpack.i.l.bf16 %v7942_v14  ;;  %v7944_v63 = vunpack.i.h.bf16 %v7942_v14 }
 0x28a   : > { %v12307_v40 = vrot.slane %v4943_v60, %v8307_v5  ;;  %v4958_v36 = vcombine.high %v4950_v37, %v4950_v37  ;;  %v5260_v38 = vrot.slane %v4950_v37, 7  ;;  %v5575_v17 = vcombine.low %v4942_v57, %v4950_v37  ;;  %8056 = vrot.lane.b32.xlu0 %v8055_v61, %s8227_s20 }
 0x28b   : > { %v6989_v44 = vsel %vm6986_vm3, %v6970_v23, %v7943_v34  ;;  %v6990_v3 = vsel %vm6986_vm3, %v6971_v19, %v7944_v63 }
 0x28c   : > { %v5262_v33 = vrot.slane %v5260_v38, 2  ;;  %v5263_v45 = vrot.slane %v4958_v36, 7  ;;  %v5266_v25 = vrot.slane %v12307_v40, 7  ;;  %7141 = vmatmul.mubr.f32.gmra.mrb[4].mxu1 %v6989_v44  ;;  %v4959_v30 = vcombine.high %v12307_v40, %v12307_v40  ;;  %v7952_v63 = vpop.permute.xlu1 %7951 }
 0x28d   : > { %7660 = vmatprep.mubr.msk.f32.mxu1 %vm4159_vm12, %v11875_v1  ;;  %v12319_v28 = vrot.slane %v5575_v17, %v8307_v5  ;;  %v5591_v62 = vcombine.low %v4958_v36, %v12307_v40  ;;  %v5261_v35 = vsel %vm8444_vm6, %v7651_v47, %v5260_v38  ;;  %v6259_v16 = vcombine.low %v4950_v37, %v4958_v36  ;;  %v7947_v17 = vpop.permute.xlu0 %7946 }
 0x28e   : > { %8066 = vrot.lane.b32.xlu0 %v8065_v24, %s8235_s22  ;;  %v5264_v1 = vsel %vm8444_vm6, %v5262_v33, %v5263_v45  ;;  %v5265_v46 = vrot.slane %v5263_v45, 2  ;;  %v5268_v6 = vrot.slane %v5266_v25, 2  ;;  %v5269_v4 = vrot.slane %v4959_v30, 7 }
 0x28f   : > { %v12330_v11 = vcombine.low %v12257_v51, %v12319_v28  ;;  %v12333_v10 = vrot.slane %v5591_v62, %v8307_v5  ;;  %v5899_v31 = vcombine.low %v5261_v35, %v5264_v1  ;;  %v12356_v60 = vrot.slane %v6259_v16, %v8307_v5 }
 0x290   : > { %7146 = vmatmul.mubr.f32.gmra.mrb[6].mxu1 %v6990_v3  ;;  %v5267_v41 = vsel %vm8444_vm6, %v5265_v46, %v5266_v25  ;;  %v5270_v61 = vsel %vm8444_vm6, %v5268_v6, %v5269_v4  ;;  %v5271_v44 = vrot.slane %v5269_v4, 2  ;;  %v6275_v9 = vcombine.low %v12307_v40, %v4959_v30 }
 0x291   : > { %7661 = vmatprep.mubr.msk.f32.mxu1 %vm4159_vm12, %v11976_v18  ;;  %v4532_v39 = vpop.f32.mrb[34].mxu0  ;;  %v6409_v49 = vcombine.low %v12319_v28, %v12333_v10  ;;  %v12348_v18 = vrot.slane %v5899_v31, %v8307_v5  ;;  %v5915_v57 = vcombine.low %v5267_v41, %v5270_v61  ;;  %v12366_v23 = vcombine.low %v12260_v26, %v12356_v60  ;;  %v7957_v46 = vpop.permute.xlu0 %7956 }
 0x292   : > { %v4533_v58 = vadd.f32 %v12342_v52, %v4532_v39  ;;  %v7779_v51 = vpop.f32.mrb[35].mxu0  ;;  %v7948_v28 = vunpack.i.l.bf16 %v7947_v17  ;;  %v12389_v3 = vrot.slane %v6275_v9, %v8307_v5  ;;  %v7953_v6 = vunpack.i.l.bf16 %v7952_v63  ;;  %v7962_v31 = vpop.permute.xlu1 %7961 }
 0x293   : > { %v12353_v8 = vcombine.low %v5906_v50, %v12348_v18  ;;  %v12362_v34 = vrot.slane %v5915_v57, %v8307_v5  ;;  %v7949_v51 = vunpack.i.h.bf16 %v7947_v17  ;;  %v7954_v61 = vunpack.i.h.bf16 %v7952_v63 }
 0x294   : > { %vm4588_vm9 = vcmp.ge.f32.partialorder %v4533_v58, 0.0  ;;  %v4613_v43 = vmul.f32 0.1, %v4533_v58 }
 0x295   : > { %v8085_v37 = vpack.i.bf16 %v12353_v8, %v12283_v20  ;;  %v6505_v20 = vcombine.low %v12348_v18, %v12362_v34  ;;  %v6879_v63 = vsel %vm4159_vm12, %v11770_v56, %v7949_v51  ;;  %v7967_v9 = vpop.permute.xlu0 %7966 }
 0x296   : > { %v4638_v14 = vsel %vm4588_vm9, %v4533_v58, %v4613_v43  ;;  %v6878_v43 = vsel %vm4159_vm12, %v11648_v55, %v7948_v28 }
 0x297   : > { %v4960_v32 = vcombine.high %v4638_v14, %v4638_v14  ;;  %v4967_v53 = vrot.slane %v4638_v14, %v8307_v5 }
 0x299   : > { %v12369_v50 = vrot.slane %v4960_v32, %v8307_v5  ;;  %v4975_v24 = vcombine.high %v4967_v53, %v4967_v53  ;;  %v5272_v36 = vrot.slane %v4967_v53, 7  ;;  %v5592_v38 = vcombine.low %v4959_v30, %v4967_v53 }
 0x29b   : > { %v12376_v47 = vcombine.high %v12369_v50, %v12369_v50  ;;  %v5274_v26 = vrot.slane %v5272_v36, 2  ;;  %v5275_v33 = vrot.slane %v4975_v24, 7  ;;  %v5606_v45 = vrot.slane %v5592_v38, %v8307_v5 }
 0x29c   : > { %v5273_v25 = vsel %vm8444_vm6, %v5271_v44, %v5272_v36  ;;  %v6276_v19 = vcombine.low %v4967_v53, %v4975_v24  ;;  %v6896_v53 = vsel %vm4263_vm0, %v6878_v43, %v7953_v6  ;;  %v7963_v24 = vunpack.i.l.bf16 %v7962_v31 }
 0x29d   : > { %v5608_v62 = vcombine.low %v12369_v50, %v12376_v47  ;;  %v5276_v40 = vsel %vm8444_vm6, %v5274_v26, %v5275_v33  ;;  %v12386_v30 = vcombine.low %v12333_v10, %v5606_v45  ;;  %v7958_v38 = vunpack.i.l.bf16 %v7957_v46 }
 0x29e   : > { %v5916_v35 = vcombine.low %v5273_v25, %v5276_v40  ;;  %v12392_v1 = vrot.slane %v6276_v19, %v8307_v5  ;;  %v7959_v44 = vunpack.i.h.bf16 %v7957_v46  ;;  %v6897_v33 = vsel %vm4263_vm0, %v6879_v63, %v7954_v61 }
 0x29f   : > { %v12395_v39 = vrot.slane %v5608_v62, %v8307_v5  ;;  %v8075_v41 = vpack.i.bf16 %v12386_v30, %v12330_v11  ;;  %v6915_v25 = vsel %vm6910_vm13, %v6896_v53, %v7958_v38  ;;  %v7969_v62 = vunpack.i.h.bf16 %v7967_v9 }
 0x2a0   : > { %v12400_v58 = vrot.slane %v5916_v35, %v8307_v5  ;;  %v12404_v10 = vcombine.low %v12389_v3, %v12392_v1  ;;  %v7968_v40 = vunpack.i.l.bf16 %v7967_v9  ;;  %v8090_v46 = vpack.i.bf16 %v12366_v23, %v12263_v54 }
 0x2a1   : > { %v4537_v4 = vpop.f32.mrb[36].mxu0  ;;  %v6410_v16 = vcombine.low %v5606_v45, %v12395_v39  ;;  %8076 = vrot.lane.b32.xlu0 %v8075_v41, %s8236_s18  ;;  %v7964_v45 = vunpack.i.h.bf16 %v7962_v31  ;;  %v6916_v6 = vsel %vm6910_vm13, %v6897_v33, %v7959_v44 }
 0x2a2   : > { %v4538_v57 = vadd.f32 %v12342_v52, %v4537_v4  ;;  %v7782_v14 = vpop.f32.mrb[37].mxu0  ;;  %v12413_v32 = vcombine.low %v12362_v34, %v12400_v58 }
 0x2a3   : > { %v8095_v36 = vpack.i.bf16 %v6410_v16, %v6409_v49  ;;  %v6934_v49 = vsel %vm6929_vm14, %v6915_v25, %v7963_v24  ;;  %v6935_v4 = vsel %vm6929_vm14, %v6916_v6, %v7964_v45  ;;  %v7652_v16 = vrot.slane %v12369_v50, 9 }
 0x2a4   : > { %vm4589_vm10 = vcmp.ge.f32.partialorder %v4538_v57, 0.0  ;;  %v4614_v17 = vmul.f32 0.1, %v4538_v57  ;;  %v8080_v55 = vpack.i.bf16 %v12413_v32, %v12353_v8  ;;  %v7972_v26 = vpop.permute.xlu1 %7971  ;;  %v5279_v8 = vrot.slane %v12376_v47, 7 }
 0x2a5   : > { %8086 = vrot.lane.b32.xlu0 %v8085_v37, %s8228_s21  ;;  %v7973_v56 = vunpack.i.l.bf16 %v7972_v26  ;;  %v6953_v61 = vsel %vm6948_vm1, %v6934_v49, %v7968_v40  ;;  %v6601_v50 = vcombine.low %v12356_v60, %v12389_v3  ;;  %v6954_v9 = vsel %vm6948_vm1, %v6935_v4, %v7969_v62 }
 0x2a6   : > { %v4639_v19 = vsel %vm4589_vm10, %v4538_v57, %v4614_v17  ;;  %8081 = vrot.lane.b32.xlu1 %v8080_v55, %s8237_s28  ;;  %v7974_v57 = vunpack.i.h.bf16 %v7972_v26  ;;  %v5281_v24 = vrot.slane %v5279_v8, 2  ;;  %v5280_v26 = vsel %vm8444_vm6, %v7652_v16, %v5279_v8 }
 0x2a7   : > { %v4984_v28 = vrot.slane %v4639_v19, %v8307_v5  ;;  %v4977_v35 = vcombine.high %v4639_v19, %v4639_v19  ;;  %v6972_v14 = vsel %vm6967_vm2, %v6953_v61, %v7973_v56 }
 0x2a8   : > { %v6973_v33 = vsel %vm6967_vm2, %v6954_v9, %v7974_v57  ;;  %v7982_v34 = vpop.permute.xlu1 %7981 }
 0x2a9   : > { %v4992_v31 = vcombine.high %v4984_v28, %v4984_v28  ;;  %v5282_v41 = vrot.slane %v4984_v28, 7  ;;  %v7977_v37 = vpop.permute.xlu0 %7976  ;;  %v6292_v51 = vcombine.low %v12376_v47, %v4984_v28  ;;  %8096 = vrot.lane.b32.xlu0 %v8095_v36, %s8233_s26  ;;  %v4991_v38 = vrot.slane %v4977_v35, %v8307_v5 }
 0x2aa   : > { %v7978_v43 = vunpack.i.l.bf16 %v7977_v37  ;;  %8091 = vrot.lane.b32.xlu1 %v8090_v46, %s8227_s20  ;;  %v7979_v17 = vunpack.i.h.bf16 %v7977_v37 }
 0x2ab   : > { %v6300_v53 = vrot.slane %v6292_v51, %v8307_v5  ;;  %v5285_v47 = vrot.slane %v4992_v31, 7  ;;  %v5283_v63 = vsel %vm8444_vm6, %v5281_v24, %v5282_v41  ;;  %v5284_v44 = vrot.slane %v5282_v41, 2 }
 0x2ac   : > { %v6991_v55 = vsel %vm6986_vm3, %v6972_v14, %v7978_v43  ;;  %v5932_v25 = vcombine.low %v5280_v26, %v5283_v63  ;;  %v5609_v19 = vcombine.low %v4984_v28, %v4992_v31  ;;  %v5288_v60 = vrot.slane %v4991_v38, 7 }
 0x2ad   : > { %7151 = vmatmul.mubr.f32.gmra.mrb[8].mxu1 %v6991_v55  ;;  %v6602_v36 = vcombine.low %v12392_v1, %v6300_v53  ;;  %v6992_v3 = vsel %vm6986_vm3, %v6973_v33, %v7979_v17  ;;  %v5287_v1 = vrot.slane %v5285_v47, 2  ;;  %v4993_v56 = vcombine.high %v4991_v38, %v4991_v38 }
 0x2ae   : > { %7662 = vmatprep.mubr.msk.f32.mxu1 %vm4159_vm12, %v12011_v27  ;;  %v5940_v27 = vrot.slane %v5932_v25, %v8307_v5  ;;  %v12458_v40 = vrot.slane %v5609_v19, %v8307_v5  ;;  %v5286_v28 = vsel %vm8444_vm6, %v5284_v44, %v5285_v47 }
 0x2af   : > { %v8105_v45 = vpack.i.bf16 %v6602_v36, %v6601_v50  ;;  %v5289_v35 = vsel %vm8444_vm6, %v5287_v1, %v5288_v60  ;;  %v5291_v43 = vrot.slane %v4993_v56, 7  ;;  %v5625_v14 = vcombine.low %v4991_v38, %v4993_v56  ;;  %v7987_v36 = vpop.permute.xlu0 %7986 }
 0x2b0   : > { %v6506_v46 = vcombine.low %v12400_v58, %v5940_v27  ;;  %v5933_v6 = vcombine.low %v5286_v28, %v5289_v35  ;;  %v12467_v37 = vcombine.low %v12395_v39, %v12458_v40  ;;  %v7988_v1 = vunpack.i.l.bf16 %v7987_v36 }
 0x2b1   : > { %7156 = vmatmul.mubr.f32.gmra.mrb[10].mxu1 %v6992_v3  ;;  %8106 = vrot.lane.b32.xlu0 %v8105_v45, %s8234_s12  ;;  %v4542_v49 = vpop.f32.mrb[38].mxu0  ;;  %v5293_v50 = vrot.slane %v5291_v43, 2  ;;  %v7984_v3 = vunpack.i.h.bf16 %v7982_v34 }
 0x2b2   : > { %v4543_v62 = vadd.f32 %v12342_v52, %v4542_v49  ;;  %7663 = vmatprep.mubr.msk.f32.mxu1 %vm4159_vm12, %v12044_v21  ;;  %v7785_v8 = vpop.f32.mrb[39].mxu0  ;;  %v6293_v21 = vcombine.low %v4992_v31, %v4991_v38  ;;  %v8100_v51 = vpack.i.bf16 %v6506_v46, %v6505_v20  ;;  %v12473_v4 = vrot.slane %v5933_v6, %v8307_v5 }
 0x2b3   : > { %v5290_v31 = vrot.slane %v5288_v60, 2  ;;  %v7983_v38 = vunpack.i.l.bf16 %v7982_v34 }
 0x2b4   : > { %vm4590_vm11 = vcmp.ge.f32.partialorder %v4543_v62, 0.0  ;;  %v4615_v41 = vmul.f32 0.1, %v4543_v62  ;;  %v12476_v61 = vrot.slane %v6293_v21, %v8307_v5  ;;  %8101 = vrot.lane.b32.xlu1 %v8100_v51, %s8235_s22  ;;  %v12481_v39 = vcombine.low %v5940_v27, %v12473_v4  ;;  %v7992_v51 = vpop.permute.xlu1 %7991 }
 0x2b5   : > { %v5292_v19 = vsel %vm8444_vm6, %v5290_v31, %v5291_v43  ;;  %v6880_v21 = vsel %vm4159_vm12, %v11830_v0, %v7983_v38  ;;  %v6881_v0 = vsel %vm4159_vm12, %v11947_v42, %v7984_v3 }
 0x2b6   : > { %v4640_v16 = vsel %vm4590_vm11, %v4543_v62, %v4615_v41  ;;  %v12484_v18 = vcombine.low %v6300_v53, %v12476_v61  ;;  %v8120_v55 = vpack.i.bf16 %v12481_v39, %v12413_v32  ;;  %v12492_v53 = vrot.slane %v5625_v14, %v8307_v5 }
 0x2b7   : > { %v4994_v58 = vcombine.high %v4640_v16, %v4640_v16  ;;  %v5001_v57 = vrot.slane %v4640_v16, %v8307_v5  ;;  %v7997_v35 = vpop.permute.xlu0 %7996  ;;  %v7989_v16 = vunpack.i.h.bf16 %v7987_v36 }
 0x2b8   : > { %v7999_v38 = vunpack.i.h.bf16 %v7997_v35 }
 0x2b9   : > { %v5008_v20 = vrot.slane %v4994_v58, %v8307_v5  ;;  %v5009_v24 = vcombine.high %v5001_v57, %v5001_v57  ;;  %v5294_v47 = vrot.slane %v5001_v57, 7  ;;  %v6309_v17 = vcombine.low %v4993_v56, %v5001_v57 }
 0x2bb   : > { %v12489_v63 = vcombine.high %v5008_v20, %v5008_v20  ;;  %v7653_v44 = vrot.slane %v5009_v24, 9  ;;  %v5298_v9 = vrot.slane %v5008_v20, 7  ;;  %v5626_v26 = vcombine.low %v5009_v24, %v5008_v20 }
 0x2bc   : > { %v5295_v33 = vsel %vm8444_vm6, %v5293_v50, %v5294_v47  ;;  %v12497_v45 = vrot.slane %v6309_v17, %v8307_v5  ;;  %v6898_v24 = vsel %vm4263_vm0, %v6880_v21, %v7988_v1  ;;  %v7998_v47 = vunpack.i.l.bf16 %v7997_v35 }
 0x2bd   : > { %v5300_v25 = vrot.slane %v5298_v9, 2  ;;  %v12500_v32 = vrot.slane %v5626_v26, %v8307_v5  ;;  %v5301_v60 = vrot.slane %v12489_v63, 7  ;;  %v5949_v49 = vcombine.low %v5292_v19, %v5295_v33  ;;  %v8002_v26 = vpop.permute.xlu1 %8001 }
 0x2be   : > { %v6310_v56 = vcombine.low %v5008_v20, %v12489_v63  ;;  %v5299_v62 = vsel %vm8444_vm6, %v7653_v44, %v5298_v9  ;;  %v6603_v28 = vcombine.low %v12476_v61, %v12497_v45  ;;  %v7993_v17 = vunpack.i.l.bf16 %v7992_v51 }
 0x2bf   : > { %v12508_v27 = vcombine.low %v12492_v53, %v12500_v32  ;;  %v5302_v8 = vsel %vm8444_vm6, %v5300_v25, %v5301_v60  ;;  %v12519_v6 = vrot.slane %v5949_v49, %v8307_v5  ;;  %v7994_v44 = vunpack.i.h.bf16 %v7992_v51 }
 0x2c0   : > { %v5950_v46 = vcombine.low %v5299_v62, %v5302_v8  ;;  %v12522_v41 = vrot.slane %v6310_v56, %v8307_v5  ;;  %v6899_v9 = vsel %vm4263_vm0, %v6881_v0, %v7989_v16  ;;  %v6917_v33 = vsel %vm6910_vm13, %v6898_v24, %v7993_v17 }
 0x2c1   : > { %v4547_v43 = vpop.f32.mrb[40].mxu0  ;;  %v8110_v58 = vpack.i.bf16 %v12508_v27, %v12467_v37  ;;  %v6507_v34 = vcombine.low %v12473_v4, %v12519_v6  ;;  %v6936_v3 = vsel %vm6929_vm14, %v6917_v33, %v7998_v47  ;;  %v8003_v56 = vunpack.i.l.bf16 %v8002_v26 }
 0x2c2   : > { %v4548_v57 = vadd.f32 %v12342_v52, %v4547_v43  ;;  %v7788_v31 = vpop.f32.mrb[41].mxu0  ;;  %v12530_v14 = vrot.slane %v5950_v46, %v8307_v5  ;;  %v12536_v20 = vcombine.low %v12497_v45, %v12522_v41  ;;  %v6918_v62 = vsel %vm6910_vm13, %v6899_v9, %v7994_v44 }
 0x2c3   : > { %8111 = vrot.lane.b32.xlu1 %v8110_v58, %s8236_s18  ;;  %v8004_v35 = vunpack.i.h.bf16 %v8002_v26  ;;  %v8125_v16 = vpack.i.bf16 %v12484_v18, %v12404_v10  ;;  %v6955_v43 = vsel %vm6948_vm1, %v6936_v3, %v8003_v56  ;;  %v5303_v44 = vrot.slane %v5301_v60, 2 }
 0x2c4   : > { %vm4591_vm15 = vcmp.ge.f32.partialorder %v4548_v57, 0.0  ;;  %v4616_v50 = vmul.f32 0.1, %v4548_v57  ;;  %v12544_v36 = vcombine.low %v12519_v6, %v12530_v14 }
 0x2c6   : > { %v4641_v42 = vsel %vm4591_vm15, %v4548_v57, %v4616_v50  ;;  %v8007_v25 = vpop.permute.xlu0 %8006  ;;  %v8115_v19 = vpack.i.bf16 %v12544_v36, %v12481_v39  ;;  %v6937_v39 = vsel %vm6929_vm14, %v6918_v62, %v7999_v38 }
 0x2c7   : > { %v5011_v1 = vcombine.high %v4641_v42, %v4641_v42  ;;  %v5018_v49 = vrot.slane %v4641_v42, %v8307_v5  ;;  %8121 = vrot.lane.b32.xlu1 %v8120_v55, %s8228_s21  ;;  %v8008_v8 = vunpack.i.l.bf16 %v8007_v25  ;;  %v8009_v47 = vunpack.i.h.bf16 %v8007_v25 }
 0x2c8   : > { %8116 = vrot.lane.b32.xlu0 %v8115_v19, %s8237_s28  ;;  %v6411_v25 = vcombine.low %v12458_v40, %v12492_v53  ;;  %v6956_v3 = vsel %vm6948_vm1, %v6937_v39, %v8004_v35 }
 0x2c9   : > { %v12556_v46 = vrot.slane %v5011_v1, %v8307_v5  ;;  %v5026_v21 = vcombine.high %v5018_v49, %v5018_v49  ;;  %v5304_v51 = vrot.slane %v5018_v49, 7  ;;  %v5642_v55 = vcombine.low %v12489_v63, %v5018_v49 }
 0x2ca   : > { %v6974_v50 = vsel %vm6967_vm2, %v6955_v43, %v8008_v8  ;;  %v6975_v56 = vsel %vm6967_vm2, %v6956_v3, %v8009_v47 }
 0x2cb   : > { %v12565_v58 = vcombine.high %v12556_v46, %v12556_v46  ;;  %v5306_v57 = vrot.slane %v5304_v51, 2  ;;  %v5307_v31 = vrot.slane %v5026_v21, 7  ;;  %v5310_v0 = vrot.slane %v12556_v46, 7  ;;  %v8012_v24 = vpop.permute.xlu1 %8011 }
 0x2cc   : > { %v8013_v17 = vunpack.i.l.bf16 %v8012_v24  ;;  %8126 = vrot.lane.b32.xlu0 %v8125_v16, %s8227_s20  ;;  %v5650_v38 = vrot.slane %v5642_v55, %v8307_v5  ;;  %v6326_v33 = vcombine.low %v5018_v49, %v5026_v21  ;;  %v8014_v42 = vunpack.i.h.bf16 %v8012_v24 }
 0x2cd   : > { %v5312_v9 = vrot.slane %v5310_v0, 2  ;;  %v5313_v26 = vrot.slane %v12565_v58, 7  ;;  %v5305_v60 = vsel %vm8444_vm6, %v5303_v44, %v5304_v51  ;;  %v5308_v49 = vsel %vm8444_vm6, %v5306_v57, %v5307_v31 }
 0x2ce   : > { %v6993_v19 = vsel %vm6986_vm3, %v6974_v50, %v8013_v17  ;;  %v6412_v1 = vcombine.low %v12500_v32, %v5650_v38  ;;  %v12580_v63 = vrot.slane %v6326_v33, %v8307_v5  ;;  %v5966_v40 = vcombine.low %v5305_v60, %v5308_v49 }
 0x2cf   : > { %7161 = vmatmul.mubr.f32.gmra.mrb[12].mxu1 %v6993_v19  ;;  %v5643_v53 = vcombine.low %v5026_v21, %v12556_v46  ;;  %v5309_v35 = vrot.slane %v5307_v31, 2  ;;  %v5314_v51 = vsel %vm8444_vm6, %v5312_v9, %v5313_v26  ;;  %v6994_v43 = vsel %vm6986_vm3, %v6975_v56, %v8014_v42 }
 0x2d0   : > { %7664 = vmatprep.mubr.msk.f32.mxu1 %vm4159_vm12, %v12114_v7  ;;  %v8130_v62 = vpack.i.bf16 %v6412_v1, %v6411_v25  ;;  %v6604_v32 = vcombine.low %v12522_v41, %v12580_v63  ;;  %v5974_v7 = vrot.slane %v5966_v40, %v8307_v5  ;;  %v6327_v26 = vcombine.low %v12556_v46, %v12565_v58 }
 0x2d1   : > { %v4552_v8 = vpop.f32.mrb[42].mxu0  ;;  %v12602_v41 = vrot.slane %v5643_v53, %v8307_v5  ;;  %v5311_v55 = vsel %vm8444_vm6, %v5309_v35, %v5310_v0 }
 0x2d2   : > { %v4553_v39 = vadd.f32 %v12342_v52, %v4552_v8  ;;  %v7791_v16 = vpop.f32.mrb[43].mxu0  ;;  %8131 = vrot.lane.b32.xlu1 %v8130_v62, %s8233_s26  ;;  %v8140_v21 = vpack.i.bf16 %v6604_v32, %v6603_v28  ;;  %v6508_v31 = vcombine.low %v12530_v14, %v5974_v7  ;;  %v5967_v24 = vcombine.low %v5311_v55, %v5314_v51 }
 0x2d3   : > { %7166 = vmatmul.mubr.f32.gmra.mrb[14].mxu1 %v6994_v43  ;;  %v12610_v47 = vcombine.low %v5650_v38, %v12602_v41  ;;  %v12644_v56 = vrot.slane %v6327_v26, %v8307_v5  ;;  %v8017_v16 = vpop.permute.xlu0 %8016 }
 0x2d4   : > { %vm4592_vm4 = vcmp.ge.f32.partialorder %v4553_v39, 0.0  ;;  %v4617_v57 = vmul.f32 0.1, %v4553_v39  ;;  %7665 = vmatprep.mubr.msk.f32.mxu1 %vm4159_vm12, %v12271_v29  ;;  %v8135_v61 = vpack.i.bf16 %v6508_v31, %v6507_v34  ;;  %v12616_v45 = vrot.slane %v5967_v24, %v8307_v5 }
 0x2d5   : > { %v8019_v31 = vunpack.i.h.bf16 %v8017_v16  ;;  %v8018_v24 = vunpack.i.l.bf16 %v8017_v16 }
 0x2d6   : > { %v4642_v17 = vsel %vm4592_vm4, %v4553_v39, %v4617_v57  ;;  %8141 = vrot.lane.b32.xlu1 %v8140_v21, %s8234_s12  ;;  %8136 = vrot.lane.b32.xlu0 %v8135_v61, %s8235_s22  ;;  %v12622_v29 = vcombine.low %v5974_v7, %v12616_v45 }
 0x2d7   : > { %v5028_v28 = vcombine.high %v4642_v17, %v4642_v17  ;;  %v5035_v0 = vrot.slane %v4642_v17, %v8307_v5 }
 0x2d8   : > { %v8155_v4 = vpack.i.bf16 %v12622_v29, %v12544_v36 }
 0x2d9   : > { %v5042_v14 = vrot.slane %v5028_v28, %v8307_v5  ;;  %v5043_v50 = vcombine.high %v5035_v0, %v5035_v0  ;;  %v7654_v9 = vrot.slane %v5035_v0, 9  ;;  %v8022_v28 = vpop.permute.xlu1 %8021 }
 0x2db   : > { %v5044_v6 = vcombine.high %v5042_v14, %v5042_v14  ;;  %v5317_v34 = vrot.slane %v5043_v50, 7  ;;  %v6413_v44 = vcombine.low %v5035_v0, %v5043_v50  ;;  %v5320_v33 = vrot.slane %v5042_v14, 7 }
 0x2dc   : > { %v6605_v60 = vcombine.low %v5043_v50, %v5042_v14 }
 0x2dd   : > { %v5319_v38 = vrot.slane %v5317_v34, 2  ;;  %v12630_v42 = vrot.slane %v6413_v44, %v8307_v5  ;;  %v6422_v19 = vcombine.low %v5042_v14, %v5044_v6  ;;  %v5318_v25 = vsel %vm8444_vm6, %v7654_v9, %v5317_v34  ;;  %v8027_v44 = vpop.permute.xlu0 %8026 }
 0x2de   : > { %v12647_v40 = vrot.slane %v6605_v60, %v8307_v5  ;;  %v5323_v7 = vrot.slane %v5044_v6, 7  ;;  %v5322_v57 = vrot.slane %v5320_v33, 2  ;;  %v8032_v60 = vpop.permute.xlu1 %8031 }
 0x2df   : > { %v12635_v3 = vrot.slane %v6422_v19, %v8307_v5  ;;  %v6421_v36 = vcombine.low %v12602_v41, %v12630_v42  ;;  %v5321_v1 = vsel %vm8444_vm6, %v5319_v38, %v5320_v33  ;;  %v6883_v19 = vsel %vm4159_vm12, %v12036_v13, %v8019_v31 }
 0x2e0   : > { %v6509_v46 = vcombine.low %v5318_v25, %v5321_v1  ;;  %v6613_v35 = vcombine.low %v12644_v56, %v12647_v40  ;;  %v5325_v14 = vrot.slane %v5323_v7, 2  ;;  %v5324_v38 = vsel %vm8444_vm6, %v5322_v57, %v5323_v7 }
 0x2e1   : > { %v4557_v58 = vpop.f32.mrb[44].mxu0  ;;  %v6685_v49 = vcombine.low %v12630_v42, %v12635_v3  ;;  %v8023_v25 = vunpack.i.l.bf16 %v8022_v28  ;;  %v8033_v7 = vunpack.i.l.bf16 %v8032_v60 }
 0x2e2   : > { %v4558_v53 = vadd.f32 %v12342_v52, %v4557_v58  ;;  %v7794_v62 = vpop.f32.mrb[45].mxu0  ;;  %v12651_v8 = vrot.slane %v6509_v46, %v8307_v5 }
 0x2e3   : > { %v8145_v32 = vpack.i.bf16 %v6685_v49, %v12610_v47  ;;  %v8028_v62 = vunpack.i.l.bf16 %v8027_v44 }
 0x2e4   : > { %vm4593_vm5 = vcmp.ge.f32.partialorder %v4558_v53, 0.0  ;;  %v4618_v51 = vmul.f32 0.1, %v4558_v53  ;;  %v6517_v39 = vcombine.low %v12616_v45, %v12651_v8 }
 0x2e5   : > { %8146 = vrot.lane.b32.xlu0 %v8145_v32, %s8236_s18 }
 0x2e6   : > { %v4643_v43 = vsel %vm4593_vm5, %v4558_v53, %v4618_v51  ;;  %v8024_v53 = vunpack.i.h.bf16 %v8022_v28 }
 0x2e7   : > { %v5045_v21 = vcombine.high %v4643_v43, %v4643_v43  ;;  %v5052_v55 = vrot.slane %v4643_v43, %v8307_v5 }
 0x2e8   : > { %v6901_v42 = vsel %vm4263_vm0, %v6883_v19, %v8024_v53 }
 0x2e9   : > { %v5060_v17 = vcombine.high %v5052_v55, %v5052_v55  ;;  %v5326_v61 = vrot.slane %v5052_v55, 7  ;;  %8156 = vrot.lane.b32.xlu0 %v8155_v4, %s8228_s21  ;;  %v5059_v0 = vrot.slane %v5045_v21, %v8307_v5  ;;  %v6614_v50 = vcombine.low %v5044_v6, %v5052_v55 }
 0x2ea   : > { %v6882_v4 = vsel %vm4159_vm12, %v11998_v15, %v8018_v24 }
 0x2eb   : > { %v5329_v34 = vrot.slane %v5060_v17, 7  ;;  %v5328_v9 = vrot.slane %v5326_v61, 2  ;;  %v6423_v26 = vcombine.low %v5052_v55, %v5060_v17  ;;  %v5327_v33 = vsel %vm8444_vm6, %v5325_v14, %v5326_v61 }
 0x2ec   : > { %v6518_v1 = vcombine.low %v5324_v38, %v5327_v33  ;;  %v5332_v6 = vrot.slane %v5059_v0, 7  ;;  %v6615_v49 = vcombine.low %v5060_v17, %v5059_v0  ;;  %v12675_v51 = vrot.slane %v6614_v50, %v8307_v5  ;;  %v8037_v50 = vpop.permute.xlu0 %8036 }
 0x2ed   : > { %v12671_v46 = vrot.slane %v6423_v26, %v8307_v5  ;;  %v5331_v58 = vrot.slane %v5329_v34, 2  ;;  %v5330_v15 = vsel %vm8444_vm6, %v5328_v9, %v5329_v34  ;;  %v6900_v24 = vsel %vm4263_vm0, %v6882_v4, %v8023_v25  ;;  %v8042_v34 = vpop.permute.xlu1 %8041 }
 0x2ee   : > { %v6526_v32 = vrot.slane %v6518_v1, %v8307_v5  ;;  %v12684_v43 = vrot.slane %v6615_v49, %v8307_v5  ;;  %v6847_v31 = vcombine.low %v12647_v40, %v12675_v51  ;;  %v8029_v14 = vunpack.i.h.bf16 %v8027_v44 }
 0x2ef   : > { %v6438_v13 = vcombine.low %v12635_v3, %v12671_v46  ;;  %v5333_v16 = vsel %vm8444_vm6, %v5331_v58, %v5332_v6  ;;  %v12699_v26 = vcombine.low %v12580_v63, %v12644_v56  ;;  %v6919_v33 = vsel %vm6910_vm13, %v6900_v24, %v8028_v62 }
 0x2f0   : > { %v6766_v55 = vcombine.low %v12651_v8, %v6526_v32  ;;  %v6519_v57 = vcombine.low %v5330_v15, %v5333_v16  ;;  %v6630_v28 = vcombine.low %v12675_v51, %v12684_v43  ;;  %v5061_v4 = vcombine.high %v5059_v0, %v5059_v0 }
 0x2f1   : > { %v4562_v21 = vpop.f32.mrb[46].mxu0  ;;  %v8165_v61 = vpack.i.bf16 %v6438_v13, %v6421_v36  ;;  %v6938_v36 = vsel %vm6929_vm14, %v6919_v33, %v8033_v7  ;;  %v8038_v63 = vunpack.i.l.bf16 %v8037_v50  ;;  %v8034_v44 = vunpack.i.h.bf16 %v8032_v60 }
 0x2f2   : > { %v4563_v3 = vadd.f32 %v12342_v52, %v4562_v21  ;;  %v7797_v17 = vpop.f32.mrb[47].mxu0  ;;  %v8150_v9 = vpack.i.bf16 %v6766_v55, %v12622_v29  ;;  %v12702_v38 = vrot.slane %v6519_v57, %v8307_v5  ;;  %v8043_v25 = vunpack.i.l.bf16 %v8042_v34 }
 0x2f3   : > { %8166 = vrot.lane.b32.xlu0 %v8165_v61, %s8233_s26  ;;  %v8160_v0 = vpack.i.bf16 %v12699_v26, %v12536_v20  ;;  %v6920_v49 = vsel %vm6910_vm13, %v6901_v42, %v8029_v14  ;;  %v8039_v53 = vunpack.i.h.bf16 %v8037_v50  ;;  %v7655_v62 = vrot.slane %v5061_v4, 9 }
 0x2f4   : > { %vm4594_vm7 = vcmp.ge.f32.partialorder %v4563_v3, 0.0  ;;  %v4619_v41 = vmul.f32 0.1, %v4563_v3  ;;  %8151 = vrot.lane.b32.xlu1 %v8150_v9, %s8237_s28  ;;  %v6534_v29 = vcombine.low %v6526_v32, %v12702_v38  ;;  %v6957_v60 = vsel %vm6948_vm1, %v6938_v36, %v8038_v63 }
 0x2f5   : > { %v6939_v15 = vsel %vm6929_vm14, %v6920_v49, %v8034_v44  ;;  %v8044_v16 = vunpack.i.h.bf16 %v8042_v34 }
 0x2f6   : > { %v4644_v1 = vsel %vm4594_vm7, %v4563_v3, %v4619_v41  ;;  %v8170_v19 = vpack.i.bf16 %v6534_v29, %v6517_v39  ;;  %v6958_v50 = vsel %vm6948_vm1, %v6939_v15, %v8039_v53 }
 0x2f7   : > { %v5062_v6 = vcombine.high %v4644_v1, %v4644_v1  ;;  %v12711_v58 = vrot.slane %v4644_v1, %v8307_v5  ;;  %6663 = vrot.lane.b32.xlu0 %v6613_v35, %s8234_s12  ;;  %v6976_v35 = vsel %vm6967_vm2, %v6957_v60, %v8043_v25 }
 0x2f8   : > { %v8047_v8 = vpop.permute.xlu0 %8046  ;;  %8161 = vrot.lane.b32.xlu1 %v8160_v0, %s8227_s20 }
 0x2f9   : > { %v12725_v32 = vrot.slane %v5062_v6, %v8307_v5  ;;  %v5077_v13 = vcombine.high %v12711_v58, %v12711_v58  ;;  %v5336_v45 = vrot.slane %v12711_v58, 7  ;;  %v6686_v39 = vcombine.low %v5061_v4, %v12711_v58 }
 0x2fa   : > { %v8048_v56 = vunpack.i.l.bf16 %v8047_v8  ;;  %v8049_v21 = vunpack.i.h.bf16 %v8047_v8 }
 0x2fb   : > { %v5338_v7 = vrot.slane %v5336_v45, 2  ;;  %v4567_v55 = vpop.f32.mrb[48].mxu0  ;;  %v6693_v57 = vrot.slane %v6686_v39, %v8307_v5  ;;  %v5337_v24 = vsel %vm8444_vm6, %v7655_v62, %v5336_v45  ;;  %v5342_v3 = vrot.slane %v12725_v32, 7 }
 0x2fc   : > { %v4568_v17 = vadd.f32 %v12342_v52, %v4567_v55  ;;  %v6995_v61 = vsel %vm6986_vm3, %v6976_v35, %v8048_v56  ;;  %v7800_v14 = vpop.f32.mrb[49].mxu0  ;;  %8171 = vrot.lane.b32.xlu1 %v8170_v19, %s8235_s22  ;;  %v5339_v9 = vrot.slane %v5077_v13, 7  ;;  %v5078_v33 = vcombine.high %v12725_v32, %v12725_v32 }
 0x2fd   : > { %7171 = vmatmul.mubr.f32.gmra.mrb[16].mxu1 %v6995_v61  ;;  %v6694_v34 = vcombine.low %v12671_v46, %v6693_v57  ;;  %v6977_v52 = vsel %vm6967_vm2, %v6958_v50, %v8044_v16  ;;  %v6695_v46 = vcombine.low %v5077_v13, %v12725_v32  ;;  %v5344_v44 = vrot.slane %v5342_v3, 2  ;;  %v8057_v57 = vpop.permute.xlu0 %8056 }
 0x2fe   : > { %vm4595_vm9 = vcmp.ge.f32.partialorder %v4568_v17, 0.0  ;;  %v4620_v4 = vmul.f32 0.1, %v4568_v17  ;;  %7666 = vmatprep.mubr.msk.f32.mxu1 %vm4159_vm12, %v12263_v54  ;;  %v6996_v41 = vsel %vm6986_vm3, %v6977_v52, %v8049_v21  ;;  %v5340_v42 = vsel %vm8444_vm6, %v5338_v7, %v5339_v9 }
 0x2ff   : > { %v5341_v36 = vrot.slane %v5339_v9, 2  ;;  %v6767_v63 = vcombine.low %v5337_v24, %v5340_v42  ;;  %v5345_v1 = vrot.slane %v5078_v33, 7  ;;  %v6703_v62 = vrot.slane %v6695_v46, %v8307_v5 }
 0x300   : > { %v4645_v29 = vsel %vm4595_vm9, %v4568_v17, %v4620_v4  ;;  %6744 = vrot.lane.b32.xlu1 %v6694_v34, %s8236_s18  ;;  %v6857_v7 = vcombine.low %v12725_v32, %v5078_v33  ;;  %v8058_v34 = vunpack.i.l.bf16 %v8057_v57  ;;  %v8059_v52 = vunpack.i.h.bf16 %v8057_v57 }
 0x301   : > { %v5085_v25 = vrot.slane %v4645_v29, %v8307_v5  ;;  %7176 = vmatmul.mubr.f32.gmra.mrb[18].mxu1 %v6996_v41  ;;  %v6774_v54 = vrot.slane %v6767_v63, %v8307_v5  ;;  %v5343_v49 = vsel %vm8444_vm6, %v5341_v36, %v5342_v3  ;;  %v5346_v60 = vsel %vm8444_vm6, %v5344_v44, %v5345_v1  ;;  %v8052_v3 = vpop.permute.xlu1 %8051  ;;  %v8067_v9 = vpop.permute.xlu0 %8066 }
 0x302   : > { %7667 = vmatprep.mubr.msk.f32.mxu1 %vm4159_vm12, %v12366_v23  ;;  %v5347_v39 = vrot.slane %v5345_v1, 2  ;;  %v6776_v15 = vcombine.low %v5343_v49, %v5346_v60  ;;  %v12784_v2 = vrot.slane %v6857_v7, %v8307_v5  ;;  %v8053_v14 = vunpack.i.l.bf16 %v8052_v3 }
 0x303   : > { %v5086_v6 = vcombine.high %v5085_v25, %v5085_v25  ;;  %v5348_v0 = vrot.slane %v5085_v25, 7  ;;  %v6696_v19 = vcombine.low %v5078_v33, %v5085_v25  ;;  %v6775_v53 = vcombine.low %v12702_v38, %v6774_v54 }
 0x304   : > { %6665 = vrot.lane.b32.xlu1 %v6630_v28, %s8234_s12  ;;  %v6848_v38 = vcombine.low %v12711_v58, %v5077_v13  ;;  %v6784_v24 = vrot.slane %v6776_v15, %v8307_v5  ;;  %v8054_v33 = vunpack.i.h.bf16 %v8052_v3  ;;  %v6884_v4 = vsel %vm4159_vm12, %v12080_v59, %v8053_v14 }
 0x305   : > { %v5350_v45 = vrot.slane %v5348_v0, 2  ;;  %v5351_v8 = vrot.slane %v5086_v6, 7  ;;  %v6710_v23 = vrot.slane %v6696_v19, %v8307_v5  ;;  %6825 = vrot.lane.b32.xlu0 %v6775_v53, %s8237_s28  ;;  %v5349_v56 = vsel %vm8444_vm6, %v5347_v39, %v5348_v0  ;;  %v8062_v50 = vpop.permute.xlu1 %8061 }
 0x306   : > { %v12776_v28 = vrot.slane %v6848_v38, %v8307_v5  ;;  %v6858_v55 = vcombine.low %v5085_v25, %v5086_v6  ;;  %v6902_v41 = vsel %vm4263_vm0, %v6884_v4, %v8058_v34  ;;  %v8068_v42 = vunpack.i.l.bf16 %v8067_v9 }
 0x307   : > { %v6711_v16 = vcombine.low %v6703_v62, %v6710_v23  ;;  %v5352_v35 = vsel %vm8444_vm6, %v5350_v45, %v5351_v8  ;;  %v6885_v63 = vsel %vm4159_vm12, %v12187_v12, %v8054_v33  ;;  %v8069_v25 = vunpack.i.h.bf16 %v8067_v9 }
 0x308   : > { %v6777_v21 = vcombine.low %v5349_v56, %v5352_v35  ;;  %v6856_v13 = vcombine.low %v12684_v43, %v12776_v28  ;;  %v12787_v32 = vrot.slane %v6858_v55, %v8307_v5  ;;  %v6903_v44 = vsel %vm4263_vm0, %v6885_v63, %v8059_v52 }
 0x309   : > { %6746 = vrot.lane.b32.xlu0 %v6711_v16, %s8236_s18  ;;  %v8072_v36 = vpop.permute.xlu1 %8071  ;;  %v8064_v6 = vunpack.i.h.bf16 %v8062_v50  ;;  %vm7401_vm6 = vcmask 1041408  }
 0x30a   : > { %v6791_v58 = vrot.slane %v6777_v21, %v8307_v5  ;;  %v6873_v61 = vcombine.low %v12784_v2, %v12787_v32  ;;  %v8063_v5 = vunpack.i.l.bf16 %v8062_v50  ;;  %v8073_v59 = vunpack.i.l.bf16 %v8072_v36 }
 0x30b   : > { %v6922_v19 = vsel %vm6910_vm13, %v6903_v44, %v8064_v6  ;;  %v8074_v45 = vunpack.i.h.bf16 %v8072_v36 }
 0x30c   : > { %v6792_v17 = vcombine.low %v6784_v24, %v6791_v58  ;;  %v6921_v46 = vsel %vm6910_vm13, %v6902_v41, %v8063_v5  ;;  %v6941_v62 = vsel %vm6929_vm14, %v6922_v19, %v8069_v25 }
 0x30d   : > { %v6940_v1 = vsel %vm6929_vm14, %v6921_v46, %v8068_v42  ;;  %v6960_v39 = vsel %vm6948_vm1, %v6941_v62, %v8074_v45 }
 0x30e   : > { %6827 = vrot.lane.b32.xlu1 %v6792_v17, %s8237_s28  ;;  %v6959_v53 = vsel %vm6948_vm1, %v6940_v1, %v8073_v59 }
 0x313   : > { %v8077_v29 = vpop.permute.xlu0 %8076 }
 0x314   : > { %v8078_v54 = vunpack.i.l.bf16 %v8077_v29  ;;  %v8079_v60 = vunpack.i.h.bf16 %v8077_v29 }
 0x316   : > { %v6978_v12 = vsel %vm6967_vm2, %v6959_v53, %v8078_v54  ;;  %v6979_v15 = vsel %vm6967_vm2, %v6960_v39, %v8079_v60 }
 0x317   : > { %v8087_v16 = vpop.permute.xlu0 %8086 }
 0x318   : > { %v8082_v0 = vpop.permute.xlu1 %8081  ;;  %v8088_v35 = vunpack.i.l.bf16 %v8087_v16  ;;  %v8089_v57 = vunpack.i.h.bf16 %v8087_v16 }
 0x319   : > { %v8083_v49 = vunpack.i.l.bf16 %v8082_v0  ;;  %v8084_v8 = vunpack.i.h.bf16 %v8082_v0 }
 0x31a   : > { %v6887_v9 = vsel %vm4159_vm12, %v12330_v11, %v8089_v57 }
 0x31b   : > { %v6997_v23 = vsel %vm6986_vm3, %v6978_v12, %v8083_v49  ;;  %v6998_v38 = vsel %vm6986_vm3, %v6979_v15, %v8084_v8  ;;  %v8097_v55 = vpop.permute.xlu0 %8096 }
 0x31c   : > { %7181 = vmatmul.mubr.f32.gmra.mrb[20].mxu1 %v6997_v23  ;;  %v8092_v56 = vpop.permute.xlu1 %8091  ;;  %v8098_v50 = vunpack.i.l.bf16 %v8097_v55  ;;  %v8099_v36 = vunpack.i.h.bf16 %v8097_v55 }
 0x31d   : > { %7668 = vmatprep.mubr.msk.f32.mxu1 %vm4159_vm12, %v12404_v10  ;;  %v8093_v7 = vunpack.i.l.bf16 %v8092_v56  ;;  %v6886_v10 = vsel %vm4159_vm12, %v12230_v22, %v8088_v35  ;;  %v8094_v3 = vunpack.i.h.bf16 %v8092_v56 }
 0x31f   : > { %v6904_v58 = vsel %vm4263_vm0, %v6886_v10, %v8093_v7  ;;  %v6905_v52 = vsel %vm4263_vm0, %v6887_v9, %v8094_v3 }
 0x320   : > { %7186 = vmatmul.mubr.f32.gmra.mrb[22].mxu1 %v6998_v38  ;;  %v6923_v33 = vsel %vm6910_vm13, %v6904_v58, %v8098_v50  ;;  %v6924_v46 = vsel %vm6910_vm13, %v6905_v52, %v8099_v36 }
 0x321   : > { %7669 = vmatprep.mubr.msk.f32.mxu1 %vm4159_vm12, %v12484_v18 }
 0x323   : > { %v8107_v18 = vpop.permute.xlu0 %8106 }
 0x324   : > { %v8108_v29 = vunpack.i.l.bf16 %v8107_v18  ;;  %v8109_v6 = vunpack.i.h.bf16 %v8107_v18 }
 0x326   : > { %v8102_v21 = vpop.permute.xlu1 %8101 }
 0x327   : > { %v8103_v17 = vunpack.i.l.bf16 %v8102_v21  ;;  %v8104_v22 = vunpack.i.h.bf16 %v8102_v21 }
 0x329   : > { %v6942_v41 = vsel %vm6929_vm14, %v6923_v33, %v8103_v17  ;;  %v6943_v11 = vsel %vm6929_vm14, %v6924_v46, %v8104_v22 }
 0x32a   : > { %v6961_v25 = vsel %vm6948_vm1, %v6942_v41, %v8108_v29  ;;  %v6962_v19 = vsel %vm6948_vm1, %v6943_v11, %v8109_v6 }
 0x333   : > { %v12814_v24 = vpop.f32.mrb[0].mxu1 }
 0x334   : > { %v7134_v14 = vpop.f32.mrb[1].mxu1 }
 0x335   : > { %v8112_v34 = vpop.permute.xlu1 %8111 }
 0x336   : > { %v8113_v42 = vunpack.i.l.bf16 %v8112_v34  ;;  %v8114_v1 = vunpack.i.h.bf16 %v8112_v34 }
 0x337   : > { %v12820_v4 = vpop.f32.mrb[2].mxu1 }
 0x338   : > { %v7139_v5 = vpop.f32.mrb[3].mxu1  ;;  %v6980_v54 = vsel %vm6967_vm2, %v6961_v25, %v8113_v42  ;;  %v6981_v49 = vsel %vm6967_vm2, %v6962_v19, %v8114_v1 }
 0x339   : > { %v8122_v60 = vpop.permute.xlu1 %8121 }
 0x33a   : > { %v8117_v63 = vpop.permute.xlu0 %8116  ;;  %v8123_v8 = vunpack.i.l.bf16 %v8122_v60  ;;  %v8124_v56 = vunpack.i.h.bf16 %v8122_v60 }
 0x33b   : > { %v8118_v44 = vunpack.i.l.bf16 %v8117_v63  ;;  %v8119_v59 = vunpack.i.h.bf16 %v8117_v63 }
 0x33c   : > { %v6888_v35 = vsel %vm4159_vm12, %v12386_v30, %v8123_v8  ;;  %v6889_v50 = vsel %vm4159_vm12, %v12467_v37, %v8124_v56 }
 0x33d   : > { %v6999_v0 = vsel %vm6986_vm3, %v6980_v54, %v8118_v44  ;;  %v7000_v53 = vsel %vm6986_vm3, %v6981_v49, %v8119_v59 }
 0x33e   : > { %7191 = vmatmul.mubr.f32.gmra.mrb[24].mxu1 %v6999_v0  ;;  %v8127_v62 = vpop.permute.xlu0 %8126 }
 0x33f   : > { %7670 = vmatprep.mubr.msk.f32.mxu1 %vm4159_vm12, %v12536_v20  ;;  %v8128_v23 = vunpack.i.l.bf16 %v8127_v62  ;;  %v8129_v7 = vunpack.i.h.bf16 %v8127_v62 }
 0x341   : > { %v6906_v21 = vsel %vm4263_vm0, %v6888_v35, %v8128_v23  ;;  %v6907_v30 = vsel %vm4263_vm0, %v6889_v50, %v8129_v7 }
 0x342   : > { %7196 = vmatmul.mubr.f32.gmra.mrb[26].mxu1 %v7000_v53 }
 0x343   : > { %7671 = vmatprep.mubr.msk.f32.mxu1 %vm4159_vm12, %v12699_v26 }
 0x344   : > { %v8132_v45 = vpop.permute.xlu1 %8131 }
 0x345   : > { %v8133_v15 = vunpack.i.l.bf16 %v8132_v45  ;;  %v8134_v57 = vunpack.i.h.bf16 %v8132_v45 }
 0x347   : > { %v6925_v10 = vsel %vm6910_vm13, %v6906_v21, %v8133_v15  ;;  %v6926_v33 = vsel %vm6910_vm13, %v6907_v30, %v8134_v57  ;;  %v7319_v57 = vld [vmem:[%s13072_s5 + $0x8] sm:$0xff]  ;;  %v7395_v30 = vld [vmem:[%s13074_s7] sm:$0x3] }
 0x348   : > { %v8137_v12 = vpop.permute.xlu0 %8136  ;;  %v8142_v26 = vpop.permute.xlu1 %8141  ;;  %7809 = vmatpush3.msk.msra.mxu0 %vm7401_vm6, %v7395_v30 }
 0x349   : > { %v8138_v16 = vunpack.i.l.bf16 %v8137_v12  ;;  %v8139_v58 = vunpack.i.h.bf16 %v8137_v12  ;;  %v8143_v34 = vunpack.i.l.bf16 %v8142_v26  ;;  %v8144_v29 = vunpack.i.h.bf16 %v8142_v26 }
 0x34b   : > { %v6944_v17 = vsel %vm6929_vm14, %v6925_v10, %v8138_v16  ;;  %v6945_v41 = vsel %vm6929_vm14, %v6926_v33, %v8139_v58 }
 0x34c   : > { %v6963_v22 = vsel %vm6948_vm1, %v6944_v17, %v8143_v34  ;;  %v6964_v11 = vsel %vm6948_vm1, %v6945_v41, %v8144_v29  ;;  %v12902_v29 = vld [vmem:[%s13071_s4] ss:$0 sm:$0xff] }
 0x357   : > { %v8147_v20 = vpop.permute.xlu0 %8146 }
 0x358   : > { %v8148_v14 = vunpack.i.l.bf16 %v8147_v20  ;;  %v8149_v42 = vunpack.i.h.bf16 %v8147_v20 }
 0x35a   : > { %v6982_v36 = vsel %vm6967_vm2, %v6963_v22, %v8148_v14  ;;  %v6983_v54 = vsel %vm6967_vm2, %v6964_v11, %v8149_v42 }
 0x35b   : > { %v8157_v18 = vpop.permute.xlu0 %8156 }
 0x35c   : > { %v8158_v5 = vunpack.i.l.bf16 %v8157_v18 }
 0x35e   : > { %v6890_v1 = vsel %vm4159_vm12, %v12508_v27, %v8158_v5 }
 0x35f   : > { %v12836_v39 = vpop.f32.mrb[4].mxu1 }
 0x360   : > { %v7144_v38 = vpop.f32.mrb[5].mxu1 }
 0x363   : > { %v12841_v55 = vpop.f32.mrb[6].mxu1 }
 0x364   : > { %v7149_v3 = vpop.f32.mrb[7].mxu1 }
 0x365   : > { %v8167_v44 = vpop.permute.xlu0 %8166 }
 0x366   : > { %v8152_v9 = vpop.permute.xlu1 %8151  ;;  %v8168_v0 = vunpack.i.l.bf16 %v8167_v44  ;;  %v8169_v23 = vunpack.i.h.bf16 %v8167_v44 }
 0x367   : > { %v8153_v52 = vunpack.i.l.bf16 %v8152_v9  ;;  %v8154_v63 = vunpack.i.h.bf16 %v8152_v9 }
 0x369   : > { %v7001_v37 = vsel %vm6986_vm3, %v6982_v36, %v8153_v52  ;;  %v7002_v59 = vsel %vm6986_vm3, %v6983_v54, %v8154_v63  ;;  %v6664_v27 = vpop.permute.xlu0 %6663  ;;  %v7138_v63 = vadd.f32 %v12902_v29, %v12820_v4 }
 0x36a   : > { %v8162_v46 = vpop.permute.xlu1 %8161  ;;  %7201 = vmatmul.mubr.f32.gmra.mrb[28].mxu1 %v7001_v37  ;;  %v7133_v37 = vadd.f32 %v12902_v29, %v12814_v24 }
 0x36b   : > { %v8163_v25 = vunpack.i.l.bf16 %v8162_v46  ;;  %7672 = vmatprep.mubr.msk.f32.mxu1 %vm4159_vm12, %v6847_v31  ;;  %v8159_v31 = vunpack.i.h.bf16 %v8157_v18  ;;  %v8164_v60 = vunpack.i.h.bf16 %v8162_v46  ;;  %v7143_v46 = vadd.f32 %v12902_v29, %v12836_v39 }
 0x36c   : > { %v7240_v44 = vmul.f32 0.1, %v7138_v63  ;;  %v7239_v11 = vmul.f32 0.1, %v7133_v37 }
 0x36d   : > { %v6908_v6 = vsel %vm4263_vm0, %v6890_v1, %v8163_v25  ;;  %v6891_v8 = vsel %vm4159_vm12, %v12610_v47, %v8159_v31  ;;  %v7148_v25 = vadd.f32 %v12902_v29, %v12841_v55  ;;  %v7241_v1 = vmul.f32 0.1, %v7143_v46 }
 0x36e   : > { %v8172_v19 = vpop.permute.xlu1 %8171  ;;  %7206 = vmatmul.mubr.f32.gmra.mrb[30].mxu1 %v7002_v59  ;;  %v6927_v40 = vsel %vm6910_vm13, %v6908_v6, %v8168_v0  ;;  %v6909_v28 = vsel %vm4263_vm0, %v6891_v8, %v8164_v60  ;;  %vm7221_vm0 = vcmp.ge.f32.partialorder %v7133_v37, 0.0 }
 0x36f   : > { %v8173_v49 = vunpack.i.l.bf16 %v8172_v19  ;;  %7673 = vmatprep.mubr.msk.f32.mxu1 %vm4159_vm12, %v6856_v13  ;;  %v8174_v13 = vunpack.i.h.bf16 %v8172_v19  ;;  %v6928_v20 = vsel %vm6910_vm13, %v6909_v28, %v8169_v23  ;;  %vm7223_vm13 = vcmp.ge.f32.partialorder %v7143_v46, 0.0 }
 0x370   : > { %v7242_v4 = vmul.f32 0.1, %v7148_v25  ;;  %v12916_v24 = vsel %vm7221_vm0, %v7133_v37, %v7239_v11  ;;  %v12918_v39 = vsel %vm7223_vm13, %v7143_v46, %v7241_v1 }
 0x371   : > { %v6946_v51 = vsel %vm6929_vm14, %v6927_v40, %v8173_v49  ;;  %v6947_v16 = vsel %vm6929_vm14, %v6928_v20, %v8174_v13  ;;  %vm7224_vm14 = vcmp.ge.f32.partialorder %v7148_v25, 0.0  ;;  %v7278_v31 = vsel %vm4159_vm12, %v12918_v39, 0.0 }
 0x372   : > { %v6745_v53 = vpop.permute.xlu1 %6744  ;;  %v6965_v62 = vsel %vm6948_vm1, %v6946_v51, %v6664_v27  ;;  %v12923_v49 = vsel %vm7224_vm14, %v7148_v25, %v7242_v4  ;;  %v7275_v27 = vsel %vm4159_vm12, %v12916_v24, 0.0  ;;  %vm7397_vm14 = vcmask 15360  }
 0x373   : > { %v6984_v12 = vsel %vm6967_vm2, %v6965_v62, %v6745_v53 }
 0x376   : > { %v6666_v15 = vpop.permute.xlu1 %6665 }
 0x377   : > { %v6826_v45 = vpop.permute.xlu0 %6825  ;;  %v6966_v47 = vsel %vm6948_vm1, %v6947_v16, %v6666_v15 }
 0x378   : > { %v7003_v43 = vsel %vm6986_vm3, %v6984_v12, %v6826_v45  ;;  %v7280_v45 = vsel %vm4159_vm12, %v12923_v49, 0.0 }
 0x379   : > { %7211 = vmatmul.mubr.f32.gmra.mrb[32].mxu1 %v7003_v43 }
 0x37a   : > { %7674 = vmatprep.mubr.msk.f32.mxu1 %vm4159_vm12, %v6873_v61  ;;  %v7318_v61 = vld [vmem:[%s13072_s5] sm:$0xff] }
 0x37b   : > { %v6747_v38 = vpop.permute.xlu0 %6746  ;;  %v7847_v10 = vpack.c.bf16 %v7319_v57, %v7318_v61 }
 0x37c   : > { %v6985_v56 = vsel %vm6967_vm2, %v6966_v47, %v6747_v38 }
 0x37d   : > { %7848 = vmatpush3.bf16.msra.mxu1 %v7847_v10 }
 0x380   : > { %v6828_v35 = vpop.permute.xlu1 %6827  ;;  %v7152_v7 = vpop.f32.mrb[8].mxu1 }
 0x381   : > { %v7154_v21 = vpop.f32.mrb[9].mxu1  ;;  %v7004_v26 = vsel %vm6986_vm3, %v6985_v56, %v6828_v35  ;;  %v7153_v54 = vadd.f32 %v12902_v29, %v7152_v7 }
 0x382   : > { %7216 = vmatmul.mubr.f32.gmra.mrb[34].mxu1 %v7004_v26 }
 0x383   : > { %7805 = vmatprep.mubr.msk.f32.mxu1 %vm8232_vm8, %v13110_v48  ;;  %vm7222_vm8 = vcmp.ge.f32.partialorder %v7138_v63, 0.0  ;;  %v7243_v0 = vmul.f32 0.1, %v7153_v54  ;;  %vm7225_vm1 = vcmp.ge.f32.partialorder %v7153_v54, 0.0 }
 0x384   : > { %v7157_v2 = vpop.f32.mrb[10].mxu1  ;;  %v12913_v6 = vsel %vm7222_vm8, %v7138_v63, %v7240_v44 }
 0x385   : > { %v7159_v32 = vpop.f32.mrb[11].mxu1  ;;  %v7158_v59 = vadd.f32 %v12902_v29, %v7157_v2  ;;  %v7276_v19 = vsel %vm4159_vm12, %v12913_v6, 0.0  ;;  %v12930_v62 = vsel %vm7225_vm1, %v7153_v54, %v7243_v0 }
 0x386   : > { %v7277_v53 = vadd.f32 %v7276_v19, %v7275_v27  ;;  %v7282_v15 = vsel %vm4159_vm12, %v12930_v62, 0.0 }
 0x387   : > { %v7244_v40 = vmul.f32 0.1, %v7158_v59  ;;  %vm7226_vm2 = vcmp.ge.f32.partialorder %v7158_v59, 0.0 }
 0x388   : > { %v7279_v8 = vadd.f32 %v7278_v31, %v7277_v53 }
 0x389   : > { %v12935_v43 = vsel %vm7226_vm2, %v7158_v59, %v7244_v40 }
 0x38a   : > { %v7281_v38 = vadd.f32 %v7280_v45, %v7279_v8  ;;  %v7284_v35 = vsel %vm4159_vm12, %v12935_v43, 0.0 }
 0x38c   : > { %v7283_v7 = vadd.f32 %v7282_v15, %v7281_v38 }
 0x38e   : > { %v7285_v10 = vadd.f32 %v7284_v35, %v7283_v7 }
 0x3a2   : > { %v7162_v3 = vpop.f32.mrb[12].mxu1 }
 0x3a3   : > { %v7164_v58 = vpop.f32.mrb[13].mxu1  ;;  %v7163_v55 = vadd.f32 %v12902_v29, %v7162_v3 }
 0x3a5   : > { %v7245_v60 = vmul.f32 0.1, %v7163_v55  ;;  %vm7227_vm3 = vcmp.ge.f32.partialorder %v7163_v55, 0.0 }
 0x3a6   : > { %v7167_v17 = vpop.f32.mrb[14].mxu1 }
 0x3a7   : > { %v7169_v14 = vpop.f32.mrb[15].mxu1  ;;  %v7168_v51 = vadd.f32 %v12902_v29, %v7167_v17  ;;  %v12940_v16 = vsel %vm7227_vm3, %v7163_v55, %v7245_v60 }
 0x3a8   : > { %v7286_v61 = vsel %vm4159_vm12, %v12940_v16, 0.0 }
 0x3a9   : > { %v7246_v28 = vmul.f32 0.1, %v7168_v51  ;;  %vm7228_vm10 = vcmp.ge.f32.partialorder %v7168_v51, 0.0 }
 0x3ab   : > { %v12945_v21 = vsel %vm7228_vm10, %v7168_v51, %v7246_v28 }
 0x3ac   : > { %v7288_v14 = vsel %vm4159_vm12, %v12945_v21, 0.0 }
 0x3d0   : > { %v7172_v50 = vpop.f32.mrb[16].mxu1 }
 0x3d1   : > { %v7174_v34 = vpop.f32.mrb[17].mxu1  ;;  %v7173_v12 = vadd.f32 %v12902_v29, %v7172_v50  ;;  %v7287_v50 = vadd.f32 %v7286_v61, %v7285_v10 }
 0x3d3   : > { %v7247_v47 = vmul.f32 0.1, %v7173_v12  ;;  %vm7229_vm11 = vcmp.ge.f32.partialorder %v7173_v12, 0.0 }
 0x3d4   : > { %v7177_v18 = vpop.f32.mrb[18].mxu1 }
 0x3d5   : > { %v7179_v48 = vpop.f32.mrb[19].mxu1  ;;  %v7178_v13 = vadd.f32 %v12902_v29, %v7177_v18  ;;  %v12950_v3 = vsel %vm7229_vm11, %v7173_v12, %v7247_v47 }
 0x3d6   : > { %v7290_v30 = vsel %vm4159_vm12, %v12950_v3, 0.0 }
 0x3d7   : > { %v7248_v26 = vmul.f32 0.1, %v7178_v13  ;;  %vm7230_vm15 = vcmp.ge.f32.partialorder %v7178_v13, 0.0 }
 0x3d9   : > { %v12956_v34 = vsel %vm7230_vm15, %v7178_v13, %v7248_v26 }
 0x3ef   : > { %v7182_v9 = vpop.f32.mrb[20].mxu1 }
 0x3f0   : > { %v7184_v33 = vpop.f32.mrb[21].mxu1  ;;  %v7183_v56 = vadd.f32 %v12902_v29, %v7182_v9  ;;  %v7289_v9 = vadd.f32 %v7288_v14, %v7287_v50 }
 0x3f2   : > { %v7249_v58 = vmul.f32 0.1, %v7183_v56  ;;  %vm7231_vm4 = vcmp.ge.f32.partialorder %v7183_v56, 0.0 }
 0x3f3   : > { %v7187_v52 = vpop.f32.mrb[22].mxu1 }
 0x3f4   : > { %v7189_v22 = vpop.f32.mrb[23].mxu1  ;;  %v7188_v2 = vadd.f32 %v12902_v29, %v7187_v52  ;;  %v12962_v33 = vsel %vm7231_vm4, %v7183_v56, %v7249_v58 }
 0x3f5   : > { %v7294_v37 = vsel %vm4159_vm12, %v12962_v33, 0.0 }
 0x3f6   : > { %v7250_v18 = vmul.f32 0.1, %v7188_v2  ;;  %vm7232_vm5 = vcmp.ge.f32.partialorder %v7188_v2, 0.0 }
 0x411   : > { %v12895_v41 = vpop.f32.mrb[24].mxu1 }
 0x412   : > { %v7194_v42 = vpop.f32.mrb[25].mxu1  ;;  %v7193_v17 = vadd.f32 %v12902_v29, %v12895_v41  ;;  %v7292_v41 = vsel %vm4159_vm12, %v12956_v34, 0.0 }
 0x413   : > { %v7291_v42 = vadd.f32 %v7290_v30, %v7289_v9  ;;  %v7396_v9 = vld [vmem:[%s13075_s8] sm:$0x1] }
 0x414   : > { %v7251_v52 = vmul.f32 0.1, %v7193_v17  ;;  %vm7233_vm7 = vcmp.ge.f32.partialorder %v7193_v17, 0.0 }
 0x415   : > { %v12897_v5 = vpop.f32.mrb[26].mxu1  ;;  %v7293_v46 = vadd.f32 %v7292_v41, %v7291_v42 }
 0x416   : > { %v7199_v36 = vpop.f32.mrb[27].mxu1  ;;  %v7198_v48 = vadd.f32 %v12902_v29, %v12897_v5  ;;  %v12972_v44 = vsel %vm7233_vm7, %v7193_v17, %v7251_v52 }
 0x417   : > { %v12967_v36 = vsel %vm7232_vm5, %v7188_v2, %v7250_v18  ;;  %v7295_v54 = vadd.f32 %v7294_v37, %v7293_v46  ;;  %v7298_v19 = vsel %vm4159_vm12, %v12972_v44, 0.0  ;;  %v13142_v46 = vld [vmem:[#allocation2_spill] sm:$0xff] }
 0x418   : > { %v7252_v63 = vmul.f32 0.1, %v7198_v48  ;;  %vm7234_vm9 = vcmp.ge.f32.partialorder %v7198_v48, 0.0  ;;  %v7296_v11 = vsel %vm4159_vm12, %v12967_v36, 0.0 }
 0x419   : > { %v7297_v40 = vadd.f32 %v7296_v11, %v7295_v54 }
 0x41a   : > { %v12976_v4 = vsel %vm7234_vm9, %v7198_v48, %v7252_v63 }
 0x41b   : > { %v7300_v31 = vsel %vm4159_vm12, %v12976_v4, 0.0  ;;  %v7299_v53 = vadd.f32 %v7298_v19, %v7297_v40 }
 0x41d   : > { %v7301_v45 = vadd.f32 %v7300_v31, %v7299_v53 }
 0x43d   : > { %v7202_v23 = vpop.f32.mrb[28].mxu1 }
 0x43e   : > { %v7204_v20 = vpop.f32.mrb[29].mxu1  ;;  %v7203_v22 = vadd.f32 %v12902_v29, %v7202_v23 }
 0x440   : > { %v7253_v25 = vmul.f32 0.1, %v7203_v22  ;;  %vm7235_vm6 = vcmp.ge.f32.partialorder %v7203_v22, 0.0 }
 0x441   : > { %v7207_v32 = vpop.f32.mrb[30].mxu1 }
 0x442   : > { %v7209_v57 = vpop.f32.mrb[31].mxu1  ;;  %v7208_v5 = vadd.f32 %v12902_v29, %v7207_v32  ;;  %v12981_v51 = vsel %vm7235_vm6, %v7203_v22, %v7253_v25  ;;  %v7483_v25 = vsub.s32 0, %v13142_v46 }
 0x443   : > { %v7302_v12 = vsel %vm4159_vm12, %v12981_v51, 0.0 }
 0x444   : > { %v7254_v59 = vmul.f32 0.1, %v7208_v5  ;;  %vm7236_vm8 = vcmp.ge.f32.partialorder %v7208_v5, 0.0  ;;  %v7303_v23 = vadd.f32 %v7302_v12, %v7301_v45 }
 0x446   : > { %v12985_v60 = vsel %vm7236_vm8, %v7208_v5, %v7254_v59 }
 0x447   : > { %v7304_v28 = vsel %vm4159_vm12, %v12985_v60, 0.0 }
 0x448   : > { %v7305_v47 = vadd.f32 %v7304_v28, %v7303_v23 }
 0x44c   : > { %v7212_v1 = vpop.f32.mrb[32].mxu1 }
 0x44d   : > { %v7213_v0 = vadd.f32 %v12902_v29, %v7212_v1  ;;  %v7214_v55 = vpop.f32.mrb[33].mxu1 }
 0x44f   : > { %v7255_v27 = vmul.f32 0.1, %v7213_v0  ;;  %vm7237_vm0 = vcmp.ge.f32.partialorder %v7213_v0, 0.0 }
 0x451   : > { %v12989_v8 = vsel %vm7237_vm0, %v7213_v0, %v7255_v27 }
 0x452   : > { %v7306_v38 = vsel %vm4159_vm12, %v12989_v8, 0.0 }
 0x453   : > { %v7307_v35 = vadd.f32 %v7306_v38, %v7305_v47 }
 0x455   : > { %v7217_v13 = vpop.f32.mrb[34].mxu1 }
 0x456   : > { %v7218_v15 = vadd.f32 %v12902_v29, %v7217_v13  ;;  %v7219_v20 = vpop.f32.mrb[35].mxu1  ;;  %v7320_v29 = vld [vmem:[%s13073_s6] sm:$0x1] }
 0x458   : > { %vm7238_vm13 = vcmp.ge.f32.partialorder %v7218_v15, 0.0  ;;  %v7256_v56 = vmul.f32 0.1, %v7218_v15 }
 0x45a   : > { %v7274_v7 = vsel %vm7238_vm13, %v7218_v15, %v7256_v56 }
 0x45b   : > { %v7308_v26 = vsel %vm4159_vm12, %v7274_v7, 0.0 }
 0x45c   : > { %v7309_v2 = vadd.f32 %v7308_v26, %v7307_v35 }
 0x45e   : > { %v7310_v32 = vrot.slane %v7309_v2, 4 }
 0x460   : > { %v7311_v61 = vadd.f32 %v7310_v32, %v7309_v2 }
 0x462   : > { %v7312_v57 = vrot.slane %v7311_v61, 2 }
 0x464   : > { %v7313_v10 = vadd.f32 %v7312_v57, %v7311_v61 }
 0x466   : > { %v7314_v58 = vrot.slane %v7313_v10, 1 }
 0x468   : > { %v7315_v17 = vadd.f32 %v7314_v58, %v7313_v10 }
 0x46a   : > { %v7317_v14 = vmul.f32 0.0069444445, %v7315_v17 }
 0x46c   : > { %7806 = vmatmul.mubr.msk.f32.vlgmr.msra.gmra.mrb[36].mxu1 %vm4159_vm12, %v7317_v14 }
 0x53f   : > { %v7390_v50 = vpop.f32.mrb[36].mxu1 }
 0x540   : > { %v7391_v18 = vadd.f32 %v7390_v50, %v7320_v29  ;;  %v7807_v48 = vpop.f32.mrb[37].mxu1 }
 0x542   : > { %v7394_v30 = vmax.f32 %v7391_v18, 0.0 }
 0x544   : > { %7811 = vmatmul.mubr.msk.f32.vlgmr.msra.gmra.mrb[50].mxu0 %vm7397_vm14, %v7394_v30 }
 0x617   : > { %v7471_v52 = vpop.f32.mrb[50].mxu0 }
 0x618   : > { %v7472_v22 = vadd.f32 %v7471_v52, %v7396_v9  ;;  %v7812_v41 = vpop.f32.mrb[51].mxu0 }
 0x61a   : > { %v7475_v42 = vsub.f32 0.0, %v7472_v22 }
 0x61c   : > { %v7476_v63 = vmul.f32 1.442695, %v7475_v42 }
 0x61e   : > { %8207 = vpow2.f32 %v7476_v63 }
 0x628   : > { %v8208_v5 = vpop.eup %8207 }
 0x629   : > { %v7478_v37 = vadd.f32 1.0, %v8208_v5 }
 0x62b   : > { %8209 = vrcp.f32 %v7478_v37 }
 0x635   : > { %v8210_v11 = vpop.eup %8209 }
 0x636   : > { %v7484_v1 = vrot.slane %v8210_v11, %v7483_v25 }
 0x638   : > { %v7485_v54 = vmul.f32 %v7484_v1, %v12916_v24  ;;  %v7486_v59 = vmul.f32 %v7484_v1, %v12913_v6  ;;  %v7487_v0 = vmul.f32 %v7484_v1, %v12918_v39  ;;  %v7488_v55 = vmul.f32 %v7484_v1, %v12923_v49 }
 0x639   : > { %v7489_v19 = vmul.f32 %v7484_v1, %v12930_v62  ;;  %v7490_v40 = vmul.f32 %v7484_v1, %v12935_v43  ;;  %v7491_v27 = vmul.f32 %v7484_v1, %v12940_v16  ;;  %v7492_v31 = vmul.f32 %v7484_v1, %v12945_v21 }
 0x63a   : > { %v7493_v24 = vmul.f32 %v7484_v1, %v12950_v3  ;;  %v7494_v6 = vmul.f32 %v7484_v1, %v12956_v34  ;;  %v7495_v39 = vmul.f32 %v7484_v1, %v12962_v33  ;;  %v7496_v49 = vmul.f32 %v7484_v1, %v12967_v36  ;;  %7503 = vst.msk [vmem:[%s13009_s29] sm:$0xff] %vm4159_vm12, %v7485_v54 }
 0x63b   : > { %7504 = vst.msk [vmem:[%s13009_s29 + $0x8] sm:$0xff] %vm4159_vm12, %v7486_v59  ;;  %7505 = vst.msk [vmem:[%s13009_s29 + $0x10] sm:$0xff] %vm4159_vm12, %v7487_v0  ;;  %v7497_v62 = vmul.f32 %v7484_v1, %v12972_v44  ;;  %v7498_v43 = vmul.f32 %v7484_v1, %v12976_v4  ;;  %v7499_v16 = vmul.f32 %v7484_v1, %v12981_v51 }
 0x63c   : > { %7506 = vst.msk [vmem:[%s13009_s29 + $0x18] sm:$0xff] %vm4159_vm12, %v7488_v55  ;;  %v7500_v21 = vmul.f32 %v7484_v1, %v12985_v60  ;;  %7507 = vst.msk [vmem:[%s13009_s29 + $0x20] sm:$0xff] %vm4159_vm12, %v7489_v19  ;;  %v7501_v3 = vmul.f32 %v7484_v1, %v12989_v8  ;;  %v7502_v34 = vmul.f32 %v7484_v1, %v7274_v7 }
 0x63d   : > { %7508 = vst.msk [vmem:[%s13009_s29 + $0x28] sm:$0xff] %vm4159_vm12, %v7490_v40  ;;  %7509 = vst.msk [vmem:[%s13009_s29 + $0x30] sm:$0xff] %vm4159_vm12, %v7491_v27 }
 0x63e   : > { %7510 = vst.msk [vmem:[%s13009_s29 + $0x38] sm:$0xff] %vm4159_vm12, %v7492_v31  ;;  %7511 = vst.msk [vmem:[%s13009_s29 + $0x40] sm:$0xff] %vm4159_vm12, %v7493_v24 }
 0x63f   : > { %7512 = vst.msk [vmem:[%s13009_s29 + $0x48] sm:$0xff] %vm4159_vm12, %v7494_v6  ;;  %7513 = vst.msk [vmem:[%s13009_s29 + $0x50] sm:$0xff] %vm4159_vm12, %v7495_v39 }
 0x640   : > { %7514 = vst.msk [vmem:[%s13009_s29 + $0x58] sm:$0xff] %vm4159_vm12, %v7496_v49  ;;  %7515 = vst.msk [vmem:[%s13009_s29 + $0x60] sm:$0xff] %vm4159_vm12, %v7497_v62 }
 0x641   : > { %7516 = vst.msk [vmem:[%s13009_s29 + $0x68] sm:$0xff] %vm4159_vm12, %v7498_v43  ;;  %7517 = vst.msk [vmem:[%s13009_s29 + $0x70] sm:$0xff] %vm4159_vm12, %v7499_v16 }
 0x642   : > { %7518 = vst.msk [vmem:[%s13009_s29 + $0x78] sm:$0xff] %vm4159_vm12, %v7500_v21  ;;  %7519 = vst.msk [vmem:[%s13009_s29 + $0x80] sm:$0xff] %vm4159_vm12, %v7501_v3 }
 0x643   : > { %7520 = vst.msk [vmem:[%s13009_s29 + $0x88] sm:$0xff] %vm4159_vm12, %v7502_v34 }
 0x644 PF: > { %s19_s30 = sadd.s32 1, %s8219_s30  }
 0x645   : > { %p16_p4 = scmp.ge.s32.totalorder %s19_s30, 4  }
 0x647   :  { %18 = sbr.rel (!%p16_p4) target bundleno = 1 (0x1), region = 86 }

</bundles_post_ra>
